<compile_context>
chip_gen: v7x
topology: tpu7x:2x2x1
jax: 0.10.0
libtpu: 0.0.40
codegen_flags: <defaults>
</compile_context>

<pallas_src>
import functools

import jax
import jax.numpy as jnp
from jax.experimental import pallas as pl
from jax.experimental.pallas import tpu as pltpu


def _round_up(x, m):
    return (x + m - 1) // m * m


def _fused_resblock_kernel(x_ref, w1_ref, s1_ref, b1_ref,
                           w2_ref, s2_ref, b2_ref, o_ref,
                           xpad1, patch1, xpad2, patch2, *, stride):
    """One batch image per grid step: conv3x3+BN+ReLU -> conv3x3+BN, fused.

    x_ref:   (1, H, W, Cin)          f32  input image (halo built in VMEM)
    w1_ref:  (K1p, Cmid_p)           bf16 im2col weights, K1p = rup(9*Cin, 8)
    s1/b1:   (1, Cmid_p)             f32  folded BN scale/shift for conv1
    w2_ref:  (K2p, Cout_p)           bf16 im2col weights, K2p = 9*Cmid_p
    s2/b2:   (1, Cout_p)             f32  folded BN scale/shift for conv2
    o_ref:   (1, Ho, Wo, Cout_p)     f32  lane-dense output block
    xpad1:   (H+2, W+2, Cin)         f32  VMEM scratch: zero halo + image
    patch1:  (Ho, Wo, K1p)           bf16 VMEM scratch: im2col slab for conv1
    xpad2:   (Ho+2, Wo+2, Cmid_p)    f32  VMEM scratch: intermediate + halo
    patch2:  (Ho, Wo, K2p)           bf16 VMEM scratch: im2col slab for conv2
    """
    _, H, W, Cin = x_ref.shape
    Ho, Wo, K1p = patch1.shape
    Cmid_p = w1_ref.shape[1]
    K2p = patch2.shape[2]

    # ---------------- conv1 + BN + ReLU ----------------
    # Zero halo + image in VMEM (no padded HBM copy).
    xpad1[...] = jnp.zeros(xpad1.shape, xpad1.dtype)
    xpad1[pl.ds(1, H), pl.ds(1, W), :] = x_ref[0]

    # im2col slab; zero once so the K-padding tail columns are exactly zero.
    patch1[...] = jnp.zeros(patch1.shape, patch1.dtype)
    xv = xpad1[...]                                   # tiny: (H+2, W+2, Cin)
    for kh in range(3):
        for kw in range(3):
            tap = jax.lax.slice(
                xv, (kh, kw, 0),
                (kh + (Ho - 1) * stride + 1, kw + (Wo - 1) * stride + 1, Cin),
                (stride, stride, 1))                  # (Ho, Wo, Cin)
            col = (kh * 3 + kw) * Cin
            patch1[:, :, pl.ds(col, Cin)] = tap.astype(jnp.bfloat16)

    # One MXU matmul: (Ho*Wo, 9*Cin) x (9*Cin, Cmid_p), f32 accumulation.
    acc1 = jnp.dot(patch1[...].reshape(Ho * Wo, K1p), w1_ref[...],
                   preferred_element_type=jnp.float32)
    y1 = jnp.maximum(acc1 * s1_ref[...] + b1_ref[...], 0.0)     # f32 epilogue

    # ---------------- conv2 + BN (no activation) ----------------
    # Intermediate + its halo never leave VMEM.
    xpad2[...] = jnp.zeros(xpad2.shape, xpad2.dtype)
    xpad2[pl.ds(1, Ho), pl.ds(1, Wo), :] = y1.reshape(Ho, Wo, Cmid_p)

    for kh in range(3):
        for kw in range(3):
            tap = xpad2[pl.ds(kh, Ho), pl.ds(kw, Wo), :]        # (Ho, Wo, Cmid_p)
            col = (kh * 3 + kw) * Cmid_p
            patch2[:, :, pl.ds(col, Cmid_p)] = tap.astype(jnp.bfloat16)

    acc2 = jnp.dot(patch2[...].reshape(Ho * Wo, K2p), w2_ref[...],
                   preferred_element_type=jnp.float32)
    y2 = acc2 * s2_ref[...] + b2_ref[...]                       # f32 epilogue

    # Lane-dense store (Cout padded to a multiple of 128).
    o_ref[...] = y2.reshape(o_ref.shape)


def res_block_forward(x_nhwc, params, *, stride):
    """ResBlock.forward: conv1 (BN+ReLU) then conv2 (BN), fused in one kernel."""
    N, H, W, Cin = x_nhwc.shape
    w1, w2 = params["w1"], params["w2"]      # HWIO: (3,3,Cin,Cmid), (3,3,Cmid,Cout)
    Cmid, Cout = w1.shape[-1], w2.shape[-1]
    Ho = (H + 2 - 3) // stride + 1
    Wo = (W + 2 - 3) // stride + 1

    # Lane-dense channel padding for both conv outputs.
    Cmid_p = _round_up(Cmid, 128)
    Cout_p = _round_up(Cout, 128)
    K1 = 9 * Cin
    K1p = _round_up(K1, 8)
    K2p = 9 * Cmid_p

    # im2col weights, bf16 for the MXU (zero rows/cols in the padding).
    w1r = jnp.pad(w1.reshape(K1, Cmid),
                  ((0, K1p - K1), (0, Cmid_p - Cmid))).astype(jnp.bfloat16)
    w2r = jnp.pad(w2, ((0, 0), (0, 0), (0, Cmid_p - Cmid), (0, Cout_p - Cout))
                  ).reshape(K2p, Cout_p).astype(jnp.bfloat16)

    def _cvec(v, cp):
        return jnp.pad(v.astype(jnp.float32), (0, cp - v.shape[0])).reshape(1, cp)

    s1, b1 = _cvec(params["scale1"], Cmid_p), _cvec(params["shift1"], Cmid_p)
    s2, b2 = _cvec(params["scale2"], Cout_p), _cvec(params["shift2"], Cout_p)

    kernel = functools.partial(_fused_resblock_kernel, stride=stride)
    flops = 2 * N * Ho * Wo * (K1p * Cmid_p + K2p * Cout_p)
    bytes_accessed = int(x_nhwc.size * 4 + w1r.size * 2 + w2r.size * 2
                         + N * Ho * Wo * Cout_p * 4)

    out = pl.pallas_call(
        kernel,
        out_shape=jax.ShapeDtypeStruct((N, Ho, Wo, Cout_p), jnp.float32),
        grid_spec=pltpu.PrefetchScalarGridSpec(
            num_scalar_prefetch=0,
            grid=(N,),
            in_specs=[
                pl.BlockSpec((1, H, W, Cin), lambda n: (n, 0, 0, 0)),   # x
                pl.BlockSpec((K1p, Cmid_p), lambda n: (0, 0)),          # w1 (im2col)
                pl.BlockSpec((1, Cmid_p), lambda n: (0, 0)),            # scale1
                pl.BlockSpec((1, Cmid_p), lambda n: (0, 0)),            # shift1
                pl.BlockSpec((K2p, Cout_p), lambda n: (0, 0)),          # w2 (im2col)
                pl.BlockSpec((1, Cout_p), lambda n: (0, 0)),            # scale2
                pl.BlockSpec((1, Cout_p), lambda n: (0, 0)),            # shift2
            ],
            out_specs=pl.BlockSpec((1, Ho, Wo, Cout_p), lambda n: (n, 0, 0, 0)),
            scratch_shapes=[
                pltpu.VMEM((H + 2, W + 2, Cin), jnp.float32),       # padded input
                pltpu.VMEM((Ho, Wo, K1p), jnp.bfloat16),            # im2col slab 1
                pltpu.VMEM((Ho + 2, Wo + 2, Cmid_p), jnp.float32),  # padded mid act
                pltpu.VMEM((Ho, Wo, K2p), jnp.bfloat16),            # im2col slab 2
            ]),
        compiler_params=pltpu.CompilerParams(
            dimension_semantics=("parallel",),
            vmem_limit_bytes=32 * 1024 * 1024),
        cost_estimate=pl.CostEstimate(
            flops=flops, transcendentals=0, bytes_accessed=bytes_accessed),
    )(x_nhwc.astype(jnp.float32), w1r, s1, b1, w2r, s2, b2)

    return out[..., :Cout]


def _fold_bn(gamma, beta, running_mean, running_var, eps=1e-5):
    scale = gamma / jnp.sqrt(running_var + eps)
    shift = beta - running_mean * scale
    return scale, shift


def _ref_conv_bn(x, w, scale, shift, stride, apply_relu):
    y = jax.lax.conv_general_dilated(
        x, w, window_strides=(stride, stride), padding=((1, 1), (1, 1)),
        dimension_numbers=("NHWC", "HWIO", "NHWC"))
    y = y * scale.reshape(1, 1, 1, -1) + shift.reshape(1, 1, 1, -1)
    if apply_relu:
        y = jnp.maximum(y, 0.0)
    return y


if __name__ == "__main__":
    # ResBlock(in_channels=4, out_channels=8, stride=1), input (2, 4, 16, 16).
    N, Cin, H, W = 2, 4, 16, 16
    Cout = 8
    stride = 1
    eps = 1e-5

    key = jax.random.PRNGKey(0)
    k1, k2, kx = jax.random.split(key, 3)

    # PyTorch conv weights are OIHW; create deterministically, convert to HWIO.
    w1_oihw = 0.1 * jax.random.normal(k1, (Cout, Cin, 3, 3), jnp.float32)
    w2_oihw = 0.1 * jax.random.normal(k2, (Cout, Cout, 3, 3), jnp.float32)
    w1 = jnp.transpose(w1_oihw, (2, 3, 1, 0))  # HWIO
    w2 = jnp.transpose(w2_oihw, (2, 3, 1, 0))  # HWIO

    # BatchNorm parameters at PyTorch defaults: gamma=1, beta=0, mean=0, var=1.
    gamma = jnp.ones((Cout,), jnp.float32)
    beta = jnp.zeros((Cout,), jnp.float32)
    rmean = jnp.zeros((Cout,), jnp.float32)
    rvar = jnp.ones((Cout,), jnp.float32)
    scale1, shift1 = _fold_bn(gamma, beta, rmean, rvar, eps)
    scale2, shift2 = _fold_bn(gamma, beta, rmean, rvar, eps)

    params = dict(w1=w1, scale1=scale1, shift1=shift1,
                  w2=w2, scale2=scale2, shift2=shift2)

    # Input in PyTorch NCHW convention, transposed to NHWC for the kernel.
    x_nchw = jax.random.normal(kx, (N, Cin, H, W), jnp.float32)
    x_nhwc = jnp.transpose(x_nchw, (0, 2, 3, 1))

    out = res_block_forward(x_nhwc, params, stride=stride)
    out = jax.block_until_ready(out)

    # Reference check against XLA convolution (f32). The kernel feeds the MXU
    # bf16 operands with f32 accumulation, so use a bf16-appropriate tolerance.
    ref = _ref_conv_bn(x_nhwc, w1, scale1, shift1, stride, True)
    ref = _ref_conv_bn(ref, w2, scale2, shift2, 1, False)
    assert out.shape == ref.shape, (out.shape, ref.shape)
    rel = jnp.linalg.norm(out - ref) / (jnp.linalg.norm(ref) + 1e-12)
    max_abs = jnp.max(jnp.abs(out - ref))
    assert (rel < 3e-2) and (max_abs < 1e-1), f"mismatch: rel={rel}, max_abs={max_abs}"

    print("KERNEL_OK")
</pallas_src>

<mosaic_0001>
module attributes {stable_mosaic.version = 11 : i64} {
  func.func @_fused_resblock_kernel(%arg0: i32, %arg1: memref<1x16x16x4xf32, #tpu.memory_space<vmem>>, %arg2: memref<40x128xbf16, #tpu.memory_space<vmem>>, %arg3: memref<1x128xf32, #tpu.memory_space<vmem>>, %arg4: memref<1x128xf32, #tpu.memory_space<vmem>>, %arg5: memref<1152x128xbf16, #tpu.memory_space<vmem>>, %arg6: memref<1x128xf32, #tpu.memory_space<vmem>>, %arg7: memref<1x128xf32, #tpu.memory_space<vmem>>, %arg8: memref<1x16x16x128xf32, #tpu.memory_space<vmem>>, %arg9: memref<18x18x4xf32, #tpu.memory_space<vmem>>, %arg10: memref<16x16x40xbf16, #tpu.memory_space<vmem>>, %arg11: memref<18x18x128xf32, #tpu.memory_space<vmem>>, %arg12: memref<16x16x1152xbf16, #tpu.memory_space<vmem>>) attributes {dimension_semantics = [#tpu.dimension_semantics<parallel>], iteration_bounds = array<i64: 2>, scalar_prefetch = 0 : i64, scratch_operands = 4 : i64, tpu.core_type = #tpu.core_type<tc>, window_params = [{transform_indices = @transform_0, window_bounds = array<i64: 1, 16, 16, 4>}, {pipeline_mode = #tpu.pipeline_mode<synchronous>, transform_indices = @transform_1, window_bounds = array<i64: 40, 128>}, {pipeline_mode = #tpu.pipeline_mode<synchronous>, transform_indices = @transform_2, window_bounds = array<i64: 1, 128>}, {pipeline_mode = #tpu.pipeline_mode<synchronous>, transform_indices = @transform_3, window_bounds = array<i64: 1, 128>}, {pipeline_mode = #tpu.pipeline_mode<synchronous>, transform_indices = @transform_4, window_bounds = array<i64: 1152, 128>}, {pipeline_mode = #tpu.pipeline_mode<synchronous>, transform_indices = @transform_5, window_bounds = array<i64: 1, 128>}, {pipeline_mode = #tpu.pipeline_mode<synchronous>, transform_indices = @transform_6, window_bounds = array<i64: 1, 128>}, {transform_indices = @transform_7, window_bounds = array<i64: 1, 16, 16, 128>}]} {
    %cst = arith.constant 0.000000e+00 : f32
    %0 = vector.broadcast %cst : f32 to vector<18x18x4xf32>
    %c0 = arith.constant 0 : index
    %c0_0 = arith.constant 0 : index
    %c0_1 = arith.constant 0 : index
    %1 = vector.load %arg9[%c0, %c0_0, %c0_1] : memref<18x18x4xf32, #tpu.memory_space<vmem>>, vector<18x18x4xf32>
    tpu.vector_store %arg9[%c0, %c0_0, %c0_1], %0 {strides = array<i32>} : memref<18x18x4xf32, #tpu.memory_space<vmem>>, vector<18x18x4xf32>,
    %c0_2 = arith.constant 0 : index
    %c0_3 = arith.constant 0 : index
    %c0_4 = arith.constant 0 : index
    %c0_5 = arith.constant 0 : index
    %2 = vector.load %arg1[%c0_2, %c0_3, %c0_4, %c0_5] : memref<1x16x16x4xf32, #tpu.memory_space<vmem>>, vector<1x16x16x4xf32>
    %3 = vector.shape_cast %2 : vector<1x16x16x4xf32> to vector<16x16x4xf32>
    %c1 = arith.constant 1 : index
    %c1_6 = arith.constant 1 : index
    %c0_7 = arith.constant 0 : index
    %4 = vector.load %arg9[%c1, %c1_6, %c0_7] : memref<18x18x4xf32, #tpu.memory_space<vmem>>, vector<16x16x4xf32>
    tpu.vector_store %arg9[%c1, %c1_6, %c0_7], %3 {strides = array<i32>} : memref<18x18x4xf32, #tpu.memory_space<vmem>>, vector<16x16x4xf32>,
    %cst_8 = arith.constant 0.000000e+00 : bf16
    %5 = vector.broadcast %cst_8 : bf16 to vector<16x16x40xbf16>
    %c0_9 = arith.constant 0 : index
    %c0_10 = arith.constant 0 : index
    %c0_11 = arith.constant 0 : index
    %6 = vector.load %arg10[%c0_9, %c0_10, %c0_11] : memref<16x16x40xbf16, #tpu.memory_space<vmem>>, vector<16x16x40xbf16>
    tpu.vector_store %arg10[%c0_9, %c0_10, %c0_11], %5 {strides = array<i32>} : memref<16x16x40xbf16, #tpu.memory_space<vmem>>, vector<16x16x40xbf16>,
    %c0_12 = arith.constant 0 : index
    %c0_13 = arith.constant 0 : index
    %c0_14 = arith.constant 0 : index
    %7 = vector.load %arg9[%c0_12, %c0_13, %c0_14] : memref<18x18x4xf32, #tpu.memory_space<vmem>>, vector<18x18x4xf32>
    %8 = vector.extract_strided_slice %7 {offsets = [0, 0, 0], sizes = [16, 16, 4], strides = [1, 1, 1]} : vector<18x18x4xf32> to vector<16x16x4xf32>
    %9 = arith.truncf %8 : vector<16x16x4xf32> to vector<16x16x4xbf16>
    %c0_15 = arith.constant 0 : index
    %c0_16 = arith.constant 0 : index
    %c0_17 = arith.constant 0 : index
    %10 = vector.load %arg10[%c0_15, %c0_16, %c0_17] : memref<16x16x40xbf16, #tpu.memory_space<vmem>>, vector<16x16x4xbf16>
    tpu.vector_store %arg10[%c0_15, %c0_16, %c0_17], %9 {strides = array<i32>} : memref<16x16x40xbf16, #tpu.memory_space<vmem>>, vector<16x16x4xbf16>,
    %11 = vector.extract_strided_slice %7 {offsets = [0, 1, 0], sizes = [16, 16, 4], strides = [1, 1, 1]} : vector<18x18x4xf32> to vector<16x16x4xf32>
    %12 = arith.truncf %11 : vector<16x16x4xf32> to vector<16x16x4xbf16>
    %c0_18 = arith.constant 0 : index
    %c0_19 = arith.constant 0 : index
    %c4 = arith.constant 4 : index
    %13 = vector.load %arg10[%c0_18, %c0_19, %c4] : memref<16x16x40xbf16, #tpu.memory_space<vmem>>, vector<16x16x4xbf16>
    tpu.vector_store %arg10[%c0_18, %c0_19, %c4], %12 {strides = array<i32>} : memref<16x16x40xbf16, #tpu.memory_space<vmem>>, vector<16x16x4xbf16>,
    %14 = vector.extract_strided_slice %7 {offsets = [0, 2, 0], sizes = [16, 16, 4], strides = [1, 1, 1]} : vector<18x18x4xf32> to vector<16x16x4xf32>
    %15 = arith.truncf %14 : vector<16x16x4xf32> to vector<16x16x4xbf16>
    %c0_20 = arith.constant 0 : index
    %c0_21 = arith.constant 0 : index
    %c8 = arith.constant 8 : index
    %16 = vector.load %arg10[%c0_20, %c0_21, %c8] : memref<16x16x40xbf16, #tpu.memory_space<vmem>>, vector<16x16x4xbf16>
    tpu.vector_store %arg10[%c0_20, %c0_21, %c8], %15 {strides = array<i32>} : memref<16x16x40xbf16, #tpu.memory_space<vmem>>, vector<16x16x4xbf16>,
    %17 = vector.extract_strided_slice %7 {offsets = [1, 0, 0], sizes = [16, 16, 4], strides = [1, 1, 1]} : vector<18x18x4xf32> to vector<16x16x4xf32>
    %18 = arith.truncf %17 : vector<16x16x4xf32> to vector<16x16x4xbf16>
    %c0_22 = arith.constant 0 : index
    %c0_23 = arith.constant 0 : index
    %c12 = arith.constant 12 : index
    %19 = vector.load %arg10[%c0_22, %c0_23, %c12] : memref<16x16x40xbf16, #tpu.memory_space<vmem>>, vector<16x16x4xbf16>
    tpu.vector_store %arg10[%c0_22, %c0_23, %c12], %18 {strides = array<i32>} : memref<16x16x40xbf16, #tpu.memory_space<vmem>>, vector<16x16x4xbf16>,
    %20 = vector.extract_strided_slice %7 {offsets = [1, 1, 0], sizes = [16, 16, 4], strides = [1, 1, 1]} : vector<18x18x4xf32> to vector<16x16x4xf32>
    %21 = arith.truncf %20 : vector<16x16x4xf32> to vector<16x16x4xbf16>
    %c0_24 = arith.constant 0 : index
    %c0_25 = arith.constant 0 : index
    %c16 = arith.constant 16 : index
    %22 = vector.load %arg10[%c0_24, %c0_25, %c16] : memref<16x16x40xbf16, #tpu.memory_space<vmem>>, vector<16x16x4xbf16>
    tpu.vector_store %arg10[%c0_24, %c0_25, %c16], %21 {strides = array<i32>} : memref<16x16x40xbf16, #tpu.memory_space<vmem>>, vector<16x16x4xbf16>,
    %23 = vector.extract_strided_slice %7 {offsets = [1, 2, 0], sizes = [16, 16, 4], strides = [1, 1, 1]} : vector<18x18x4xf32> to vector<16x16x4xf32>
    %24 = arith.truncf %23 : vector<16x16x4xf32> to vector<16x16x4xbf16>
    %c0_26 = arith.constant 0 : index
    %c0_27 = arith.constant 0 : index
    %c20 = arith.constant 20 : index
    %25 = vector.load %arg10[%c0_26, %c0_27, %c20] : memref<16x16x40xbf16, #tpu.memory_space<vmem>>, vector<16x16x4xbf16>
    tpu.vector_store %arg10[%c0_26, %c0_27, %c20], %24 {strides = array<i32>} : memref<16x16x40xbf16, #tpu.memory_space<vmem>>, vector<16x16x4xbf16>,
    %26 = vector.extract_strided_slice %7 {offsets = [2, 0, 0], sizes = [16, 16, 4], strides = [1, 1, 1]} : vector<18x18x4xf32> to vector<16x16x4xf32>
    %27 = arith.truncf %26 : vector<16x16x4xf32> to vector<16x16x4xbf16>
    %c0_28 = arith.constant 0 : index
    %c0_29 = arith.constant 0 : index
    %c24 = arith.constant 24 : index
    %28 = vector.load %arg10[%c0_28, %c0_29, %c24] : memref<16x16x40xbf16, #tpu.memory_space<vmem>>, vector<16x16x4xbf16>
    tpu.vector_store %arg10[%c0_28, %c0_29, %c24], %27 {strides = array<i32>} : memref<16x16x40xbf16, #tpu.memory_space<vmem>>, vector<16x16x4xbf16>,
    %29 = vector.extract_strided_slice %7 {offsets = [2, 1, 0], sizes = [16, 16, 4], strides = [1, 1, 1]} : vector<18x18x4xf32> to vector<16x16x4xf32>
    %30 = arith.truncf %29 : vector<16x16x4xf32> to vector<16x16x4xbf16>
    %c0_30 = arith.constant 0 : index
    %c0_31 = arith.constant 0 : index
    %c28 = arith.constant 28 : index
    %31 = vector.load %arg10[%c0_30, %c0_31, %c28] : memref<16x16x40xbf16, #tpu.memory_space<vmem>>, vector<16x16x4xbf16>
    tpu.vector_store %arg10[%c0_30, %c0_31, %c28], %30 {strides = array<i32>} : memref<16x16x40xbf16, #tpu.memory_space<vmem>>, vector<16x16x4xbf16>,
    %32 = vector.extract_strided_slice %7 {offsets = [2, 2, 0], sizes = [16, 16, 4], strides = [1, 1, 1]} : vector<18x18x4xf32> to vector<16x16x4xf32>
    %33 = arith.truncf %32 : vector<16x16x4xf32> to vector<16x16x4xbf16>
    %c0_32 = arith.constant 0 : index
    %c0_33 = arith.constant 0 : index
    %c32 = arith.constant 32 : index
    %34 = vector.load %arg10[%c0_32, %c0_33, %c32] : memref<16x16x40xbf16, #tpu.memory_space<vmem>>, vector<16x16x4xbf16>
    tpu.vector_store %arg10[%c0_32, %c0_33, %c32], %33 {strides = array<i32>} : memref<16x16x40xbf16, #tpu.memory_space<vmem>>, vector<16x16x4xbf16>,
    %c0_34 = arith.constant 0 : index
    %c0_35 = arith.constant 0 : index
    %c0_36 = arith.constant 0 : index
    %35 = vector.load %arg10[%c0_34, %c0_35, %c0_36] : memref<16x16x40xbf16, #tpu.memory_space<vmem>>, vector<16x16x40xbf16>
    %36 = vector.shape_cast %35 : vector<16x16x40xbf16> to vector<256x40xbf16>
    %c0_37 = arith.constant 0 : index
    %c0_38 = arith.constant 0 : index
    %37 = vector.load %arg2[%c0_37, %c0_38] : memref<40x128xbf16, #tpu.memory_space<vmem>>, vector<40x128xbf16>
    %cst_39 = arith.constant dense<0.000000e+00> : vector<256x128xf32>
    %38 = tpu.matmul %36, %37, %cst_39 {dimension_numbers = #tpu.dot_dimension_numbers<[1], [0], [0], [1], [0, 0, 1, 1], [], []>} : vector<256x40xbf16>, vector<40x128xbf16>, vector<256x128xf32> -> vector<256x128xf32>
    %c0_40 = arith.constant 0 : index
    %c0_41 = arith.constant 0 : index
    %39 = vector.load %arg3[%c0_40, %c0_41] : memref<1x128xf32, #tpu.memory_space<vmem>>, vector<1x128xf32>
    %40 = vector.broadcast %39 : vector<1x128xf32> to vector<256x128xf32>
    %41 = arith.mulf %38, %40 : vector<256x128xf32>
    %c0_42 = arith.constant 0 : index
    %c0_43 = arith.constant 0 : index
    %42 = vector.load %arg4[%c0_42, %c0_43] : memref<1x128xf32, #tpu.memory_space<vmem>>, vector<1x128xf32>
    %43 = vector.broadcast %42 : vector<1x128xf32> to vector<256x128xf32>
    %44 = arith.addf %41, %43 : vector<256x128xf32>
    %cst_44 = arith.constant 0.000000e+00 : f32
    %45 = vector.broadcast %cst_44 : f32 to vector<256x128xf32>
    %46 = arith.maximumf %44, %45 : vector<256x128xf32>
    %cst_45 = arith.constant 0.000000e+00 : f32
    %47 = vector.broadcast %cst_45 : f32 to vector<18x18x128xf32>
    %c0_46 = arith.constant 0 : index
    %c0_47 = arith.constant 0 : index
    %c0_48 = arith.constant 0 : index
    %48 = vector.load %arg11[%c0_46, %c0_47, %c0_48] : memref<18x18x128xf32, #tpu.memory_space<vmem>>, vector<18x18x128xf32>
    tpu.vector_store %arg11[%c0_46, %c0_47, %c0_48], %47 {strides = array<i32>} : memref<18x18x128xf32, #tpu.memory_space<vmem>>, vector<18x18x128xf32>,
    %49 = vector.shape_cast %46 : vector<256x128xf32> to vector<16x16x128xf32>
    %c1_49 = arith.constant 1 : index
    %c1_50 = arith.constant 1 : index
    %c0_51 = arith.constant 0 : index
    %50 = vector.load %arg11[%c1_49, %c1_50, %c0_51] : memref<18x18x128xf32, #tpu.memory_space<vmem>>, vector<16x16x128xf32>
    tpu.vector_store %arg11[%c1_49, %c1_50, %c0_51], %49 {strides = array<i32>} : memref<18x18x128xf32, #tpu.memory_space<vmem>>, vector<16x16x128xf32>,
    %c0_52 = arith.constant 0 : index
    %c0_53 = arith.constant 0 : index
    %c0_54 = arith.constant 0 : index
    %51 = vector.load %arg11[%c0_52, %c0_53, %c0_54] : memref<18x18x128xf32, #tpu.memory_space<vmem>>, vector<16x16x128xf32>
    %52 = arith.truncf %51 : vector<16x16x128xf32> to vector<16x16x128xbf16>
    %c0_55 = arith.constant 0 : index
    %c0_56 = arith.constant 0 : index
    %c0_57 = arith.constant 0 : index
    %53 = vector.load %arg12[%c0_55, %c0_56, %c0_57] : memref<16x16x1152xbf16, #tpu.memory_space<vmem>>, vector<16x16x128xbf16>
    tpu.vector_store %arg12[%c0_55, %c0_56, %c0_57], %52 {strides = array<i32>} : memref<16x16x1152xbf16, #tpu.memory_space<vmem>>, vector<16x16x128xbf16>,
    %c0_58 = arith.constant 0 : index
    %c1_59 = arith.constant 1 : index
    %c0_60 = arith.constant 0 : index
    %54 = vector.load %arg11[%c0_58, %c1_59, %c0_60] : memref<18x18x128xf32, #tpu.memory_space<vmem>>, vector<16x16x128xf32>
    %55 = arith.truncf %54 : vector<16x16x128xf32> to vector<16x16x128xbf16>
    %c0_61 = arith.constant 0 : index
    %c0_62 = arith.constant 0 : index
    %c128 = arith.constant 128 : index
    %56 = vector.load %arg12[%c0_61, %c0_62, %c128] : memref<16x16x1152xbf16, #tpu.memory_space<vmem>>, vector<16x16x128xbf16>
    tpu.vector_store %arg12[%c0_61, %c0_62, %c128], %55 {strides = array<i32>} : memref<16x16x1152xbf16, #tpu.memory_space<vmem>>, vector<16x16x128xbf16>,
    %c0_63 = arith.constant 0 : index
    %c2 = arith.constant 2 : index
    %c0_64 = arith.constant 0 : index
    %57 = vector.load %arg11[%c0_63, %c2, %c0_64] : memref<18x18x128xf32, #tpu.memory_space<vmem>>, vector<16x16x128xf32>
    %58 = arith.truncf %57 : vector<16x16x128xf32> to vector<16x16x128xbf16>
    %c0_65 = arith.constant 0 : index
    %c0_66 = arith.constant 0 : index
    %c256 = arith.constant 256 : index
    %59 = vector.load %arg12[%c0_65, %c0_66, %c256] : memref<16x16x1152xbf16, #tpu.memory_space<vmem>>, vector<16x16x128xbf16>
    tpu.vector_store %arg12[%c0_65, %c0_66, %c256], %58 {strides = array<i32>} : memref<16x16x1152xbf16, #tpu.memory_space<vmem>>, vector<16x16x128xbf16>,
    %c1_67 = arith.constant 1 : index
    %c0_68 = arith.constant 0 : index
    %c0_69 = arith.constant 0 : index
    %60 = vector.load %arg11[%c1_67, %c0_68, %c0_69] : memref<18x18x128xf32, #tpu.memory_space<vmem>>, vector<16x16x128xf32>
    %61 = arith.truncf %60 : vector<16x16x128xf32> to vector<16x16x128xbf16>
    %c0_70 = arith.constant 0 : index
    %c0_71 = arith.constant 0 : index
    %c384 = arith.constant 384 : index
    %62 = vector.load %arg12[%c0_70, %c0_71, %c384] : memref<16x16x1152xbf16, #tpu.memory_space<vmem>>, vector<16x16x128xbf16>
    tpu.vector_store %arg12[%c0_70, %c0_71, %c384], %61 {strides = array<i32>} : memref<16x16x1152xbf16, #tpu.memory_space<vmem>>, vector<16x16x128xbf16>,
    %c1_72 = arith.constant 1 : index
    %c1_73 = arith.constant 1 : index
    %c0_74 = arith.constant 0 : index
    %63 = vector.load %arg11[%c1_72, %c1_73, %c0_74] : memref<18x18x128xf32, #tpu.memory_space<vmem>>, vector<16x16x128xf32>
    %64 = arith.truncf %63 : vector<16x16x128xf32> to vector<16x16x128xbf16>
    %c0_75 = arith.constant 0 : index
    %c0_76 = arith.constant 0 : index
    %c512 = arith.constant 512 : index
    %65 = vector.load %arg12[%c0_75, %c0_76, %c512] : memref<16x16x1152xbf16, #tpu.memory_space<vmem>>, vector<16x16x128xbf16>
    tpu.vector_store %arg12[%c0_75, %c0_76, %c512], %64 {strides = array<i32>} : memref<16x16x1152xbf16, #tpu.memory_space<vmem>>, vector<16x16x128xbf16>,
    %c1_77 = arith.constant 1 : index
    %c2_78 = arith.constant 2 : index
    %c0_79 = arith.constant 0 : index
    %66 = vector.load %arg11[%c1_77, %c2_78, %c0_79] : memref<18x18x128xf32, #tpu.memory_space<vmem>>, vector<16x16x128xf32>
    %67 = arith.truncf %66 : vector<16x16x128xf32> to vector<16x16x128xbf16>
    %c0_80 = arith.constant 0 : index
    %c0_81 = arith.constant 0 : index
    %c640 = arith.constant 640 : index
    %68 = vector.load %arg12[%c0_80, %c0_81, %c640] : memref<16x16x1152xbf16, #tpu.memory_space<vmem>>, vector<16x16x128xbf16>
    tpu.vector_store %arg12[%c0_80, %c0_81, %c640], %67 {strides = array<i32>} : memref<16x16x1152xbf16, #tpu.memory_space<vmem>>, vector<16x16x128xbf16>,
    %c2_82 = arith.constant 2 : index
    %c0_83 = arith.constant 0 : index
    %c0_84 = arith.constant 0 : index
    %69 = vector.load %arg11[%c2_82, %c0_83, %c0_84] : memref<18x18x128xf32, #tpu.memory_space<vmem>>, vector<16x16x128xf32>
    %70 = arith.truncf %69 : vector<16x16x128xf32> to vector<16x16x128xbf16>
    %c0_85 = arith.constant 0 : index
    %c0_86 = arith.constant 0 : index
    %c768 = arith.constant 768 : index
    %71 = vector.load %arg12[%c0_85, %c0_86, %c768] : memref<16x16x1152xbf16, #tpu.memory_space<vmem>>, vector<16x16x128xbf16>
    tpu.vector_store %arg12[%c0_85, %c0_86, %c768], %70 {strides = array<i32>} : memref<16x16x1152xbf16, #tpu.memory_space<vmem>>, vector<16x16x128xbf16>,
    %c2_87 = arith.constant 2 : index
    %c1_88 = arith.constant 1 : index
    %c0_89 = arith.constant 0 : index
    %72 = vector.load %arg11[%c2_87, %c1_88, %c0_89] : memref<18x18x128xf32, #tpu.memory_space<vmem>>, vector<16x16x128xf32>
    %73 = arith.truncf %72 : vector<16x16x128xf32> to vector<16x16x128xbf16>
    %c0_90 = arith.constant 0 : index
    %c0_91 = arith.constant 0 : index
    %c896 = arith.constant 896 : index
    %74 = vector.load %arg12[%c0_90, %c0_91, %c896] : memref<16x16x1152xbf16, #tpu.memory_space<vmem>>, vector<16x16x128xbf16>
    tpu.vector_store %arg12[%c0_90, %c0_91, %c896], %73 {strides = array<i32>} : memref<16x16x1152xbf16, #tpu.memory_space<vmem>>, vector<16x16x128xbf16>,
    %c2_92 = arith.constant 2 : index
    %c2_93 = arith.constant 2 : index
    %c0_94 = arith.constant 0 : index
    %75 = vector.load %arg11[%c2_92, %c2_93, %c0_94] : memref<18x18x128xf32, #tpu.memory_space<vmem>>, vector<16x16x128xf32>
    %76 = arith.truncf %75 : vector<16x16x128xf32> to vector<16x16x128xbf16>
    %c0_95 = arith.constant 0 : index
    %c0_96 = arith.constant 0 : index
    %c1024 = arith.constant 1024 : index
    %77 = vector.load %arg12[%c0_95, %c0_96, %c1024] : memref<16x16x1152xbf16, #tpu.memory_space<vmem>>, vector<16x16x128xbf16>
    tpu.vector_store %arg12[%c0_95, %c0_96, %c1024], %76 {strides = array<i32>} : memref<16x16x1152xbf16, #tpu.memory_space<vmem>>, vector<16x16x128xbf16>,
    %c0_97 = arith.constant 0 : index
    %c0_98 = arith.constant 0 : index
    %c0_99 = arith.constant 0 : index
    %78 = vector.load %arg12[%c0_97, %c0_98, %c0_99] : memref<16x16x1152xbf16, #tpu.memory_space<vmem>>, vector<16x16x1152xbf16>
    %79 = vector.shape_cast %78 : vector<16x16x1152xbf16> to vector<256x1152xbf16>
    %c0_100 = arith.constant 0 : index
    %c0_101 = arith.constant 0 : index
    %80 = vector.load %arg5[%c0_100, %c0_101] : memref<1152x128xbf16, #tpu.memory_space<vmem>>, vector<1152x128xbf16>
    %cst_102 = arith.constant dense<0.000000e+00> : vector<256x128xf32>
    %81 = tpu.matmul %79, %80, %cst_102 {dimension_numbers = #tpu.dot_dimension_numbers<[1], [0], [0], [1], [0, 0, 1, 1], [], []>} : vector<256x1152xbf16>, vector<1152x128xbf16>, vector<256x128xf32> -> vector<256x128xf32>
    %c0_103 = arith.constant 0 : index
    %c0_104 = arith.constant 0 : index
    %82 = vector.load %arg6[%c0_103, %c0_104] : memref<1x128xf32, #tpu.memory_space<vmem>>, vector<1x128xf32>
    %83 = vector.broadcast %82 : vector<1x128xf32> to vector<256x128xf32>
    %84 = arith.mulf %81, %83 : vector<256x128xf32>
    %c0_105 = arith.constant 0 : index
    %c0_106 = arith.constant 0 : index
    %85 = vector.load %arg7[%c0_105, %c0_106] : memref<1x128xf32, #tpu.memory_space<vmem>>, vector<1x128xf32>
    %86 = vector.broadcast %85 : vector<1x128xf32> to vector<256x128xf32>
    %87 = arith.addf %84, %86 : vector<256x128xf32>
    %88 = vector.shape_cast %87 : vector<256x128xf32> to vector<1x16x16x128xf32>
    %c0_107 = arith.constant 0 : index
    %c0_108 = arith.constant 0 : index
    %c0_109 = arith.constant 0 : index
    %c0_110 = arith.constant 0 : index
    %89 = vector.load %arg8[%c0_107, %c0_108, %c0_109, %c0_110] : memref<1x16x16x128xf32, #tpu.memory_space<vmem>>, vector<1x16x16x128xf32>
    tpu.vector_store %arg8[%c0_107, %c0_108, %c0_109, %c0_110], %88 {strides = array<i32>} : memref<1x16x16x128xf32, #tpu.memory_space<vmem>>, vector<1x16x16x128xf32>,
    return
  }
  func.func @transform_0(%arg0: i32) -> (i32, i32, i32, i32) {
    %c0_i32 = arith.constant 0 : i32
    %c0_i32_0 = arith.constant 0 : i32
    %c0_i32_1 = arith.constant 0 : i32
    %c0_i32_2 = arith.constant 0 : i32
    return %arg0, %c0_i32, %c0_i32_0, %c0_i32_1 : i32, i32, i32, i32
  }
  func.func @transform_1(%arg0: i32) -> (i32, i32) {
    %c0_i32 = arith.constant 0 : i32
    %c0_i32_0 = arith.constant 0 : i32
    %c0_i32_1 = arith.constant 0 : i32
    return %c0_i32, %c0_i32_0 : i32, i32
  }
  func.func @transform_2(%arg0: i32) -> (i32, i32) {
    %c0_i32 = arith.constant 0 : i32
    %c0_i32_0 = arith.constant 0 : i32
    %c0_i32_1 = arith.constant 0 : i32
    return %c0_i32, %c0_i32_0 : i32, i32
  }
  func.func @transform_3(%arg0: i32) -> (i32, i32) {
    %c0_i32 = arith.constant 0 : i32
    %c0_i32_0 = arith.constant 0 : i32
    %c0_i32_1 = arith.constant 0 : i32
    return %c0_i32, %c0_i32_0 : i32, i32
  }
  func.func @transform_4(%arg0: i32) -> (i32, i32) {
    %c0_i32 = arith.constant 0 : i32
    %c0_i32_0 = arith.constant 0 : i32
    %c0_i32_1 = arith.constant 0 : i32
    return %c0_i32, %c0_i32_0 : i32, i32
  }
  func.func @transform_5(%arg0: i32) -> (i32, i32) {
    %c0_i32 = arith.constant 0 : i32
    %c0_i32_0 = arith.constant 0 : i32
    %c0_i32_1 = arith.constant 0 : i32
    return %c0_i32, %c0_i32_0 : i32, i32
  }
  func.func @transform_6(%arg0: i32) -> (i32, i32) {
    %c0_i32 = arith.constant 0 : i32
    %c0_i32_0 = arith.constant 0 : i32
    %c0_i32_1 = arith.constant 0 : i32
    return %c0_i32, %c0_i32_0 : i32, i32
  }
  func.func @transform_7(%arg0: i32) -> (i32, i32, i32, i32) {
    %c0_i32 = arith.constant 0 : i32
    %c0_i32_0 = arith.constant 0 : i32
    %c0_i32_1 = arith.constant 0 : i32
    %c0_i32_2 = arith.constant 0 : i32
    return %arg0, %c0_i32, %c0_i32_0, %c0_i32_1 : i32, i32, i32, i32
  }
}

</mosaic_0001>

<bundles_post_ra>
// kernel: tpu_custom_call.1
= control target key start
LH: loop header
LB: loop body
LE: loop exit
PB: predicated region body
PF: predicated region fallthrough
CT: control target
= control target key end

     0   :  { %12 = vsyncpa [#allocation7], 0  ;;  %s6651_s0 = inlined_call_operand.vmem [shape: f32[2,16,16,4], index: 0, kind: input, shape index: {}]   ;;  %s6652_s1 = inlined_call_operand.vmem [shape: bf16[40,128], index: 1, kind: input, shape index: {}]   ;;  %s6653_s2 = inlined_call_operand.vmem [shape: f32[1,128], index: 2, kind: input, shape index: {}]   ;;  %s6654_s3 = inlined_call_operand.vmem [shape: f32[1,128], index: 3, kind: input, shape index: {}]   ;;  %s6655_s4 = inlined_call_operand.vmem [shape: bf16[1152,128], index: 4, kind: input, shape index: {}]   ;;  %s6656_s5 = inlined_call_operand.vmem [shape: f32[1,128], index: 5, kind: input, shape index: {}]   ;;  %s6657_s6 = inlined_call_operand.vmem [shape: f32[1,128], index: 6, kind: input, shape index: {}]   ;;  %s6658_s7 = inlined_call_operand.hbm [shape: f32[2,16,16,128], index: 7, kind: output, shape index: {}]  }
   0x1   :  { %14 = vsyncpa [#allocation7 + $0x1], 0  ;;  %s5030_s24 = smov 0   ;;  %s5032_s25 = smov 0  }
   0x2   :  { %s5034_s26 = smov 0   ;;  %s5036_s27 = smov 0  }
   0x3 LB: > { %s5051_s28 = sadd.s32 4294967295, %s4976_s27   ;;  %s4084_s29 = sadd.s32 4294967294, %s4976_s27   ;;  %s4976_s27 = sphi %s5036_s27, %s6664_s27   ;;  %s4972_s26 = sphi %s5034_s26, %s6663_s26   ;;  %s4968_s25 = sphi %s5032_s25, %s6662_s25   ;;  %s4964_s24 = sphi %s5030_s24, %s6661_s24  }
   0x4   : > { %s5055_s30 = sadd.s32 1, %s4976_s27   ;;  %s179_s8 = sadd.s32 1, %s4972_s26 }
   0x5   : > { %s176_s9 = ssub.s32 %s4976_s27, %s5055_s30  ;;  %p189_p0 = scmp.ne.s32.totalorder %s4972_s26, %s4968_s25 }
   0x6   : > { %p177_p1 = scmp.eq.s32.totalorder %s176_s9, 0  ;;  %p190_p2 = scmp.eq.s32.totalorder %s5051_s28, 1 }
   0x7   : > { %p195_p3 = scmp.ne.s32.totalorder %s4968_s25, %s4964_s24  ;;  %p196_p4 = scmp.eq.s32.totalorder %s4084_s29, 1 }
   0x8   : > { %s5066_s10 = scalar_select %p177_p1, %s4972_s26, %s179_s8  }
   0x9   : > { %p5068_p5 = por %p190_p2, %p189_p0  ;;  %p5072_p6 = por %p196_p4, %p195_p3 }
   0xa   : > { %p4087_p7 = scmp.ge.s32.totalorder %s4976_s27, 1  ;;  %p240_p8 = scmp.lt.s32.totalorder %s4976_s27, 3 }
   0xc   : > { %p241_p9 = pnand %p4087_p7, %p240_p8 }
   0xd   : > { %vm278_vm0 = vcmask (!%p241_p9), 31744   ;;  %vm281_vm1 = vcmask (!%p241_p9), 25600   ;;  %p272_p10 = scmp.lt.s32.totalorder (!%p241_p9), %s5051_s28, 1  ;;  %v4978_v0 = vmov (!%p241_p9), 0.0   ;;  %vm399_vm2 = vcmask (!%p241_p9), 326656   ;;  %s4980_s18 = smov (!%p241_p9), 8  }
   0xe   : > { %244 = sbr.rel (%p241_p9) target bundleno = 1105 (0x451), region = 48  ;;  %279 = vst.msk [vmem:[#allocation2] sm:$0xff] (!%p241_p9), %vm278_vm0, %v4978_v0  ;;  %280 = vst.msk [vmem:[#allocation2 + $0x8] sm:$0xff] (!%p241_p9), %vm278_vm0, %v4978_v0  ;;  %vm808_vm3 = vcmask (!%p241_p9), 1046528   ;;  %v4979_v18 = vmov (!%p241_p9), 0   ;;  %s4981_s19 = smov (!%p241_p9), 12  }
   0xf   : > { %282 = vst.msk [vmem:[#allocation2 + $0x10] sm:$0x3] (!%p241_p9), %vm281_vm1, %v4978_v0  ;;  %285 = vst.msk [vmem:[#allocation2 + $0x28] sm:$0x3] (!%p241_p9), %vm281_vm1, %v4978_v0  ;;  %vm518_vm4 = vsmask.f32 (!%p241_p9), 7424 }
  0x10   : > { %283 = vst.msk [vmem:[#allocation2 + $0x18] sm:$0xff] (!%p241_p9), %vm278_vm0, %v4978_v0  ;;  %284 = vst.msk [vmem:[#allocation2 + $0x20] sm:$0xff] (!%p241_p9), %vm278_vm0, %v4978_v0  ;;  %s4982_s20 = smov (!%p241_p9), 24   ;;  %s4983_s21 = smov (!%p241_p9), 4   ;;  %vm1434_vm5 = vcmask (!%p241_p9), 1043456   ;;  %vm759_vm6 = vcmask (!%p241_p9), 64544  }
  0x11   : > { %286 = vst.msk [vmem:[#allocation2 + $0x30] sm:$0xff] (!%p241_p9), %vm278_vm0, %v4978_v0  ;;  %287 = vst.msk [vmem:[#allocation2 + $0x38] sm:$0xff] (!%p241_p9), %vm278_vm0, %v4978_v0  ;;  %s4984_s29 = smov (!%p241_p9), 20   ;;  %s4987_s15 = smov (!%p241_p9), 32   ;;  %vm905_vm7 = vcmask (!%p241_p9), 97344   ;;  %vm972_vm8 = vcmask (!%p241_p9), 130144  }
  0x12   : > { %288 = vst.msk [vmem:[#allocation2 + $0x40] sm:$0x3] (!%p241_p9), %vm281_vm1, %v4978_v0  ;;  %291 = vst.msk [vmem:[#allocation2 + $0x58] sm:$0x3] (!%p241_p9), %vm281_vm1, %v4978_v0  ;;  %vm1050_vm9 = vcmask (!%p241_p9), 162944   ;;  %vm1119_vm10 = vcmask (!%p241_p9), 195744  }
  0x13   : > { %289 = vst.msk [vmem:[#allocation2 + $0x48] sm:$0xff] (!%p241_p9), %vm278_vm0, %v4978_v0  ;;  %290 = vst.msk [vmem:[#allocation2 + $0x50] sm:$0xff] (!%p241_p9), %vm278_vm0, %v4978_v0  ;;  %vm1186_vm11 = vcmask (!%p241_p9), 228544   ;;  %vm1264_vm12 = vcmask (!%p241_p9), 261344   ;;  %vm1333_vm13 = vcmask (!%p241_p9), 294144   ;;  %s269_s16 = sand.u32 (!%p241_p9), 1, %s4968_s25  }
  0x14   : > { %292 = vst.msk [vmem:[#allocation2 + $0x60] sm:$0xff] (!%p241_p9), %vm278_vm0, %v4978_v0  ;;  %293 = vst.msk [vmem:[#allocation2 + $0x68] sm:$0xff] (!%p241_p9), %vm278_vm0, %v4978_v0 }
  0x15   : > { %294 = vst.msk [vmem:[#allocation2 + $0x70] sm:$0x3] %vm281_vm1, %v4978_v0  ;;  %297 = vst.msk [vmem:[#allocation2 + $0x88] sm:$0x3] %vm281_vm1, %v4978_v0  ;;  %s273_s13 = scalar_select %p272_p10, %s5051_s28, 1  ;;  %v416_v7 = vld [vmem:[#allocation2] sm:$0xff] }
  0x16   : > { %295 = vst.msk [vmem:[#allocation2 + $0x78] sm:$0xff] %vm278_vm0, %v4978_v0  ;;  %296 = vst.msk [vmem:[#allocation2 + $0x80] sm:$0xff] %vm278_vm0, %v4978_v0  ;;  %v417_v8 = vld [vmem:[#allocation2 + $0x8] sm:$0xff]  ;;  %v418_v9 = vld [vmem:[#allocation2 + $0x10] sm:$0x3] }
  0x17   : > { %298 = vst.msk [vmem:[#allocation2 + $0x90] sm:$0xff] %vm278_vm0, %v4978_v0  ;;  %299 = vst.msk [vmem:[#allocation2 + $0x98] sm:$0xff] %vm278_vm0, %v4978_v0  ;;  %s4191_s14 = sshll.u32 %s273_s13, 8  ;;  %v5261_v10 = vpack.c.bf16 %v417_v8, %v416_v7  ;;  %v5263_v11 = vpack.c.bf16 %v418_v9, %v418_v9  ;;  %s4985_s13 = smov 16  }
  0x18   : > { %300 = vst.msk [vmem:[#allocation2 + $0xa0] sm:$0x3] %vm281_vm1, %v4978_v0  ;;  %303 = vst.msk [vmem:[#allocation2 + $0xb8] sm:$0x3] %vm281_vm1, %v4978_v0  ;;  %s5247_s17 = scalar_lea.vmem %s6651_s0, %s4191_s14  ;;  %s4986_s14 = smov 28  }
  0x19   : > { %301 = vst.msk [vmem:[#allocation2 + $0xa8] sm:$0xff] %vm278_vm0, %v4978_v0  ;;  %302 = vst.msk [vmem:[#allocation2 + $0xb0] sm:$0xff] %vm278_vm0, %v4978_v0  ;;  %v334_v1 = vld [vmem:[%s5247_s17] sm:$0xff]  ;;  %v335_v2 = vld [vmem:[%s5247_s17 + $0x8] sm:$0xff]  ;;  %v809_v19 = vrot.slane %v5261_v10, 1  ;;  %v810_v20 = vrot.slane %v5263_v11, 1 }
  0x1a   : > { %304 = vst.msk [vmem:[#allocation2 + $0xc0] sm:$0xff] %vm278_vm0, %v4978_v0  ;;  %305 = vst.msk [vmem:[#allocation2 + $0xc8] sm:$0xff] %vm278_vm0, %v4978_v0  ;;  %v336_v3 = vld [vmem:[%s5247_s17 + $0x10] sm:$0xff]  ;;  %v337_v4 = vld [vmem:[%s5247_s17 + $0x18] sm:$0xff]  ;;  %v522_v21 = vshll.u32 %v5261_v10, 16  ;;  %v520_v24 = vshrl.u32 %v5261_v10, 16 }
  0x1b   : > { %306 = vst.msk [vmem:[#allocation2 + $0xd0] sm:$0x3] %vm281_vm1, %v4978_v0  ;;  %309 = vst.msk [vmem:[#allocation2 + $0xe8] sm:$0x3] %vm281_vm1, %v4978_v0  ;;  %v338_v5 = vld [vmem:[%s5247_s17 + $0x20] sm:$0xff]  ;;  %v339_v6 = vld [vmem:[%s5247_s17 + $0x28] sm:$0xff]  ;;  %v811_v29 = vsel %vm808_vm3, %v809_v19, %v810_v20 }
  0x1c   : > { %307 = vst.msk [vmem:[#allocation2 + $0xd8] sm:$0xff] %vm278_vm0, %v4978_v0  ;;  %308 = vst.msk [vmem:[#allocation2 + $0xe0] sm:$0xff] %vm278_vm0, %v4978_v0  ;;  %v340_v12 = vld [vmem:[%s5247_s17 + $0x30] sm:$0xff]  ;;  %v341_v13 = vld [vmem:[%s5247_s17 + $0x38] sm:$0xff]  ;;  %v527_v25 = vshll.u32 %v5263_v11, 16  ;;  %v524_v30 = vrot.slane %v522_v21, 1  ;;  %857 = vrot.lane.b32.xlu1 %v811_v29, %s4980_s18 }
  0x1d   : > { %310 = vst.msk [vmem:[#allocation2 + $0xf0] sm:$0xff] %vm278_vm0, %v4978_v0  ;;  %311 = vst.msk [vmem:[#allocation2 + $0xf8] sm:$0xff] %vm278_vm0, %v4978_v0  ;;  %v342_v14 = vld [vmem:[%s5247_s17 + $0x40] sm:$0xff]  ;;  %v343_v15 = vld [vmem:[%s5247_s17 + $0x48] sm:$0xff] }
  0x1e   : > { %312 = vst.msk [vmem:[#allocation2 + $0x100] sm:$0x3] %vm281_vm1, %v4978_v0  ;;  %315 = vst.msk [vmem:[#allocation2 + $0x118] sm:$0x3] %vm281_vm1, %v4978_v0  ;;  %v344_v16 = vld [vmem:[%s5247_s17 + $0x50] sm:$0xff]  ;;  %v345_v17 = vld [vmem:[%s5247_s17 + $0x58] sm:$0xff]  ;;  %v525_v43 = vor.u32 %v524_v30, %v520_v24 }
  0x1f   : > { %313 = vst.msk [vmem:[#allocation2 + $0x108] sm:$0xff] %vm278_vm0, %v4978_v0  ;;  %314 = vst.msk [vmem:[#allocation2 + $0x110] sm:$0xff] %vm278_vm0, %v4978_v0  ;;  %v346_v22 = vld [vmem:[%s5247_s17 + $0x60] sm:$0xff]  ;;  %v347_v23 = vld [vmem:[%s5247_s17 + $0x68] sm:$0xff]  ;;  %v529_v44 = vrot.slane %v527_v25, 1 }
  0x20   : > { %316 = vst.msk [vmem:[#allocation2 + $0x120] sm:$0xff] %vm278_vm0, %v4978_v0  ;;  %317 = vst.msk [vmem:[#allocation2 + $0x128] sm:$0xff] %vm278_vm0, %v4978_v0  ;;  %v348_v26 = vld [vmem:[%s5247_s17 + $0x70] sm:$0xff]  ;;  %v349_v27 = vld [vmem:[%s5247_s17 + $0x78] sm:$0xff] }
  0x21   : > { %318 = vst.msk [vmem:[#allocation2 + $0x130] sm:$0x3] %vm281_vm1, %v4978_v0  ;;  %321 = vst.msk [vmem:[#allocation2 + $0x148] sm:$0x3] %vm281_vm1, %v4978_v0  ;;  %v350_v28 = vld [vmem:[%s5247_s17 + $0x80] sm:$0xff]  ;;  %v351_v31 = vld [vmem:[%s5247_s17 + $0x88] sm:$0xff]  ;;  %v530_v54 = vsel %vm518_vm4, %v525_v43, %v529_v44 }
  0x22   : > { %319 = vst.msk [vmem:[#allocation2 + $0x138] sm:$0xff] %vm278_vm0, %v4978_v0  ;;  %320 = vst.msk [vmem:[#allocation2 + $0x140] sm:$0xff] %vm278_vm0, %v4978_v0  ;;  %v352_v32 = vld [vmem:[%s5247_s17 + $0x90] sm:$0xff]  ;;  %v353_v33 = vld [vmem:[%s5247_s17 + $0x98] sm:$0xff] }
  0x23   : > { %322 = vst.msk [vmem:[#allocation2 + $0x150] sm:$0xff] %vm278_vm0, %v4978_v0  ;;  %323 = vst.msk [vmem:[#allocation2 + $0x158] sm:$0xff] %vm278_vm0, %v4978_v0  ;;  %v354_v11 = vld [vmem:[%s5247_s17 + $0xa0] sm:$0xff]  ;;  %v4838_v30 = vld [vmem:[%s6652_s1 + $0x8] sm:$0xff]  }
  0x24   : > { %324 = vst.msk [vmem:[#allocation2 + $0x160] sm:$0x3] %vm281_vm1, %v4978_v0  ;;  %327 = vst.msk [vmem:[#allocation2 + $0x178] sm:$0x3] %vm281_vm1, %v4978_v0  ;;  %v4837_v21 = vld [vmem:[%s6652_s1] sm:$0xff]  }
  0x25   : > { %325 = vst.msk [vmem:[#allocation2 + $0x168] sm:$0xff] %vm278_vm0, %v4978_v0  ;;  %326 = vst.msk [vmem:[#allocation2 + $0x170] sm:$0xff] %vm278_vm0, %v4978_v0  ;;  %4684 = vmatprep.subr.bf16.mxu0 %v4837_v21 }
  0x26   : > { %328 = vst.msk [vmem:[#allocation2 + $0x180] sm:$0xff] %vm278_vm0, %v4978_v0  ;;  %329 = vst.msk [vmem:[#allocation2 + $0x188] sm:$0xff] %vm278_vm0, %v4978_v0  ;;  %4685 = vmatpush3.bf16.msra.mxu0 %v4837_v21 }
  0x27   : > { %330 = vst.msk [vmem:[#allocation2 + $0x190] sm:$0x3] %vm281_vm1, %v4978_v0  ;;  %333 = vst.msk [vmem:[#allocation2 + $0x1a8] sm:$0x3] %vm281_vm1, %v4978_v0  ;;  %4686 = vmatprep.subr.bf16.mxu0 %v4838_v30 }
  0x28   : > { %331 = vst.msk [vmem:[#allocation2 + $0x198] sm:$0xff] %vm278_vm0, %v4978_v0  ;;  %332 = vst.msk [vmem:[#allocation2 + $0x1a0] sm:$0xff] %vm278_vm0, %v4978_v0 }
  0x29   : > { %1709 = vst [vmem:[#allocation4] sm:$0xff] %v4978_v0  ;;  %1710 = vst [vmem:[#allocation4 + $0x8] sm:$0xff] %v4978_v0 }
  0x2a   : > { %1711 = vst [vmem:[#allocation4 + $0x10] sm:$0x3] %v4978_v0  ;;  %1712 = vst [vmem:[#allocation4 + $0x18] sm:$0xff] %v4978_v0  ;;  %4687 = vmatpush3.bf16.msra.mxu0 %v4838_v30 }
  0x2b   : > { %1713 = vst [vmem:[#allocation4 + $0x20] sm:$0xff] %v4978_v0  ;;  %1714 = vst [vmem:[#allocation4 + $0x28] sm:$0x3] %v4978_v0 }
  0x2c   : > { %1715 = vst [vmem:[#allocation4 + $0x30] sm:$0xff] %v4978_v0  ;;  %1716 = vst [vmem:[#allocation4 + $0x38] sm:$0xff] %v4978_v0 }
  0x2d   : > { %1717 = vst [vmem:[#allocation4 + $0x40] sm:$0x3] %v4978_v0  ;;  %1718 = vst [vmem:[#allocation4 + $0x48] sm:$0xff] %v4978_v0 }
  0x2e   : > { %1719 = vst [vmem:[#allocation4 + $0x50] sm:$0xff] %v4978_v0  ;;  %1720 = vst [vmem:[#allocation4 + $0x58] sm:$0x3] %v4978_v0 }
  0x2f   : > { %1721 = vst [vmem:[#allocation4 + $0x60] sm:$0xff] %v4978_v0  ;;  %1722 = vst [vmem:[#allocation4 + $0x68] sm:$0xff] %v4978_v0 }
  0x30   : > { %1723 = vst [vmem:[#allocation4 + $0x70] sm:$0x3] %v4978_v0  ;;  %1724 = vst [vmem:[#allocation4 + $0x78] sm:$0xff] %v4978_v0 }
  0x31   : > { %1725 = vst [vmem:[#allocation4 + $0x80] sm:$0xff] %v4978_v0  ;;  %1726 = vst [vmem:[#allocation4 + $0x88] sm:$0x3] %v4978_v0 }
  0x32   : > { %1727 = vst [vmem:[#allocation4 + $0x90] sm:$0xff] %v4978_v0  ;;  %1728 = vst [vmem:[#allocation4 + $0x98] sm:$0xff] %v4978_v0 }
  0x33   : > { %1729 = vst [vmem:[#allocation4 + $0xa0] sm:$0x3] %v4978_v0  ;;  %1730 = vst [vmem:[#allocation4 + $0xa8] sm:$0xff] %v4978_v0 }
  0x34   : > { %1731 = vst [vmem:[#allocation4 + $0xb0] sm:$0xff] %v4978_v0  ;;  %1732 = vst [vmem:[#allocation4 + $0xb8] sm:$0x3] %v4978_v0 }
  0x35   : > { %1733 = vst [vmem:[#allocation4 + $0xc0] sm:$0xff] %v4978_v0  ;;  %1734 = vst [vmem:[#allocation4 + $0xc8] sm:$0xff] %v4978_v0 }
  0x36   : > { %1735 = vst [vmem:[#allocation4 + $0xd0] sm:$0x3] %v4978_v0  ;;  %1736 = vst [vmem:[#allocation4 + $0xd8] sm:$0xff] %v4978_v0 }
  0x37   : > { %1737 = vst [vmem:[#allocation4 + $0xe0] sm:$0xff] %v4978_v0  ;;  %1738 = vst [vmem:[#allocation4 + $0xe8] sm:$0x3] %v4978_v0 }
  0x38   : > { %1739 = vst [vmem:[#allocation4 + $0xf0] sm:$0xff] %v4978_v0  ;;  %1740 = vst [vmem:[#allocation4 + $0xf8] sm:$0xff] %v4978_v0 }
  0x39   : > { %1741 = vst [vmem:[#allocation4 + $0x100] sm:$0x3] %v4978_v0  ;;  %1742 = vst [vmem:[#allocation4 + $0x108] sm:$0xff] %v4978_v0 }
  0x3a   : > { %1743 = vst [vmem:[#allocation4 + $0x110] sm:$0xff] %v4978_v0  ;;  %1744 = vst [vmem:[#allocation4 + $0x118] sm:$0x3] %v4978_v0 }
  0x3b   : > { %1745 = vst [vmem:[#allocation4 + $0x120] sm:$0xff] %v4978_v0  ;;  %1746 = vst [vmem:[#allocation4 + $0x128] sm:$0xff] %v4978_v0 }
  0x3c   : > { %1747 = vst [vmem:[#allocation4 + $0x130] sm:$0x3] %v4978_v0  ;;  %1748 = vst [vmem:[#allocation4 + $0x138] sm:$0xff] %v4978_v0 }
  0x3d   : > { %1749 = vst [vmem:[#allocation4 + $0x140] sm:$0xff] %v4978_v0  ;;  %1750 = vst [vmem:[#allocation4 + $0x148] sm:$0x3] %v4978_v0 }
  0x3e   : > { %1751 = vst [vmem:[#allocation4 + $0x150] sm:$0xff] %v4978_v0  ;;  %1752 = vst [vmem:[#allocation4 + $0x158] sm:$0xff] %v4978_v0 }
  0x3f   : > { %1753 = vst [vmem:[#allocation4 + $0x160] sm:$0x3] %v4978_v0  ;;  %1754 = vst [vmem:[#allocation4 + $0x168] sm:$0xff] %v4978_v0 }
  0x40   : > { %1755 = vst [vmem:[#allocation4 + $0x170] sm:$0xff] %v4978_v0  ;;  %1756 = vst [vmem:[#allocation4 + $0x178] sm:$0x3] %v4978_v0 }
  0x41   : > { %1757 = vst [vmem:[#allocation4 + $0x180] sm:$0xff] %v4978_v0  ;;  %1758 = vst [vmem:[#allocation4 + $0x188] sm:$0xff] %v4978_v0 }
  0x42   : > { %1759 = vst [vmem:[#allocation4 + $0x190] sm:$0x3] %v4978_v0  ;;  %1760 = vst [vmem:[#allocation4 + $0x198] sm:$0xff] %v4978_v0 }
  0x43   : > { %1761 = vst [vmem:[#allocation4 + $0x1a0] sm:$0xff] %v4978_v0  ;;  %1762 = vst [vmem:[#allocation4 + $0x1a8] sm:$0x3] %v4978_v0 }
  0x44   : > { %367 = vst.msk [vmem:[#allocation2 + $0x19] sm:$0xff] %vm278_vm0, %v334_v1  ;;  %368 = vst.msk [vmem:[#allocation2 + $0x21] sm:$0xff] %vm278_vm0, %v335_v2 }
  0x45   : > { %369 = vst.msk [vmem:[#allocation2 + $0x31] sm:$0xff] %vm278_vm0, %v336_v3  ;;  %370 = vst.msk [vmem:[#allocation2 + $0x39] sm:$0xff] %vm278_vm0, %v337_v4 }
  0x46   : > { %371 = vst.msk [vmem:[#allocation2 + $0x49] sm:$0xff] %vm278_vm0, %v338_v5  ;;  %372 = vst.msk [vmem:[#allocation2 + $0x51] sm:$0xff] %vm278_vm0, %v339_v6 }
  0x47   : > { %373 = vst.msk [vmem:[#allocation2 + $0x61] sm:$0xff] %vm278_vm0, %v340_v12  ;;  %374 = vst.msk [vmem:[#allocation2 + $0x69] sm:$0xff] %vm278_vm0, %v341_v13  ;;  %v355_v12 = vld [vmem:[%s5247_s17 + $0xa8] sm:$0xff] }
  0x48   : > { %375 = vst.msk [vmem:[#allocation2 + $0x79] sm:$0xff] %vm278_vm0, %v342_v14  ;;  %376 = vst.msk [vmem:[#allocation2 + $0x81] sm:$0xff] %vm278_vm0, %v343_v15 }
  0x49   : > { %400 = vst.msk [vmem:[#allocation3] sm:$0xff] %vm399_vm2, %v4979_v18  ;;  %401 = vst.msk [vmem:[#allocation3 + $0x8] sm:$0xff] %vm399_vm2, %v4979_v18 }
  0x4a   : > { %402 = vst.msk [vmem:[#allocation3 + $0x10] sm:$0xff] %vm399_vm2, %v4979_v18  ;;  %403 = vst.msk [vmem:[#allocation3 + $0x18] sm:$0xff] %vm399_vm2, %v4979_v18 }
  0x4b   : > { %404 = vst.msk [vmem:[#allocation3 + $0x20] sm:$0xff] %vm399_vm2, %v4979_v18  ;;  %405 = vst.msk [vmem:[#allocation3 + $0x28] sm:$0xff] %vm399_vm2, %v4979_v18  ;;  %v419_v34 = vld [vmem:[#allocation2 + $0x18] sm:$0xff]  ;;  %v420_v35 = vld [vmem:[#allocation2 + $0x20] sm:$0xff] }
  0x4c   : > { %406 = vst.msk [vmem:[#allocation3 + $0x30] sm:$0xff] %vm399_vm2, %v4979_v18  ;;  %407 = vst.msk [vmem:[#allocation3 + $0x38] sm:$0xff] %vm399_vm2, %v4979_v18  ;;  %v422_v36 = vld [vmem:[#allocation2 + $0x30] sm:$0xff]  ;;  %v471_v37 = vpack.c.bf16 %v420_v35, %v419_v34  ;;  %v423_v38 = vld [vmem:[#allocation2 + $0x38] sm:$0xff] }
  0x4d   : > { %408 = vst.msk [vmem:[#allocation3 + $0x40] sm:$0xff] %vm399_vm2, %v4979_v18  ;;  %409 = vst.msk [vmem:[#allocation3 + $0x48] sm:$0xff] %vm399_vm2, %v4979_v18  ;;  %v425_v39 = vld [vmem:[#allocation2 + $0x48] sm:$0xff]  ;;  %v426_v40 = vld [vmem:[#allocation2 + $0x50] sm:$0xff]  ;;  %v472_v41 = vpack.c.bf16 %v423_v38, %v422_v36 }
  0x4e   : > { %410 = vst.msk [vmem:[#allocation3 + $0x50] sm:$0xff] %vm399_vm2, %v4979_v18  ;;  %411 = vst.msk [vmem:[#allocation3 + $0x58] sm:$0xff] %vm399_vm2, %v4979_v18  ;;  %v5318_v42 = vpack.c.bf16 %v426_v40, %v425_v39  ;;  %v421_v45 = vld [vmem:[#allocation2 + $0x28] sm:$0x3]  ;;  %v424_v46 = vld [vmem:[#allocation2 + $0x40] sm:$0x3]  ;;  %924 = vrot.lane.b32.xlu0 %v471_v37, %s4981_s19 }
  0x4f   : > { %412 = vst.msk [vmem:[#allocation3 + $0x60] sm:$0xff] %vm399_vm2, %v4979_v18  ;;  %413 = vst.msk [vmem:[#allocation3 + $0x68] sm:$0xff] %vm399_vm2, %v4979_v18  ;;  %v503_v47 = vpack.c.bf16 %v421_v45, %v421_v45  ;;  %v504_v48 = vpack.c.bf16 %v424_v46, %v424_v46  ;;  %926 = vrot.lane.b32.xlu1 %v472_v41, %s4981_s19  ;;  %v534_v49 = vshll.u32 %v471_v37, 16  ;;  %v812_v50 = vrot.slane %v471_v37, 1  ;;  %v427_v53 = vld [vmem:[#allocation2 + $0x58] sm:$0x3] }
  0x50   : > { %414 = vst.msk [vmem:[#allocation3 + $0x70] sm:$0xff] %vm399_vm2, %v4979_v18  ;;  %415 = vst.msk [vmem:[#allocation3 + $0x78] sm:$0xff] %vm399_vm2, %v4979_v18  ;;  %v546_v52 = vshll.u32 %v472_v41, 16  ;;  %v428_v55 = vld [vmem:[#allocation2 + $0x60] sm:$0xff]  ;;  %v429_v56 = vld [vmem:[#allocation2 + $0x68] sm:$0xff]  ;;  %v815_v57 = vrot.slane %v472_v41, 1  ;;  %v5330_v0 = vpack.c.bf16 %v427_v53, %v427_v53 }
  0x51   : > { %377 = vst.msk [vmem:[#allocation2 + $0x91] sm:$0xff] %vm278_vm0, %v344_v16  ;;  %378 = vst.msk [vmem:[#allocation2 + $0x99] sm:$0xff] %vm278_vm0, %v345_v17  ;;  %v813_v51 = vrot.slane %v503_v47, 1  ;;  %v816_v58 = vrot.slane %v504_v48, 1  ;;  %v532_v59 = vshrl.u32 %v471_v37, 16  ;;  %v544_v60 = vshrl.u32 %v472_v41, 16 }
  0x52   : > { %486 = vst.msk [vmem:[#allocation3] sm:$0xff] %vm278_vm0, %v5261_v10  ;;  %379 = vst.msk [vmem:[#allocation2 + $0xa9] sm:$0xff] %vm278_vm0, %v346_v22  ;;  %1138 = vrot.lane.b32.xlu0 %v472_v41, %s4982_s20  ;;  %v536_v61 = vrot.slane %v534_v49, 1  ;;  %v539_v62 = vshll.u32 %v503_v47, 16  ;;  %v551_v63 = vshll.u32 %v504_v48, 16  ;;  %v548_v2 = vrot.slane %v546_v52, 1 }
  0x53   : > { %380 = vst.msk [vmem:[#allocation2 + $0xb1] sm:$0xff] %vm278_vm0, %v347_v23  ;;  %381 = vst.msk [vmem:[#allocation2 + $0xc1] sm:$0xff] %vm278_vm0, %v348_v26  ;;  %1140 = vrot.lane.b32.xlu1 %v5318_v42, %s4982_s20  ;;  %v814_v1 = vsel %vm808_vm3, %v812_v50, %v813_v51  ;;  %v558_v3 = vshll.u32 %v5318_v42, 16  ;;  %v5334_v4 = vpack.c.bf16 %v429_v56, %v428_v55  ;;  %v431_v5 = vld [vmem:[#allocation2 + $0x78] sm:$0xff]  ;;  %v432_v6 = vld [vmem:[#allocation2 + $0x80] sm:$0xff]  ;;  %v556_v10 = vshrl.u32 %v5318_v42, 16 }
  0x54   : > { %382 = vst.msk [vmem:[#allocation2 + $0xc9] sm:$0xff] %vm278_vm0, %v349_v27  ;;  %383 = vst.msk [vmem:[#allocation2 + $0xd9] sm:$0xff] %vm278_vm0, %v350_v28  ;;  %v5338_v9 = vsel %vm808_vm3, %v815_v57, %v816_v58  ;;  %v537_v13 = vor.u32 %v536_v61, %v532_v59  ;;  %v541_v14 = vrot.slane %v539_v62, 1  ;;  %v553_v15 = vrot.slane %v551_v63, 1  ;;  %v430_v43 = vld [vmem:[#allocation2 + $0x70] sm:$0x3] }
  0x55   : > { %384 = vst.msk [vmem:[#allocation2 + $0xe1] sm:$0xff] %vm278_vm0, %v351_v31  ;;  %385 = vst.msk [vmem:[#allocation2 + $0xf1] sm:$0xff] %vm278_vm0, %v352_v32  ;;  %v563_v16 = vshll.u32 %v5330_v0, 16  ;;  %v549_v17 = vor.u32 %v548_v2, %v544_v60  ;;  %v560_v18 = vrot.slane %v558_v3, 1  ;;  %v5349_v19 = vpack.c.bf16 %v432_v6, %v431_v5  ;;  %v4839_v45 = vld [vmem:[%s6652_s1 + $0x10] ss:$0 sps:$4 sm:$0xff]  }
  0x56   : > { %386 = vst.msk [vmem:[#allocation2 + $0xf9] sm:$0xff] %vm278_vm0, %v353_v33  ;;  %487 = vst.msk [vmem:[#allocation3 + $0x8] sm:$0xff] %vm278_vm0, %v471_v37  ;;  %711 = vrot.lane.b32.xlu0 %v530_v54, %s4983_s21  ;;  %v542_v23 = vsel %vm518_vm4, %v537_v13, %v541_v14  ;;  %v818_v34 = vrot.slane %v5318_v42, 1  ;;  %v819_v35 = vrot.slane %v5330_v0, 1  ;;  %v506_v47 = vpack.c.bf16 %v430_v43, %v430_v43  ;;  %v356_v50 = vld [vmem:[%s5247_s17 + $0xb0] sm:$0xff]  ;;  %v357_v51 = vld [vmem:[%s5247_s17 + $0xb8] sm:$0xff] }
  0x57   : > { %488 = vst.msk [vmem:[#allocation3 + $0x10] sm:$0xff] %vm278_vm0, %v472_v41  ;;  %489 = vst.msk [vmem:[#allocation3 + $0x18] sm:$0xff] %vm278_vm0, %v5318_v42  ;;  %859 = vrot.lane.b32.xlu1 %v814_v1, %s4980_s18  ;;  %v554_v26 = vsel %vm518_vm4, %v549_v17, %v553_v15  ;;  %v561_v27 = vor.u32 %v560_v18, %v556_v10  ;;  %v565_v28 = vrot.slane %v563_v16, 1  ;;  %v570_v48 = vshll.u32 %v5334_v4, 16  ;;  %v433_v57 = vld [vmem:[#allocation2 + $0x88] sm:$0x3] }
  0x58   : > { %v434_v7 = vld [vmem:[#allocation2 + $0x90] sm:$0xff]  ;;  %v435_v8 = vld [vmem:[#allocation2 + $0x98] sm:$0xff]  ;;  %490 = vst.msk [vmem:[#allocation3 + $0x20] sm:$0xff] %vm278_vm0, %v5334_v4  ;;  %387 = vst.msk [vmem:[#allocation2 + $0x109] sm:$0xff] %vm278_vm0, %v354_v11  ;;  %v820_v40 = vsel %vm808_vm3, %v818_v34, %v819_v35  ;;  %v568_v52 = vshrl.u32 %v5334_v4, 16  ;;  %4786 = vmatprep.subr.msk.bf16.mxu0 %vm1434_vm5, %v4839_v45  ;;  %v1436_v53 = vsel %vm1434_vm5, %v4839_v45, 0  ;;  %v507_v2 = vpack.c.bf16 %v433_v57, %v433_v57 }
  0x59   : > { %388 = vst.msk [vmem:[#allocation2 + $0x111] sm:$0xff] %vm278_vm0, %v355_v12  ;;  %v5351_v20 = vpack.c.bf16 %v435_v8, %v434_v7  ;;  %v437_v22 = vld [vmem:[#allocation2 + $0xa8] sm:$0xff]  ;;  %491 = vst.msk [vmem:[#allocation3 + $0x28] sm:$0xff] %vm278_vm0, %v5349_v19  ;;  %v5375_v33 = vsel %vm518_vm4, %v561_v27, %v565_v28  ;;  %v572_v54 = vrot.slane %v570_v48, 1  ;;  %v575_v55 = vshll.u32 %v506_v47, 16  ;;  %4689 = vmatpush3.bf16.msra.mxu0 %v1436_v53  ;;  %v358_v5 = vld [vmem:[%s5247_s17 + $0xc0] sm:$0xff] }
  0x5a   : > { %1071 = vrot.lane.b32.xlu0 %v814_v1, %s4984_s29  ;;  %v438_v24 = vld [vmem:[#allocation2 + $0xb0] sm:$0xff]  ;;  %v440_v25 = vld [vmem:[#allocation2 + $0xc0] sm:$0xff]  ;;  %389 = vst.msk [vmem:[#allocation2 + $0x121] sm:$0xff] %vm278_vm0, %v356_v50  ;;  %390 = vst.msk [vmem:[#allocation2 + $0x129] sm:$0xff] %vm278_vm0, %v357_v51  ;;  %v821_v63 = vrot.slane %v5334_v4, 1  ;;  %v822_v1 = vrot.slane %v506_v47, 1 }
  0x5b   : > { %492 = vst.msk [vmem:[#allocation3 + $0x30] sm:$0xff] %vm278_vm0, %v5351_v20  ;;  %1073 = vrot.lane.b32.xlu1 %v5338_v9, %s4984_s29  ;;  %v441_v29 = vld [vmem:[#allocation2 + $0xc8] sm:$0xff]  ;;  %v5369_v31 = vpack.c.bf16 %v438_v24, %v437_v22  ;;  %v443_v36 = vld [vmem:[#allocation2 + $0xd8] sm:$0xff]  ;;  %v573_v58 = vor.u32 %v572_v54, %v568_v52  ;;  %v577_v59 = vrot.slane %v575_v55, 1  ;;  %v582_v3 = vshll.u32 %v5349_v19, 16  ;;  %391 = vst.msk [vmem:[#allocation2 + $0x139] sm:$0xff] %vm278_vm0, %v358_v5 }
  0x5c   : > { %v5372_v32 = vpack.c.bf16 %v441_v29, %v440_v25  ;;  %v444_v37 = vld [vmem:[#allocation2 + $0xe0] sm:$0xff]  ;;  %v446_v39 = vld [vmem:[#allocation2 + $0xf0] sm:$0xff]  ;;  %v359_v6 = vld [vmem:[%s5247_s17 + $0xc8] sm:$0xff]  ;;  %v580_v7 = vshrl.u32 %v5349_v19, 16  ;;  %v823_v8 = vsel %vm808_vm3, %v821_v63, %v822_v1  ;;  %v587_v10 = vshll.u32 %v507_v2, 16 }
  0x5d   : > { %493 = vst.msk [vmem:[#allocation3 + $0x38] sm:$0xff] %vm278_vm0, %v5369_v31  ;;  %v5386_v38 = vpack.c.bf16 %v444_v37, %v443_v36  ;;  %v447_v41 = vld [vmem:[#allocation2 + $0xf8] sm:$0xff]  ;;  %v578_v0 = vsel %vm518_vm4, %v573_v58, %v577_v59  ;;  %392 = vst.msk [vmem:[#allocation2 + $0x141] sm:$0xff] %vm278_vm0, %v359_v6  ;;  %v436_v11 = vld [vmem:[#allocation2 + $0xa0] sm:$0x3]  ;;  %v824_v17 = vrot.slane %v5349_v19, 1 }
  0x5e   : > { %713 = vrot.lane.b32.xlu0 %v542_v23, %s4983_s21  ;;  %494 = vst.msk [vmem:[#allocation3 + $0x40] sm:$0xff] %vm278_vm0, %v5372_v32  ;;  %v5393_v44 = vpack.c.bf16 %v447_v41, %v446_v39  ;;  %v825_v18 = vrot.slane %v507_v2, 1  ;;  %v508_v21 = vpack.c.bf16 %v436_v11, %v436_v11  ;;  %v592_v25 = vshrl.u32 %v5351_v20, 16  ;;  %v360_v28 = vld [vmem:[%s5247_s17 + $0xd0] sm:$0xff]  ;;  %v361_v29 = vld [vmem:[%s5247_s17 + $0xd8] sm:$0xff]  ;;  %v362_v43 = vld [vmem:[%s5247_s17 + $0xe0] sm:$0xff] }
  0x5f   : > { %1004 = vrot.lane.b32.xlu1 %v554_v26, %s4985_s13  ;;  %495 = vst.msk [vmem:[#allocation3 + $0x48] sm:$0xff] %vm278_vm0, %v5386_v38  ;;  %v449_v46 = vld [vmem:[#allocation2 + $0x108] sm:$0xff]  ;;  %393 = vst.msk [vmem:[#allocation2 + $0x151] sm:$0xff] %vm278_vm0, %v360_v28  ;;  %v827_v36 = vrot.slane %v5351_v20, 1  ;;  %v606_v41 = vshll.u32 %v5369_v31, 16  ;;  %v830_v55 = vrot.slane %v5369_v31, 1 }
  0x60   : > { %v450_v49 = vld [vmem:[#allocation2 + $0x110] sm:$0xff]  ;;  %496 = vst.msk [vmem:[#allocation3 + $0x50] sm:$0xff] %vm278_vm0, %v5393_v44  ;;  %v826_v22 = vsel %vm808_vm3, %v824_v17, %v825_v18  ;;  %v599_v24 = vshll.u32 %v508_v21, 16  ;;  %394 = vst.msk [vmem:[#allocation2 + $0x159] sm:$0xff] %vm278_vm0, %v361_v29  ;;  %v828_v39 = vrot.slane %v508_v21, 1  ;;  %v363_v45 = vld [vmem:[%s5247_s17 + $0xe8] sm:$0xff] }
  0x61   : > { %v5410_v56 = vpack.c.bf16 %v450_v49, %v449_v46  ;;  %v452_v60 = vld [vmem:[#allocation2 + $0x120] sm:$0xff]  ;;  %v453_v61 = vld [vmem:[#allocation2 + $0x128] sm:$0xff]  ;;  %v604_v46 = vshrl.u32 %v5369_v31, 16  ;;  %395 = vst.msk [vmem:[#allocation2 + $0x169] sm:$0xff] %vm278_vm0, %v362_v43  ;;  %396 = vst.msk [vmem:[#allocation2 + $0x171] sm:$0xff] %vm278_vm0, %v363_v45  ;;  %v608_v48 = vrot.slane %v606_v41, 1 }
  0x62   : > { %1002 = vrot.lane.b32.xlu0 %v542_v23, %s4985_s13  ;;  %v5418_v62 = vpack.c.bf16 %v453_v61, %v452_v60  ;;  %v455_v13 = vld [vmem:[#allocation2 + $0x138] sm:$0xff]  ;;  %v594_v23 = vshll.u32 %v5351_v20, 16  ;;  %v601_v27 = vrot.slane %v599_v24, 1  ;;  %v829_v47 = vsel %vm808_vm3, %v827_v36, %v828_v39  ;;  %v442_v59 = vld [vmem:[#allocation2 + $0xd0] sm:$0x3] }
  0x63   : > { %1218 = vrot.lane.b32.xlu1 %v5375_v33, %s4986_s14  ;;  %497 = vst.msk [vmem:[#allocation3 + $0x58] sm:$0xff] %vm278_vm0, %v5410_v56  ;;  %v609_v50 = vor.u32 %v608_v48, %v604_v46  ;;  %v510_v60 = vpack.c.bf16 %v442_v59, %v442_v59  ;;  %v618_v61 = vshll.u32 %v5372_v32, 16  ;;  %v364_v63 = vld [vmem:[%s5247_s17 + $0xf0] sm:$0xff]  ;;  %v445_v6 = vld [vmem:[#allocation2 + $0xe8] sm:$0x3]  ;;  %v630_v11 = vshll.u32 %v5386_v38, 16 }
  0x64   : > { %498 = vst.msk [vmem:[#allocation3 + $0x60] sm:$0xff] %vm278_vm0, %v5418_v62  ;;  %v456_v14 = vld [vmem:[#allocation2 + $0x140] sm:$0xff]  ;;  %397 = vst.msk [vmem:[#allocation2 + $0x181] sm:$0xff] %vm278_vm0, %v364_v63  ;;  %v451_v46 = vld [vmem:[#allocation2 + $0x118] sm:$0x3] }
  0x65   : > { %v5440_v15 = vpack.c.bf16 %v456_v14, %v455_v13  ;;  %v620_v1 = vrot.slane %v618_v61, 1  ;;  %v623_v2 = vshll.u32 %v510_v60, 16  ;;  %v632_v13 = vrot.slane %v630_v11, 1  ;;  %v448_v28 = vld [vmem:[#allocation2 + $0x100] sm:$0x3] }
  0x66   : > { %1216 = vrot.lane.b32.xlu0 %v554_v26, %s4986_s14 }
  0x67   : > { %1287 = vrot.lane.b32.xlu1 %v820_v40, %s4987_s15  ;;  %499 = vst.msk [vmem:[#allocation3 + $0x68] sm:$0xff] %vm278_vm0, %v5440_v15  ;;  %v459_v34 = vld [vmem:[#allocation2 + $0x158] sm:$0xff]  ;;  %v625_v5 = vrot.slane %v623_v2, 1  ;;  %v842_v2 = vrot.slane %v5410_v56, 1 }
  0x68   : > { %v461_v52 = vld [vmem:[#allocation2 + $0x168] sm:$0xff] }
  0x6a   : > { %1285 = vrot.lane.b32.xlu0 %v5338_v9, %s4987_s15 }
  0x6b   : > { %717 = vrot.lane.b32.xlu1 %v5375_v33, %s4983_s21 }
  0x6e   : > { %715 = vrot.lane.b32.xlu0 %v554_v26, %s4983_s21  ;;  %v596_v26 = vrot.slane %v594_v23, 1 }
  0x6f   : > { %863 = vrot.lane.b32.xlu1 %v820_v40, %s4980_s18 }
  0x70   : > { %v597_v30 = vor.u32 %v596_v26, %v592_v25 }
  0x72   : > { %861 = vrot.lane.b32.xlu0 %v5338_v9, %s4980_s18  ;;  %v584_v9 = vrot.slane %v582_v3, 1  ;;  %v602_v37 = vsel %vm518_vm4, %v597_v30, %v601_v27 }
  0x73   : > { %930 = vrot.lane.b32.xlu1 %v5334_v4, %s4981_s19 }
  0x74   : > { %v585_v12 = vor.u32 %v584_v9, %v580_v7  ;;  %v833_v7 = vrot.slane %v5372_v32, 1  ;;  %v834_v9 = vrot.slane %v510_v60, 1 }
  0x76   : > { %928 = vrot.lane.b32.xlu0 %v5318_v42, %s4981_s19  ;;  %v589_v42 = vrot.slane %v587_v10, 1  ;;  %v511_v10 = vpack.c.bf16 %v445_v6, %v445_v6 }
  0x77   : > { %1008 = vrot.lane.b32.xlu1 %v578_v0, %s4985_s13 }
  0x78   : > { %v590_v16 = vsel %vm518_vm4, %v585_v12, %v589_v42  ;;  %v835_v12 = vsel %vm808_vm3, %v833_v7, %v834_v9  ;;  %v628_v42 = vshrl.u32 %v5386_v38, 16  ;;  %v635_v14 = vshll.u32 %v511_v10, 16 }
  0x79   : > { %v837_v23 = vrot.slane %v511_v10, 1  ;;  %v454_v10 = vld [vmem:[#allocation2 + $0x130] sm:$0x3] }
  0x7a   : > { %1006 = vrot.lane.b32.xlu0 %v5375_v33, %s4985_s13  ;;  %v458_v33 = vld [vmem:[#allocation2 + $0x150] sm:$0xff]  ;;  %v637_v17 = vrot.slane %v635_v14, 1  ;;  %v664_v14 = vshrl.u32 %v5418_v62, 16 }
  0x7b   : > { %1077 = vrot.lane.b32.xlu1 %v823_v8, %s4984_s29  ;;  %v5465_v35 = vpack.c.bf16 %v459_v34, %v458_v33  ;;  %v640_v34 = vshrl.u32 %v5393_v44, 16 }
  0x7d   : > { %500 = vst.msk [vmem:[#allocation3 + $0x70] sm:$0xff] %vm278_vm0, %v5465_v35 }
  0x7e   : > { %1075 = vrot.lane.b32.xlu0 %v820_v40, %s4984_s29 }
  0x7f   : > { %1144 = vrot.lane.b32.xlu1 %v5349_v19, %s4982_s20 }
  0x82   : > { %1142 = vrot.lane.b32.xlu0 %v5334_v4, %s4982_s20  ;;  %v439_v4 = vld [vmem:[#allocation2 + $0xb8] sm:$0x3] }
  0x83   : > { %1222 = vrot.lane.b32.xlu1 %v590_v16, %s4986_s14  ;;  %v509_v40 = vpack.c.bf16 %v439_v4, %v439_v4  ;;  %v512_v4 = vpack.c.bf16 %v448_v28, %v448_v28  ;;  %v845_v28 = vrot.slane %v5418_v62, 1 }
  0x85   : > { %v611_v49 = vshll.u32 %v509_v40, 16  ;;  %v831_v57 = vrot.slane %v509_v40, 1 }
  0x86   : > { %1220 = vrot.lane.b32.xlu0 %v578_v0, %s4986_s14 }
  0x87   : > { %1291 = vrot.lane.b32.xlu1 %v826_v22, %s4987_s15  ;;  %v613_v51 = vrot.slane %v611_v49, 1  ;;  %v832_v58 = vsel %vm808_vm3, %v830_v55, %v831_v57  ;;  %v652_v57 = vshrl.u32 %v5410_v56, 16 }
  0x89   : > { %v614_v54 = vsel %vm518_vm4, %v609_v50, %v613_v51  ;;  %v840_v50 = vrot.slane %v512_v4, 1  ;;  %v513_v51 = vpack.c.bf16 %v451_v46, %v451_v46 }
  0x8a   : > { %1289 = vrot.lane.b32.xlu0 %v823_v8, %s4987_s15 }
  0x8b   : > { %721 = vrot.lane.b32.xlu1 %v590_v16, %s4983_s21  ;;  %v659_v59 = vshll.u32 %v513_v51, 16 }
  0x8d   : > { %v661_v63 = vrot.slane %v659_v59, 1 }
  0x8e   : > { %719 = vrot.lane.b32.xlu0 %v578_v0, %s4983_s21  ;;  %v365_v0 = vld [vmem:[%s5247_s17 + $0xf8] sm:$0xff]  ;;  %v858_v18 = vpop.permute.xlu1 %857  ;;  %s4088_s17 = sshll.u32 %s269_s16, 8 }
  0x8f   : > { %867 = vrot.lane.b32.xlu1 %v826_v22, %s4980_s18  ;;  %398 = vst.msk [vmem:[#allocation2 + $0x189] sm:$0xff] %vm278_vm0, %v365_v0 }
  0x92   : > { %865 = vrot.lane.b32.xlu0 %v823_v8, %s4980_s18 }
  0x93   : > { %934 = vrot.lane.b32.xlu1 %v5351_v20, %s4981_s19 }
  0x96   : > { %932 = vrot.lane.b32.xlu0 %v5349_v19, %s4981_s19  ;;  %v462_v19 = vld [vmem:[#allocation2 + $0x170] sm:$0xff] }
  0x97   : > { %1012 = vrot.lane.b32.xlu1 %v602_v37, %s4985_s13  ;;  %v5486_v53 = vpack.c.bf16 %v462_v19, %v461_v52  ;;  %v654_v52 = vshll.u32 %v5410_v56, 16 }
  0x99   : > { %501 = vst.msk [vmem:[#allocation3 + $0x78] sm:$0xff] %vm278_vm0, %v5486_v53 }
  0x9a   : > { %1010 = vrot.lane.b32.xlu0 %v590_v16, %s4985_s13  ;;  %v633_v16 = vor.u32 %v632_v13, %v628_v42 }
  0x9b   : > { %1081 = vrot.lane.b32.xlu1 %v829_v47, %s4984_s29 }
  0x9c   : > { %v5527_v21 = vsel %vm518_vm4, %v633_v16, %v637_v17 }
  0x9e   : > { %1079 = vrot.lane.b32.xlu0 %v826_v22, %s4984_s29  ;;  %v836_v22 = vrot.slane %v5386_v38, 1 }
  0x9f   : > { %1148 = vrot.lane.b32.xlu1 %v5369_v31, %s4982_s20 }
  0xa0   : > { %v5535_v26 = vsel %vm808_vm3, %v836_v22, %v837_v23 }
  0xa2   : > { %1146 = vrot.lane.b32.xlu0 %v5351_v20, %s4982_s20  ;;  %v616_v20 = vshrl.u32 %v5372_v32, 16 }
  0xa3   : > { %1226 = vrot.lane.b32.xlu1 %v614_v54, %s4986_s14 }
  0xa4   : > { %v621_v3 = vor.u32 %v620_v1, %v616_v20 }
  0xa6   : > { %1224 = vrot.lane.b32.xlu0 %v602_v37, %s4986_s14  ;;  %v626_v8 = vsel %vm518_vm4, %v621_v3, %v625_v5  ;;  %v843_v3 = vrot.slane %v513_v51, 1 }
  0xa7   : > { %1295 = vrot.lane.b32.xlu1 %v832_v58, %s4987_s15 }
  0xa8   : > { %v844_v9 = vsel %vm808_vm3, %v842_v2, %v843_v3 }
  0xaa   : > { %1293 = vrot.lane.b32.xlu0 %v829_v47, %s4987_s15 }
  0xab   : > { %725 = vrot.lane.b32.xlu1 %v614_v54, %s4983_s21 }
  0xae   : > { %723 = vrot.lane.b32.xlu0 %v602_v37, %s4983_s21  ;;  %v647_v37 = vshll.u32 %v512_v4, 16 }
  0xaf   : > { %871 = vrot.lane.b32.xlu1 %v832_v58, %s4980_s18 }
  0xb0   : > { %v649_v43 = vrot.slane %v647_v37, 1 }
  0xb2   : > { %869 = vrot.lane.b32.xlu0 %v829_v47, %s4980_s18  ;;  %v839_v47 = vrot.slane %v5393_v44, 1 }
  0xb3   : > { %938 = vrot.lane.b32.xlu1 %v5372_v32, %s4981_s19 }
  0xb4   : > { %v841_v55 = vsel %vm808_vm3, %v839_v47, %v840_v50 }
  0xb6   : > { %936 = vrot.lane.b32.xlu0 %v5369_v31, %s4981_s19 }
  0xb7   : > { %1016 = vrot.lane.b32.xlu1 %v626_v8, %s4985_s13 }
  0xba   : > { %1014 = vrot.lane.b32.xlu0 %v614_v54, %s4985_s13 }
  0xbb   : > { %1085 = vrot.lane.b32.xlu1 %v835_v12, %s4984_s29 }
  0xbe   : > { %1083 = vrot.lane.b32.xlu0 %v832_v58, %s4984_s29  ;;  %v656_v58 = vrot.slane %v654_v52, 1 }
  0xbf   : > { %1152 = vrot.lane.b32.xlu1 %v5386_v38, %s4982_s20 }
  0xc0   : > { %v925_v31 = vpop.permute.xlu0 %924  ;;  %v657_v61 = vor.u32 %v656_v58, %v652_v57  ;;  %v690_v58 = vshll.u32 %v5465_v35, 16 }
  0xc1   : > { %v927_v24 = vpop.permute.xlu1 %926 }
  0xc2   : > { %1150 = vrot.lane.b32.xlu0 %v5372_v32, %s4982_s20  ;;  %v642_v32 = vshll.u32 %v5393_v44, 16  ;;  %v5587_v1 = vsel %vm518_vm4, %v657_v61, %v661_v63  ;;  %v692_v61 = vrot.slane %v690_v58, 1  ;;  %v4848_v58 = vld [vmem:[%s6655_s4 + $0x58] sm:$0xff]  }
  0xc3   : > { %1230 = vrot.lane.b32.xlu1 %v5527_v21, %s4986_s14 }
  0xc4   : > { %v1139_v25 = vpop.permute.xlu0 %1138  ;;  %v644_v36 = vrot.slane %v642_v32, 1  ;;  %v678_v32 = vshll.u32 %v5440_v15, 16 }
  0xc5   : > { %v1141_v27 = vpop.permute.xlu1 %1140 }
  0xc6   : > { %1228 = vrot.lane.b32.xlu0 %v626_v8, %s4986_s14  ;;  %v645_v41 = vor.u32 %v644_v36, %v640_v34  ;;  %v676_v36 = vshrl.u32 %v5440_v15, 16  ;;  %v680_v37 = vrot.slane %v678_v32, 1 }
  0xc7   : > { %1299 = vrot.lane.b32.xlu1 %v5535_v26, %s4987_s15 }
  0xc8   : > { %v712_v29 = vpop.permute.xlu0 %711  ;;  %v5560_v49 = vsel %vm518_vm4, %v645_v41, %v649_v43  ;;  %v681_v41 = vor.u32 %v680_v37, %v676_v36  ;;  %v466_v37 = vld [vmem:[#allocation2 + $0x190] sm:$0x3] }
  0xc9   : > { %760 = vst.msk [vmem:[#allocation3] sm:$0xff] %vm759_vm6, %v712_v29  ;;  %v860_v30 = vpop.permute.xlu1 %859 }
  0xca   : > { %906 = vst.msk [vmem:[#allocation3] sm:$0xff] %vm905_vm7, %v858_v18  ;;  %1297 = vrot.lane.b32.xlu0 %v835_v12, %s4987_s15 }
  0xcb   : > { %729 = vrot.lane.b32.xlu1 %v5527_v21, %s4983_s21  ;;  %973 = vst.msk [vmem:[#allocation3] sm:$0xff] %vm972_vm8, %v925_v31 }
  0xcc   : > { %v1072_v33 = vpop.permute.xlu0 %1071 }
  0xcd   : > { %v1074_v39 = vpop.permute.xlu1 %1073 }
  0xce   : > { %727 = vrot.lane.b32.xlu0 %v626_v8, %s4983_s21 }
  0xcf   : > { %875 = vrot.lane.b32.xlu1 %v5535_v26, %s4980_s18 }
  0xd0   : > { %v714_v40 = vpop.permute.xlu0 %713 }
  0xd1   : > { %761 = vst.msk [vmem:[#allocation3 + $0x8] sm:$0xff] %vm759_vm6, %v714_v40  ;;  %v1005_v45 = vpop.permute.xlu1 %1004 }
  0xd2   : > { %907 = vst.msk [vmem:[#allocation3 + $0x8] sm:$0xff] %vm905_vm7, %v860_v30  ;;  %873 = vrot.lane.b32.xlu0 %v835_v12, %s4980_s18  ;;  %v666_v12 = vshll.u32 %v5418_v62, 16 }
  0xd3   : > { %974 = vst.msk [vmem:[#allocation3 + $0x8] sm:$0xff] %vm972_vm8, %v927_v24  ;;  %942 = vrot.lane.b32.xlu1 %v5393_v44, %s4981_s19 }
  0xd4   : > { %1052 = vst.msk [vmem:[#allocation3 + $0x8] sm:$0xff] %vm1050_vm9, %v1005_v45  ;;  %v1003_v48 = vpop.permute.xlu0 %1002  ;;  %v668_v16 = vrot.slane %v666_v12, 1 }
  0xd5   : > { %1121 = vst.msk [vmem:[#allocation3 + $0x8] sm:$0xff] %vm1119_vm10, %v1074_v39  ;;  %v1219_v19 = vpop.permute.xlu1 %1218 }
  0xd6   : > { %1051 = vst.msk [vmem:[#allocation3] sm:$0xff] %vm1050_vm9, %v1003_v48  ;;  %940 = vrot.lane.b32.xlu0 %v5386_v38, %s4981_s19  ;;  %v848_v48 = vrot.slane %v5440_v15, 1 }
  0xd7   : > { %1120 = vst.msk [vmem:[#allocation3] sm:$0xff] %vm1119_vm10, %v1072_v33  ;;  %1020 = vrot.lane.b32.xlu1 %v5560_v49, %s4985_s13 }
  0xd8   : > { %1188 = vst.msk [vmem:[#allocation3 + $0x8] sm:$0xff] %vm1186_vm11, %v1141_v27  ;;  %1187 = vst.msk [vmem:[#allocation3] sm:$0xff] %vm1186_vm11, %v1139_v25  ;;  %v1217_v54 = vpop.permute.xlu0 %1216  ;;  %v457_v25 = vld [vmem:[#allocation2 + $0x148] sm:$0x3] }
  0xd9   : > { %1266 = vst.msk [vmem:[#allocation3 + $0x8] sm:$0xff] %vm1264_vm12, %v1219_v19  ;;  %1265 = vst.msk [vmem:[#allocation3] sm:$0xff] %vm1264_vm12, %v1217_v54  ;;  %v1288_v38 = vpop.permute.xlu1 %1287  ;;  %v515_v4 = vpack.c.bf16 %v457_v25, %v457_v25  ;;  %v854_v25 = vrot.slane %v5486_v53, 1 }
  0xda   : > { %1018 = vrot.lane.b32.xlu0 %v5527_v21, %s4985_s13  ;;  %1335 = vst.msk [vmem:[#allocation3 + $0x8] sm:$0xff] %vm1333_vm13, %v1288_v38  ;;  %v669_v21 = vor.u32 %v668_v16, %v664_v14  ;;  %v700_v14 = vshrl.u32 %v5486_v53, 16 }
  0xdb   : > { %1089 = vrot.lane.b32.xlu1 %v841_v55, %s4984_s29  ;;  %v683_v39 = vshll.u32 %v515_v4, 16 }
  0xdc   : > { %v1286_v60 = vpop.permute.xlu0 %1285 }
  0xdd   : > { %1334 = vst.msk [vmem:[#allocation3] sm:$0xff] %vm1333_vm13, %v1286_v60  ;;  %v718_v0 = vpop.permute.xlu1 %717  ;;  %v685_v43 = vrot.slane %v683_v39, 1  ;;  %v688_v60 = vshrl.u32 %v5465_v35, 16 }
  0xde   : > { %1087 = vrot.lane.b32.xlu0 %v5535_v26, %s4984_s29  ;;  %763 = vst.msk [vmem:[#allocation3 + $0x18] sm:$0xff] %vm759_vm6, %v718_v0 }
  0xdf   : > { %1156 = vrot.lane.b32.xlu1 %v5410_v56, %s4982_s20  ;;  %v5645_v47 = vsel %vm518_vm4, %v681_v41, %v685_v43  ;;  %v4843_v43 = vld [vmem:[%s6655_s4 + $0x8] sm:$0xff]  }
  0xe0   : > { %v716_v20 = vpop.permute.xlu0 %715 }
  0xe1   : > { %762 = vst.msk [vmem:[#allocation3 + $0x10] sm:$0xff] %vm759_vm6, %v716_v20  ;;  %v864_v5 = vpop.permute.xlu1 %863  ;;  %v1351_v6 = vld [vmem:[#allocation3 + $0x8] sm:$0xff] }
  0xe2   : > { %1154 = vrot.lane.b32.xlu0 %v5393_v44, %s4982_s20  ;;  %909 = vst.msk [vmem:[#allocation3 + $0x18] sm:$0xff] %vm905_vm7, %v864_v5  ;;  %v514_v44 = vpack.c.bf16 %v454_v10, %v454_v10 }
  0xe3   : > { %1234 = vrot.lane.b32.xlu1 %v5587_v1, %s4986_s14 }
  0xe4   : > { %v862_v7 = vpop.permute.xlu0 %861  ;;  %v1350_v8 = vld [vmem:[#allocation3] sm:$0xff]  ;;  %v671_v17 = vshll.u32 %v514_v44, 16  ;;  %v846_v29 = vrot.slane %v514_v44, 1  ;;  %v702_v44 = vshll.u32 %v5486_v53, 16 }
  0xe5   : > { %908 = vst.msk [vmem:[#allocation3 + $0x10] sm:$0xff] %vm905_vm7, %v862_v7  ;;  %4690 = vmatprep.mubr.msk.bf16.mxu0 %vm399_vm2, %v1350_v8  ;;  %v931_v11 = vpop.permute.xlu1 %930 }
  0xe6   : > { %1232 = vrot.lane.b32.xlu0 %v5560_v49, %s4986_s14  ;;  %4691 = vmatmul.mubr.msk.bf16.vlgmr.msra.gmra.mrb[0].mxu0 %vm399_vm2, %v1351_v6  ;;  %976 = vst.msk [vmem:[#allocation3 + $0x18] sm:$0xff] %vm972_vm8, %v931_v11  ;;  %v673_v22 = vrot.slane %v671_v17, 1  ;;  %v847_v34 = vsel %vm808_vm3, %v845_v28, %v846_v29  ;;  %v463_v6 = vld [vmem:[#allocation2 + $0x178] sm:$0x3]  ;;  %v704_v16 = vrot.slane %v702_v44, 1  ;;  %v465_v28 = vld [vmem:[#allocation2 + $0x188] sm:$0xff] }
  0xe7   : > { %1303 = vrot.lane.b32.xlu1 %v844_v9, %s4987_s15  ;;  %v517_v11 = vpack.c.bf16 %v463_v6, %v463_v6  ;;  %v4854_v6 = vld [vmem:[%s6655_s4 + $0x20] sm:$0xff]   ;;  %v4853_v44 = vld [vmem:[%s6655_s4 + $0xd0] sm:$0xff]  }
  0xe8   : > { %v929_v42 = vpop.permute.xlu0 %928  ;;  %v5622_v26 = vsel %vm518_vm4, %v669_v21, %v673_v22 }
  0xe9   : > { %975 = vst.msk [vmem:[#allocation3 + $0x10] sm:$0xff] %vm972_vm8, %v929_v42  ;;  %v1009_v13 = vpop.permute.xlu1 %1008  ;;  %v707_v17 = vshll.u32 %v517_v11, 16 }
  0xea   : > { %1301 = vrot.lane.b32.xlu0 %v841_v55, %s4987_s15  ;;  %1054 = vst.msk [vmem:[#allocation3 + $0x18] sm:$0xff] %vm1050_vm9, %v1009_v13 }
  0xeb   : > { %733 = vrot.lane.b32.xlu1 %v5587_v1, %s4983_s21  ;;  %v709_v21 = vrot.slane %v707_v17, 1 }
  0xec   : > { %v1007_v18 = vpop.permute.xlu0 %1006 }
  0xed   : > { %1053 = vst.msk [vmem:[#allocation3 + $0x10] sm:$0xff] %vm1050_vm9, %v1007_v18  ;;  %v1078_v31 = vpop.permute.xlu1 %1077 }
  0xee   : > { %731 = vrot.lane.b32.xlu0 %v5560_v49, %s4983_s21  ;;  %1123 = vst.msk [vmem:[#allocation3 + $0x18] sm:$0xff] %vm1119_vm10, %v1078_v31  ;;  %v849_v49 = vrot.slane %v515_v4, 1  ;;  %v705_v31 = vor.u32 %v704_v16, %v700_v14  ;;  %v4840_v4 = vld [vmem:[%s6655_s4 + $0x40] sm:$0xff]   ;;  %v4858_v14 = vld [vmem:[%s6655_s4 + $0x28] sm:$0xff]  }
  0xef   : > { %879 = vrot.lane.b32.xlu1 %v844_v9, %s4980_s18  ;;  %4212 = vmatprep.subr.bf16.mxu1 %v4840_v4  ;;  %v4863_v4 = vld [vmem:[%s6655_s4 + $0xa0] sm:$0xff]  }
  0xf0   : > { %v1076_v23 = vpop.permute.xlu0 %1075  ;;  %v850_v54 = vsel %vm808_vm3, %v848_v48, %v849_v49 }
  0xf1   : > { %1122 = vst.msk [vmem:[#allocation3 + $0x10] sm:$0xff] %vm1119_vm10, %v1076_v23  ;;  %v1145_v24 = vpop.permute.xlu1 %1144 }
  0xf2   : > { %877 = vrot.lane.b32.xlu0 %v841_v55, %s4980_s18  ;;  %1190 = vst.msk [vmem:[#allocation3 + $0x18] sm:$0xff] %vm1186_vm11, %v1145_v24  ;;  %v460_v55 = vld [vmem:[#allocation2 + $0x160] sm:$0x3]  ;;  %v5706_v24 = vsel %vm518_vm4, %v705_v31, %v709_v21  ;;  %v4857_v31 = vld [vmem:[%s6655_s4 + $0xd8] sm:$0xff]  }
  0xf3   : > { %946 = vrot.lane.b32.xlu1 %v5418_v62, %s4981_s19 }
  0xf4   : > { %v1143_v27 = vpop.permute.xlu0 %1142 }
  0xf5   : > { %1189 = vst.msk [vmem:[#allocation3 + $0x10] sm:$0xff] %vm1186_vm11, %v1143_v27  ;;  %v1223_v30 = vpop.permute.xlu1 %1222  ;;  %v464_v27 = vld [vmem:[#allocation2 + $0x180] sm:$0xff] }
  0xf6   : > { %944 = vrot.lane.b32.xlu0 %v5410_v56, %s4981_s19  ;;  %1268 = vst.msk [vmem:[#allocation3 + $0x18] sm:$0xff] %vm1264_vm12, %v1223_v30  ;;  %v5718_v30 = vpack.c.bf16 %v465_v28, %v464_v27 }
  0xf7   : > { %1024 = vrot.lane.b32.xlu1 %v5622_v26, %s4985_s13 }
  0xf8   : > { %v1221_v33 = vpop.permute.xlu0 %1220  ;;  %v993_v41 = vshll.u32 %v5718_v30, 16  ;;  %v991_v48 = vshrl.u32 %v5718_v30, 16 }
  0xf9   : > { %1267 = vst.msk [vmem:[#allocation3 + $0x10] sm:$0xff] %vm1264_vm12, %v1221_v33  ;;  %v1292_v40 = vpop.permute.xlu1 %1291  ;;  %v4841_v33 = vld [vmem:[%s6655_s4] sm:$0xff]  }
  0xfa   : > { %1022 = vrot.lane.b32.xlu0 %v5587_v1, %s4985_s13  ;;  %1337 = vst.msk [vmem:[#allocation3 + $0x18] sm:$0xff] %vm1333_vm13, %v1292_v40  ;;  %v693_v1 = vor.u32 %v692_v61, %v688_v60  ;;  %4213 = vmatpush3.bf16.msra.mxu1 %v4841_v33  ;;  %v4842_v40 = vld [vmem:[%s6655_s4 + $0x48] sm:$0xff]   ;;  %v995_v49 = vrot.slane %v993_v41, 1  ;;  %v4850_v60 = vld [vmem:[%s6655_s4 + $0x18] sm:$0xff]  }
  0xfb   : > { %1093 = vrot.lane.b32.xlu1 %v847_v34, %s4984_s29  ;;  %4214 = vmatprep.subr.bf16.mxu1 %v4842_v40  ;;  %v4866_v33 = vld [vmem:[%s6655_s4 + $0x38] sm:$0xff]  }
  0xfc   : > { %v1290_v56 = vpop.permute.xlu0 %1289  ;;  %v1860_v40 = vld [vmem:[#allocation4 + $0x1] sm:$0xff] }
  0xfd   : > { %1336 = vst.msk [vmem:[#allocation3 + $0x10] sm:$0xff] %vm1333_vm13, %v1290_v56  ;;  %v722_v45 = vpop.permute.xlu1 %721  ;;  %v5737_v56 = vpack.c.bf16 %v466_v37, %v466_v37 }
  0xfe   : > { %1091 = vrot.lane.b32.xlu0 %v844_v9, %s4984_s29  ;;  %765 = vst.msk [vmem:[#allocation3 + $0x28] sm:$0xff] %vm759_vm6, %v722_v45  ;;  %v851_v9 = vrot.slane %v5465_v35, 1  ;;  %4215 = vmatpush3.bf16.msra.mxu1 %v4843_v43  ;;  %v4867_v43 = vld [vmem:[%s6655_s4 + $0xa8] sm:$0xff]  }
  0xff   : > { %1160 = vrot.lane.b32.xlu1 %v5440_v15, %s4982_s20 }
 0x100   : > { %v720_v46 = vpop.permute.xlu0 %719 }
 0x101   : > { %764 = vst.msk [vmem:[#allocation3 + $0x20] sm:$0xff] %vm759_vm6, %v720_v46  ;;  %v868_v50 = vpop.permute.xlu1 %867  ;;  %v1353_v51 = vld [vmem:[#allocation3 + $0x18] sm:$0xff] }
 0x102   : > { %1158 = vrot.lane.b32.xlu0 %v5418_v62, %s4982_s20  ;;  %911 = vst.msk [vmem:[#allocation3 + $0x28] sm:$0xff] %vm905_vm7, %v868_v50  ;;  %v516_v62 = vpack.c.bf16 %v460_v55, %v460_v55  ;;  %v998_v50 = vshll.u32 %v5737_v56, 16  ;;  %v467_v55 = vld [vmem:[#allocation2 + $0x198] sm:$0xff] }
 0x103   : > { %1238 = vrot.lane.b32.xlu1 %v5645_v47, %s4986_s14 }
 0x104   : > { %v866_v52 = vpop.permute.xlu0 %865  ;;  %v1352_v19 = vld [vmem:[#allocation3 + $0x10] sm:$0xff]  ;;  %v695_v63 = vshll.u32 %v516_v62, 16  ;;  %v852_v10 = vrot.slane %v516_v62, 1 }
 0x105   : > { %910 = vst.msk [vmem:[#allocation3 + $0x20] sm:$0xff] %vm905_vm7, %v866_v52  ;;  %4694 = vmatprep.mubr.msk.bf16.mxu0 %vm399_vm2, %v1352_v19  ;;  %v935_v57 = vpop.permute.xlu1 %934  ;;  %v4845_v19 = vld [vmem:[%s6655_s4 + $0xc0] sm:$0xff]  }
 0x106   : > { %1236 = vrot.lane.b32.xlu0 %v5622_v26, %s4986_s14  ;;  %4695 = vmatmul.mubr.msk.bf16.gmra.mrb[4].mxu0 %vm399_vm2, %v1353_v51  ;;  %978 = vst.msk [vmem:[#allocation3 + $0x28] sm:$0xff] %vm972_vm8, %v935_v57  ;;  %v697_v2 = vrot.slane %v695_v63, 1  ;;  %v5691_v13 = vsel %vm808_vm3, %v851_v9, %v852_v10  ;;  %v4846_v51 = vld [vmem:[%s6655_s4 + $0x10] sm:$0xff]   ;;  %v468_v57 = vld [vmem:[#allocation2 + $0x1a0] sm:$0xff]  ;;  %v1069_v9 = vrot.slane %v5737_v56, 1 }
 0x107   : > { %1307 = vrot.lane.b32.xlu1 %v850_v54, %s4987_s15  ;;  %v4847_v62 = vld [vmem:[%s6655_s4 + $0x80] sm:$0xff]   ;;  %4324 = vmatprep.subr.bf16.mxu0 %v4845_v19  ;;  %v5775_v63 = vpack.c.bf16 %v468_v57, %v467_v55  ;;  %v4869_v19 = vld [vmem:[%s6655_s4 + $0xb0] sm:$0xff]   ;;  %v4871_v57 = vld [vmem:[%s6655_s4 + $0xb8] sm:$0xff]  }
 0x108   : > { %v933_v59 = vpop.permute.xlu0 %932  ;;  %v5680_v7 = vsel %vm518_vm4, %v693_v1, %v697_v2  ;;  %4325 = vmatpush3.bf16.msra.mxu0 %v4847_v62  ;;  %v469_v1 = vld [vmem:[#allocation2 + $0x1a8] sm:$0x3]  ;;  %v1861_v56 = vld [vmem:[#allocation4 + $0x9] sm:$0xff] }
 0x109   : > { %977 = vst.msk [vmem:[#allocation3 + $0x20] sm:$0xff] %vm972_vm8, %v933_v59  ;;  %v1013_v38 = vpop.permute.xlu1 %1012  ;;  %v996_v59 = vor.u32 %v995_v49, %v991_v48  ;;  %v4851_v2 = vld [vmem:[%s6655_s4 + $0x88] sm:$0xff]   ;;  %v5800_v10 = vpack.c.bf16 %v469_v1, %v469_v1 }
 0x10a   : > { %1305 = vrot.lane.b32.xlu0 %v847_v34, %s4987_s15  ;;  %1056 = vst.msk [vmem:[#allocation3 + $0x28] sm:$0xff] %vm1050_vm9, %v1013_v38  ;;  %v1000_v38 = vrot.slane %v998_v50, 1 }
 0x10b   : > { %737 = vrot.lane.b32.xlu1 %v5645_v47, %s4983_s21  ;;  %v1283_v37 = vrot.slane %v5800_v10, 1 }
 0x10c   : > { %v1011_v0 = vpop.permute.xlu0 %1010 }
 0x10d   : > { %1055 = vst.msk [vmem:[#allocation3 + $0x20] sm:$0xff] %vm1050_vm9, %v1011_v0  ;;  %v1082_v20 = vpop.permute.xlu1 %1081  ;;  %v4849_v0 = vld [vmem:[%s6655_s4 + $0xc8] sm:$0xff]  }
 0x10e   : > { %735 = vrot.lane.b32.xlu0 %v5622_v26, %s4983_s21  ;;  %1125 = vst.msk [vmem:[#allocation3 + $0x28] sm:$0xff] %vm1119_vm10, %v1082_v20  ;;  %v855_v26 = vrot.slane %v517_v11, 1  ;;  %4326 = vmatprep.subr.bf16.mxu0 %v4849_v0  ;;  %v1207_v11 = vshll.u32 %v5775_v63, 16 }
 0x10f   : > { %883 = vrot.lane.b32.xlu1 %v850_v54, %s4980_s18  ;;  %4327 = vmatpush3.bf16.msra.mxu0 %v4851_v2 }
 0x110   : > { %v1080_v3 = vpop.permute.xlu0 %1079  ;;  %4328 = vmatprep.subr.bf16.mxu0 %v4853_v44 }
 0x111   : > { %1124 = vst.msk [vmem:[#allocation3 + $0x20] sm:$0xff] %vm1119_vm10, %v1080_v3  ;;  %v1149_v5 = vpop.permute.xlu1 %1148  ;;  %v4852_v3 = vld [vmem:[%s6655_s4 + $0x60] sm:$0xff]  }
 0x112   : > { %881 = vrot.lane.b32.xlu0 %v847_v34, %s4980_s18  ;;  %1192 = vst.msk [vmem:[#allocation3 + $0x28] sm:$0xff] %vm1186_vm11, %v1149_v5  ;;  %v5793_v5 = vsel %vm518_vm4, %v996_v59, %v1000_v38 }
 0x113   : > { %950 = vrot.lane.b32.xlu1 %v5465_v35, %s4981_s19 }
 0x114   : > { %v1147_v8 = vpop.permute.xlu0 %1146 }
 0x115   : > { %1191 = vst.msk [vmem:[#allocation3 + $0x20] sm:$0xff] %vm1186_vm11, %v1147_v8  ;;  %v1227_v12 = vpop.permute.xlu1 %1226  ;;  %v1068_v8 = vrot.slane %v5718_v30, 1 }
 0x116   : > { %948 = vrot.lane.b32.xlu0 %v5440_v15, %s4981_s19  ;;  %1270 = vst.msk [vmem:[#allocation3 + $0x28] sm:$0xff] %vm1264_vm12, %v1227_v12 }
 0x117   : > { %1028 = vrot.lane.b32.xlu1 %v5680_v7, %s4985_s13  ;;  %v5822_v17 = vsel %vm808_vm3, %v1068_v8, %v1069_v9 }
 0x118   : > { %v1225_v42 = vpop.permute.xlu0 %1224 }
 0x119   : > { %1269 = vst.msk [vmem:[#allocation3 + $0x20] sm:$0xff] %vm1264_vm12, %v1225_v42  ;;  %v1296_v18 = vpop.permute.xlu1 %1295  ;;  %v4855_v42 = vld [vmem:[%s6655_s4 + $0x90] sm:$0xff]  }
 0x11a   : > { %1026 = vrot.lane.b32.xlu0 %v5645_v47, %s4985_s13  ;;  %1339 = vst.msk [vmem:[#allocation3 + $0x28] sm:$0xff] %vm1333_vm13, %v1296_v18  ;;  %v4844_v47 = vld [vmem:[%s6655_s4 + $0x50] sm:$0xff]   ;;  %4329 = vmatpush3.bf16.msra.mxu0 %v4855_v42  ;;  %v1209_v18 = vrot.slane %v1207_v11, 1 }
 0x11b   : > { %1097 = vrot.lane.b32.xlu1 %v5691_v13, %s4984_s29  ;;  %4216 = vmatprep.subr.bf16.mxu1 %v4844_v47 }
 0x11c   : > { %v1294_v15 = vpop.permute.xlu0 %1293  ;;  %4217 = vmatpush3.bf16.msra.mxu1 %v4846_v51  ;;  %4330 = vmatprep.subr.bf16.mxu0 %v4857_v31 }
 0x11d   : > { %1338 = vst.msk [vmem:[#allocation3 + $0x20] sm:$0xff] %vm1333_vm13, %v1294_v15  ;;  %v726_v22 = vpop.permute.xlu1 %725  ;;  %4218 = vmatprep.subr.bf16.mxu1 %v4848_v58  ;;  %v1212_v15 = vshll.u32 %v5800_v10, 16 }
 0x11e   : > { %1095 = vrot.lane.b32.xlu0 %v850_v54, %s4984_s29  ;;  %767 = vst.msk [vmem:[#allocation3 + $0x38] sm:$0xff] %vm759_vm6, %v726_v22  ;;  %v4859_v22 = vld [vmem:[%s6655_s4 + $0x98] sm:$0xff]  }
 0x11f   : > { %1164 = vrot.lane.b32.xlu1 %v5486_v53, %s4982_s20  ;;  %4331 = vmatpush3.bf16.msra.mxu0 %v4859_v22  ;;  %v1214_v28 = vrot.slane %v1212_v15, 1 }
 0x120   : > { %v724_v23 = vpop.permute.xlu0 %723  ;;  %4219 = vmatpush3.bf16.msra.mxu1 %v4850_v60 }
 0x121   : > { %766 = vst.msk [vmem:[#allocation3 + $0x30] sm:$0xff] %vm759_vm6, %v724_v23  ;;  %v872_v29 = vpop.permute.xlu1 %871  ;;  %v1355_v32 = vld [vmem:[#allocation3 + $0x28] sm:$0xff]  ;;  %4220 = vmatprep.subr.bf16.mxu1 %v4852_v3  ;;  %v4860_v23 = vld [vmem:[%s6655_s4 + $0x70] sm:$0xff]  }
 0x122   : > { %1162 = vrot.lane.b32.xlu0 %v5465_v35, %s4982_s20  ;;  %913 = vst.msk [vmem:[#allocation3 + $0x38] sm:$0xff] %vm905_vm7, %v872_v29  ;;  %v5724_v35 = vsel %vm808_vm3, %v854_v25, %v855_v26  ;;  %v4862_v25 = vld [vmem:[%s6655_s4 + $0x30] sm:$0xff]  }
 0x123   : > { %1242 = vrot.lane.b32.xlu1 %v5706_v24, %s4986_s14 }
 0x124   : > { %v870_v34 = vpop.permute.xlu0 %869  ;;  %v1354_v36 = vld [vmem:[#allocation3 + $0x20] sm:$0xff]  ;;  %4221 = vmatpush3.bf16.msra.mxu1 %v4854_v6 }
 0x125   : > { %912 = vst.msk [vmem:[#allocation3 + $0x30] sm:$0xff] %vm905_vm7, %v870_v34  ;;  %4698 = vmatprep.mubr.msk.bf16.mxu0 %vm399_vm2, %v1354_v36  ;;  %v939_v39 = vpop.permute.xlu1 %938 }
 0x126   : > { %1240 = vrot.lane.b32.xlu0 %v5680_v7, %s4986_s14  ;;  %4699 = vmatmul.mubr.msk.bf16.gmra.mrb[8].mxu0 %vm399_vm2, %v1355_v32  ;;  %980 = vst.msk [vmem:[#allocation3 + $0x38] sm:$0xff] %vm972_vm8, %v939_v39  ;;  %v4864_v32 = vld [vmem:[%s6655_s4 + $0x78] sm:$0xff]   ;;  %v4865_v39 = vld [vmem:[%s6655_s4 + $0xe8] sm:$0xff]  }
 0x127   : > { %1311 = vrot.lane.b32.xlu1 %v5724_v35, %s4987_s15 }
 0x128   : > { %v937_v45 = vpop.permute.xlu0 %936 }
 0x129   : > { %979 = vst.msk [vmem:[#allocation3 + $0x30] sm:$0xff] %vm972_vm8, %v937_v45  ;;  %v1017_v46 = vpop.permute.xlu1 %1016  ;;  %v1892_v45 = vpack.c.bf16 %v1861_v56, %v1860_v40 }
 0x12a   : > { %1309 = vrot.lane.b32.xlu0 %v5691_v13, %s4987_s15  ;;  %1058 = vst.msk [vmem:[#allocation3 + $0x38] sm:$0xff] %vm1050_vm9, %v1017_v46  ;;  %v4912_v46 = vld [vmem:[#allocation4] sm:$0xff] }
 0x12b   : > { %741 = vrot.lane.b32.xlu1 %v5706_v24, %s4983_s21  ;;  %v1828_v47 = vpack.c.bf16 %v4912_v46, %v4912_v46  ;;  %3125 = vmatprep.mubr.bf16.mxu1 %v1892_v45 }
 0x12c   : > { %v1015_v52 = vpop.permute.xlu0 %1014 }
 0x12d   : > { %1057 = vst.msk [vmem:[#allocation3 + $0x30] sm:$0xff] %vm1050_vm9, %v1015_v52  ;;  %v1086_v54 = vpop.permute.xlu1 %1085  ;;  %v4868_v52 = vld [vmem:[%s6655_s4 + $0xf0] sm:$0xff]  }
 0x12e   : > { %739 = vrot.lane.b32.xlu0 %v5680_v7, %s4983_s21  ;;  %1127 = vst.msk [vmem:[#allocation3 + $0x38] sm:$0xff] %vm1119_vm10, %v1086_v54  ;;  %v4870_v54 = vld [vmem:[%s6655_s4 + $0xf8] sm:$0xff]  }
 0x12f   : > { %887 = vrot.lane.b32.xlu1 %v5724_v35, %s4980_s18 }
 0x130   : > { %v1084_v61 = vpop.permute.xlu0 %1083 }
 0x131   : > { %1126 = vst.msk [vmem:[#allocation3 + $0x30] sm:$0xff] %vm1119_vm10, %v1084_v61  ;;  %v1153_v20 = vpop.permute.xlu1 %1152 }
 0x132   : > { %885 = vrot.lane.b32.xlu0 %v5691_v13, %s4980_s18  ;;  %1194 = vst.msk [vmem:[#allocation3 + $0x38] sm:$0xff] %vm1186_vm11, %v1153_v20  ;;  %v4856_v13 = vld [vmem:[%s6655_s4 + $0x68] sm:$0xff]  }
 0x133   : > { %954 = vrot.lane.b32.xlu1 %v5718_v30, %s4981_s19  ;;  %4222 = vmatprep.subr.bf16.mxu1 %v4856_v13 }
 0x134   : > { %v1151_v7 = vpop.permute.xlu0 %1150  ;;  %4223 = vmatpush3.bf16.msra.mxu1 %v4858_v14 }
 0x135   : > { %1193 = vst.msk [vmem:[#allocation3 + $0x30] sm:$0xff] %vm1186_vm11, %v1151_v7  ;;  %v1231_v12 = vpop.permute.xlu1 %1230  ;;  %4224 = vmatprep.subr.bf16.mxu1 %v4860_v23 }
 0x136   : > { %952 = vrot.lane.b32.xlu0 %v5486_v53, %s4981_s19  ;;  %1272 = vst.msk [vmem:[#allocation3 + $0x38] sm:$0xff] %vm1264_vm12, %v1231_v12  ;;  %v1205_v53 = vshrl.u32 %v5775_v63, 16 }
 0x137   : > { %1032 = vrot.lane.b32.xlu1 %v5793_v5, %s4985_s13 }
 0x138   : > { %v1229_v16 = vpop.permute.xlu0 %1228  ;;  %v1210_v27 = vor.u32 %v1209_v18, %v1205_v53  ;;  %4225 = vmatpush3.bf16.msra.mxu1 %v4862_v25 }
 0x139   : > { %1271 = vst.msk [vmem:[#allocation3 + $0x30] sm:$0xff] %vm1264_vm12, %v1229_v16  ;;  %v1300_v21 = vpop.permute.xlu1 %1299  ;;  %4226 = vmatprep.subr.bf16.mxu1 %v4864_v32 }
 0x13a   : > { %1030 = vrot.lane.b32.xlu0 %v5706_v24, %s4985_s13  ;;  %1341 = vst.msk [vmem:[#allocation3 + $0x38] sm:$0xff] %vm1333_vm13, %v1300_v21  ;;  %v4861_v24 = vld [vmem:[%s6655_s4 + $0xe0] sm:$0xff]   ;;  %v1215_v36 = vsel %vm518_vm4, %v1210_v27, %v1214_v28 }
 0x13b   : > { %1101 = vrot.lane.b32.xlu1 %v5822_v17, %s4984_s29  ;;  %4332 = vmatprep.subr.bf16.mxu0 %v4861_v24 }
 0x13c   : > { %v1298_v26 = vpop.permute.xlu0 %1297  ;;  %4333 = vmatpush3.bf16.msra.mxu0 %v4863_v4  ;;  %4227 = vmatpush3.bf16.msra.mxu1 %v4866_v33 }
 0x13d   : > { %1340 = vst.msk [vmem:[#allocation3 + $0x30] sm:$0xff] %vm1333_vm13, %v1298_v26  ;;  %v730_v29 = vpop.permute.xlu1 %729  ;;  %4334 = vmatprep.subr.bf16.mxu0 %v4865_v39 }
 0x13e   : > { %1099 = vrot.lane.b32.xlu0 %v5724_v35, %s4984_s29  ;;  %769 = vst.msk [vmem:[#allocation3 + $0x48] sm:$0xff] %vm759_vm6, %v730_v29  ;;  %v1282_v35 = vrot.slane %v5775_v63, 1  ;;  %s6476_s29 = scalar_lea.vmem [#allocation6], %s4088_s17 }
 0x13f   : > { %1168 = vrot.lane.b32.xlu1 %v5775_v63, %s4982_s20  ;;  %3126 = vmatmul.mubr.bf16.vlgmr.msra.gmra.mrb[0].mxu1 %v1828_v47 }
 0x140   : > { %v728_v34 = vpop.permute.xlu0 %727  ;;  %4335 = vmatpush3.bf16.msra.mxu0 %v4867_v43  ;;  %v1284_v51 = vsel %vm808_vm3, %v1282_v35, %v1283_v37 }
 0x141   : > { %768 = vst.msk [vmem:[#allocation3 + $0x40] sm:$0xff] %vm759_vm6, %v728_v34  ;;  %v876_v41 = vpop.permute.xlu1 %875  ;;  %v1357_v48 = vld [vmem:[#allocation3 + $0x38] sm:$0xff]  ;;  %4336 = vmatprep.subr.bf16.mxu0 %v4868_v52 }
 0x142   : > { %1166 = vrot.lane.b32.xlu0 %v5718_v30, %s4982_s20  ;;  %915 = vst.msk [vmem:[#allocation3 + $0x48] sm:$0xff] %vm905_vm7, %v876_v41  ;;  %s4988_s20 = smov [#allocation6]  }
 0x143   : > { %1246 = vrot.lane.b32.xlu1 %v1215_v36, %s4986_s14  ;;  %s4918_s22 = sshll.u32 %s4988_s20, 4  ;;  %s4919_s22 = int_to_ptr.vmem [resolvable:$false] %s4918_s22 }
 0x144   : > { %v874_v49 = vpop.permute.xlu0 %873  ;;  %v1356_v50 = vld [vmem:[#allocation3 + $0x30] sm:$0xff]  ;;  %4337 = vmatpush3.bf16.msra.mxu0 %v4869_v19  ;;  %s4920_s17 = scalar_lea.vmem %s4919_s22, 8192 }
 0x145   : > { %914 = vst.msk [vmem:[#allocation3 + $0x40] sm:$0xff] %vm905_vm7, %v874_v49  ;;  %4702 = vmatprep.mubr.msk.bf16.mxu0 %vm399_vm2, %v1356_v50  ;;  %v943_v30 = vpop.permute.xlu1 %942  ;;  %4338 = vmatprep.subr.bf16.mxu0 %v4870_v54 }
 0x146   : > { %1244 = vrot.lane.b32.xlu0 %v5793_v5, %s4986_s14  ;;  %4703 = vmatmul.mubr.msk.bf16.gmra.mrb[12].mxu0 %vm399_vm2, %v1357_v48  ;;  %982 = vst.msk [vmem:[#allocation3 + $0x48] sm:$0xff] %vm972_vm8, %v943_v30  ;;  %s4192_s14 = sshll.u32 %s5051_s28, 12  ;;  %s6609_s28 = scalar_lea.sflag [#allocation7], %s269_s16 }
 0x147   : > { %1315 = vrot.lane.b32.xlu1 %v1284_v51, %s4987_s15  ;;  %v4872_v51 = vld [vmem:[%s6655_s4 + $0x140] sm:$0xff]   ;;  %s6599_s19 = scalar_lea.hbm %s6658_s7, %s4192_s14 }
 0x148   : > { %v941_v55 = vpop.permute.xlu0 %940  ;;  %4339 = vmatpush3.bf16.msra.mxu0 %v4871_v57  ;;  %4436 = vmatprep.subr.bf16.mxu1 %v4872_v51  ;;  %v5969_v57 = vld [vmem:[%s6653_s2] ss:$0 sm:$0xff] }
 0x149   : > { %981 = vst.msk [vmem:[#allocation3 + $0x40] sm:$0xff] %vm972_vm8, %v941_v55  ;;  %v1021_v62 = vpop.permute.xlu1 %1020  ;;  %v4873_v55 = vld [vmem:[%s6655_s4 + $0x100] sm:$0xff]  }
 0x14a   : > { %1313 = vrot.lane.b32.xlu0 %v5822_v17, %s4987_s15  ;;  %1060 = vst.msk [vmem:[#allocation3 + $0x48] sm:$0xff] %vm1050_vm9, %v1021_v62  ;;  %4437 = vmatpush3.bf16.msra.mxu1 %v4873_v55  ;;  %s4022_s15 = sshll.u32 %s6476_s29, 4  ;;  %s6603_s15 = int_to_ptr.vmem [resolvable:$true] %s4022_s15 }
 0x14b   : > { %s4914_s9 = scalar_lea.vmem %s6603_s15, 4096  ;;  %p4921_p0 = scmp.lt.s32.totalorder %s6603_s15, %s4919_s22 }
 0x14c   : > { %v1019_v58 = vpop.permute.xlu0 %1018  ;;  %p4915_p11 = scmp.ne.s32.totalorder %s6603_s15, %s4914_s9  ;;  %p4922_p1 = scmp.lt.s32.totalorder %s4920_s17, %s4914_s9 }
 0x14d   : > { %1059 = vst.msk [vmem:[#allocation3 + $0x40] sm:$0xff] %vm1050_vm9, %v1019_v58  ;;  %v1090_v59 = vpop.permute.xlu1 %1089 }
 0x14e   : > { %1129 = vst.msk [vmem:[#allocation3 + $0x48] sm:$0xff] %vm1119_vm10, %v1090_v59  ;;  %v5975_v59 = vld [vmem:[%s6654_s3] ss:$0 sm:$0xff]  ;;  %p4916_p12 = pnand %p4915_p11, %p5068_p5  ;;  %p4923_p2 = por %p4922_p1, %p4921_p0 }
 0x150   : > { %v1088_v38 = vpop.permute.xlu0 %1087  ;;  %p4917_p13 = pneg %p4916_p12 }
 0x151   : > { %1128 = vst.msk [vmem:[#allocation3 + $0x40] sm:$0xff] %vm1119_vm10, %v1088_v38  ;;  %v1157_v60 = vpop.permute.xlu1 %1156 }
 0x152   : > { %1196 = vst.msk [vmem:[#allocation3 + $0x48] sm:$0xff] %vm1186_vm11, %v1157_v60  ;;  %p4924_p3 = pnand %p4923_p2, %p4917_p13 }
 0x154   : > { %v1155_v61 = vpop.permute.xlu0 %1154 }
 0x155   : > { %1195 = vst.msk [vmem:[#allocation3 + $0x40] sm:$0xff] %vm1186_vm11, %v1155_v61  ;;  %v1235_v63 = vpop.permute.xlu1 %1234 }
 0x156   : > { %1274 = vst.msk [vmem:[#allocation3 + $0x48] sm:$0xff] %vm1264_vm12, %v1235_v63 }
 0x158   : > { %v1233_v0 = vpop.permute.xlu0 %1232 }
 0x159   : > { %1273 = vst.msk [vmem:[#allocation3 + $0x40] sm:$0xff] %vm1264_vm12, %v1233_v0  ;;  %v1304_v20 = vpop.permute.xlu1 %1303 }
 0x15a   : > { %1343 = vst.msk [vmem:[#allocation3 + $0x48] sm:$0xff] %vm1333_vm13, %v1304_v20 }
 0x15c   : > { %v1302_v1 = vpop.permute.xlu0 %1301 }
 0x15d   : > { %1342 = vst.msk [vmem:[#allocation3 + $0x40] sm:$0xff] %vm1333_vm13, %v1302_v1  ;;  %v734_v2 = vpop.permute.xlu1 %733 }
 0x15e   : > { %771 = vst.msk [vmem:[#allocation3 + $0x58] sm:$0xff] %vm759_vm6, %v734_v2 }
 0x160   : > { %v732_v3 = vpop.permute.xlu0 %731 }
 0x161   : > { %770 = vst.msk [vmem:[#allocation3 + $0x50] sm:$0xff] %vm759_vm6, %v732_v3  ;;  %v880_v5 = vpop.permute.xlu1 %879  ;;  %v1359_v6 = vld [vmem:[#allocation3 + $0x48] sm:$0xff] }
 0x162   : > { %917 = vst.msk [vmem:[#allocation3 + $0x58] sm:$0xff] %vm905_vm7, %v880_v5 }
 0x164   : > { %v878_v7 = vpop.permute.xlu0 %877  ;;  %v1358_v8 = vld [vmem:[#allocation3 + $0x40] sm:$0xff] }
 0x165   : > { %916 = vst.msk [vmem:[#allocation3 + $0x50] sm:$0xff] %vm905_vm7, %v878_v7  ;;  %4706 = vmatprep.mubr.msk.bf16.mxu0 %vm399_vm2, %v1358_v8  ;;  %v947_v9 = vpop.permute.xlu1 %946 }
 0x166   : > { %4707 = vmatmul.mubr.msk.bf16.gmra.mrb[16].mxu0 %vm399_vm2, %v1359_v6  ;;  %984 = vst.msk [vmem:[#allocation3 + $0x58] sm:$0xff] %vm972_vm8, %v947_v9 }
 0x168   : > { %v945_v10 = vpop.permute.xlu0 %944 }
 0x169   : > { %983 = vst.msk [vmem:[#allocation3 + $0x50] sm:$0xff] %vm972_vm8, %v945_v10  ;;  %v1025_v11 = vpop.permute.xlu1 %1024 }
 0x16a   : > { %1062 = vst.msk [vmem:[#allocation3 + $0x58] sm:$0xff] %vm1050_vm9, %v1025_v11 }
 0x16c   : > { %v1023_v44 = vpop.permute.xlu0 %1022 }
 0x16d   : > { %1061 = vst.msk [vmem:[#allocation3 + $0x50] sm:$0xff] %vm1050_vm9, %v1023_v44  ;;  %v1094_v12 = vpop.permute.xlu1 %1093 }
 0x16e   : > { %1131 = vst.msk [vmem:[#allocation3 + $0x58] sm:$0xff] %vm1119_vm10, %v1094_v12 }
 0x170   : > { %v1092_v42 = vpop.permute.xlu0 %1091 }
 0x171   : > { %1130 = vst.msk [vmem:[#allocation3 + $0x50] sm:$0xff] %vm1119_vm10, %v1092_v42  ;;  %v1161_v13 = vpop.permute.xlu1 %1160 }
 0x172   : > { %1198 = vst.msk [vmem:[#allocation3 + $0x58] sm:$0xff] %vm1186_vm11, %v1161_v13 }
 0x174   : > { %v1159_v14 = vpop.permute.xlu0 %1158 }
 0x175   : > { %1197 = vst.msk [vmem:[#allocation3 + $0x50] sm:$0xff] %vm1186_vm11, %v1159_v14  ;;  %v1239_v16 = vpop.permute.xlu1 %1238  ;;  %v4874_v14 = vld [vmem:[%s6655_s4 + $0x148] sm:$0xff]  }
 0x176   : > { %1276 = vst.msk [vmem:[#allocation3 + $0x58] sm:$0xff] %vm1264_vm12, %v1239_v16  ;;  %v4875_v16 = vld [vmem:[%s6655_s4 + $0x108] sm:$0xff]   ;;  %4438 = vmatprep.subr.bf16.mxu1 %v4874_v14 }
 0x177   : > { %4439 = vmatpush3.bf16.msra.mxu1 %v4875_v16 }
 0x178   : > { %v1237_v17 = vpop.permute.xlu0 %1236 }
 0x179   : > { %1275 = vst.msk [vmem:[#allocation3 + $0x50] sm:$0xff] %vm1264_vm12, %v1237_v17  ;;  %v1308_v53 = vpop.permute.xlu1 %1307 }
 0x17a   : > { %1345 = vst.msk [vmem:[#allocation3 + $0x58] sm:$0xff] %vm1333_vm13, %v1308_v53  ;;  %v1924_v53 = vld [vmem:[#allocation4 + $0x2] sm:$0xff] }
 0x17c   : > { %v1306_v18 = vpop.permute.xlu0 %1305 }
 0x17d   : > { %1344 = vst.msk [vmem:[#allocation3 + $0x50] sm:$0xff] %vm1333_vm13, %v1306_v18  ;;  %v738_v15 = vpop.permute.xlu1 %737  ;;  %v1925_v18 = vld [vmem:[#allocation4 + $0xa] sm:$0xff] }
 0x17e   : > { %773 = vst.msk [vmem:[#allocation3 + $0x68] sm:$0xff] %vm759_vm6, %v738_v15 }
 0x180   : > { %v736_v31 = vpop.permute.xlu0 %735 }
 0x181   : > { %772 = vst.msk [vmem:[#allocation3 + $0x60] sm:$0xff] %vm759_vm6, %v736_v31  ;;  %v884_v21 = vpop.permute.xlu1 %883  ;;  %v1361_v22 = vld [vmem:[#allocation3 + $0x58] sm:$0xff] }
 0x182   : > { %919 = vst.msk [vmem:[#allocation3 + $0x68] sm:$0xff] %vm905_vm7, %v884_v21  ;;  %v1956_v21 = vpack.c.bf16 %v1925_v18, %v1924_v53 }
 0x184   : > { %v882_v23 = vpop.permute.xlu0 %881  ;;  %v1360_v25 = vld [vmem:[#allocation3 + $0x50] sm:$0xff] }
 0x185   : > { %918 = vst.msk [vmem:[#allocation3 + $0x60] sm:$0xff] %vm905_vm7, %v882_v23  ;;  %4710 = vmatprep.mubr.msk.bf16.mxu0 %vm399_vm2, %v1360_v25  ;;  %v951_v26 = vpop.permute.xlu1 %950 }
 0x186   : > { %4711 = vmatmul.mubr.msk.bf16.gmra.mrb[20].mxu0 %vm399_vm2, %v1361_v22  ;;  %986 = vst.msk [vmem:[#allocation3 + $0x68] sm:$0xff] %vm972_vm8, %v951_v26 }
 0x188   : > { %v949_v27 = vpop.permute.xlu0 %948 }
 0x189   : > { %985 = vst.msk [vmem:[#allocation3 + $0x60] sm:$0xff] %vm972_vm8, %v949_v27  ;;  %v1029_v28 = vpop.permute.xlu1 %1028  ;;  %v4876_v27 = vld [vmem:[%s6655_s4 + $0x150] sm:$0xff]  }
 0x18a   : > { %1064 = vst.msk [vmem:[#allocation3 + $0x68] sm:$0xff] %vm1050_vm9, %v1029_v28  ;;  %4440 = vmatprep.subr.bf16.mxu1 %v4876_v27  ;;  %v4887_v27 = vld [vmem:[%s6655_s4 + $0x1d0] sm:$0xff]  }
 0x18c   : > { %v1027_v24 = vpop.permute.xlu0 %1026 }
 0x18d   : > { %1063 = vst.msk [vmem:[#allocation3 + $0x60] sm:$0xff] %vm1050_vm9, %v1027_v24  ;;  %v1098_v29 = vpop.permute.xlu1 %1097 }
 0x18e   : > { %1133 = vst.msk [vmem:[#allocation3 + $0x68] sm:$0xff] %vm1119_vm10, %v1098_v29 }
 0x190   : > { %v1096_v4 = vpop.permute.xlu0 %1095 }
 0x191   : > { %1132 = vst.msk [vmem:[#allocation3 + $0x60] sm:$0xff] %vm1119_vm10, %v1096_v4  ;;  %v1165_v32 = vpop.permute.xlu1 %1164  ;;  %v4877_v4 = vld [vmem:[%s6655_s4 + $0x110] sm:$0xff]  }
 0x192   : > { %1200 = vst.msk [vmem:[#allocation3 + $0x68] sm:$0xff] %vm1186_vm11, %v1165_v32  ;;  %4441 = vmatpush3.bf16.msra.mxu1 %v4877_v4 }
 0x194   : > { %v1163_v33 = vpop.permute.xlu0 %1162 }
 0x195   : > { %1199 = vst.msk [vmem:[#allocation3 + $0x60] sm:$0xff] %vm1186_vm11, %v1163_v33  ;;  %v1243_v34 = vpop.permute.xlu1 %1242 }
 0x196   : > { %1278 = vst.msk [vmem:[#allocation3 + $0x68] sm:$0xff] %vm1264_vm12, %v1243_v34 }
 0x198   : > { %v1241_v36 = vpop.permute.xlu0 %1240 }
 0x199   : > { %1277 = vst.msk [vmem:[#allocation3 + $0x60] sm:$0xff] %vm1264_vm12, %v1241_v36  ;;  %v1312_v35 = vpop.permute.xlu1 %1311 }
 0x19a   : > { %1347 = vst.msk [vmem:[#allocation3 + $0x68] sm:$0xff] %vm1333_vm13, %v1312_v35 }
 0x19c   : > { %v1310_v37 = vpop.permute.xlu0 %1309 }
 0x19d   : > { %1346 = vst.msk [vmem:[#allocation3 + $0x60] sm:$0xff] %vm1333_vm13, %v1310_v37  ;;  %v742_v39 = vpop.permute.xlu1 %741 }
 0x19e   : > { %775 = vst.msk [vmem:[#allocation3 + $0x78] sm:$0xff] %vm759_vm6, %v742_v39 }
 0x1a0   : > { %v740_v40 = vpop.permute.xlu0 %739 }
 0x1a1   : > { %774 = vst.msk [vmem:[#allocation3 + $0x70] sm:$0xff] %vm759_vm6, %v740_v40  ;;  %v888_v56 = vpop.permute.xlu1 %887  ;;  %v1363_v41 = vld [vmem:[#allocation3 + $0x68] sm:$0xff] }
 0x1a2   : > { %921 = vst.msk [vmem:[#allocation3 + $0x78] sm:$0xff] %vm905_vm7, %v888_v56 }
 0x1a4   : > { %v886_v43 = vpop.permute.xlu0 %885  ;;  %v1362_v45 = vld [vmem:[#allocation3 + $0x60] sm:$0xff] }
 0x1a5   : > { %920 = vst.msk [vmem:[#allocation3 + $0x70] sm:$0xff] %vm905_vm7, %v886_v43  ;;  %4714 = vmatprep.mubr.msk.bf16.mxu0 %vm399_vm2, %v1362_v45  ;;  %v955_v46 = vpop.permute.xlu1 %954 }
 0x1a6   : > { %4715 = vmatmul.mubr.msk.bf16.gmra.mrb[24].mxu0 %vm399_vm2, %v1363_v41  ;;  %988 = vst.msk [vmem:[#allocation3 + $0x78] sm:$0xff] %vm972_vm8, %v955_v46 }
 0x1a8   : > { %v953_v47 = vpop.permute.xlu0 %952 }
 0x1a9   : > { %987 = vst.msk [vmem:[#allocation3 + $0x70] sm:$0xff] %vm972_vm8, %v953_v47  ;;  %v1033_v48 = vpop.permute.xlu1 %1032 }
 0x1aa   : > { %1066 = vst.msk [vmem:[#allocation3 + $0x78] sm:$0xff] %vm1050_vm9, %v1033_v48 }
 0x1ac   : > { %v1031_v49 = vpop.permute.xlu0 %1030 }
 0x1ad   : > { %1065 = vst.msk [vmem:[#allocation3 + $0x70] sm:$0xff] %vm1050_vm9, %v1031_v49  ;;  %v1102_v50 = vpop.permute.xlu1 %1101 }
 0x1ae   : > { %1135 = vst.msk [vmem:[#allocation3 + $0x78] sm:$0xff] %vm1119_vm10, %v1102_v50 }
 0x1b0   : > { %v1100_v52 = vpop.permute.xlu0 %1099 }
 0x1b1   : > { %1134 = vst.msk [vmem:[#allocation3 + $0x70] sm:$0xff] %vm1119_vm10, %v1100_v52  ;;  %v1169_v30 = vpop.permute.xlu1 %1168  ;;  %v4878_v52 = vld [vmem:[%s6655_s4 + $0x158] sm:$0xff]  }
 0x1b2   : > { %1202 = vst.msk [vmem:[#allocation3 + $0x78] sm:$0xff] %vm1186_vm11, %v1169_v30  ;;  %v4879_v30 = vld [vmem:[%s6655_s4 + $0x1c0] sm:$0xff]   ;;  %4442 = vmatprep.subr.bf16.mxu1 %v4878_v52 }
 0x1b3   : > { %4548 = vmatprep.subr.bf16.mxu0 %v4879_v30 }
 0x1b4   : > { %v1167_v19 = vpop.permute.xlu0 %1166 }
 0x1b5   : > { %1201 = vst.msk [vmem:[#allocation3 + $0x70] sm:$0xff] %vm1186_vm11, %v1167_v19  ;;  %v1247_v54 = vpop.permute.xlu1 %1246  ;;  %v4880_v19 = vld [vmem:[%s6655_s4 + $0x118] sm:$0xff]  }
 0x1b6   : > { %1280 = vst.msk [vmem:[#allocation3 + $0x78] sm:$0xff] %vm1264_vm12, %v1247_v54  ;;  %v4881_v54 = vld [vmem:[%s6655_s4 + $0x180] sm:$0xff]   ;;  %4443 = vmatpush3.bf16.msra.mxu1 %v4880_v19 }
 0x1b8   : > { %v1245_v62 = vpop.permute.xlu0 %1244 }
 0x1b9   : > { %1279 = vst.msk [vmem:[#allocation3 + $0x70] sm:$0xff] %vm1264_vm12, %v1245_v62  ;;  %v4692_v58 = vpop.f32.mrb[0].mxu0  ;;  %v1316_v38 = vpop.permute.xlu1 %1315 }
 0x1ba   : > { %v1608_v60 = vmul.f32 %v4692_v58, %v5969_v57  ;;  %v1472_v61 = vpop.f32.mrb[1].mxu0  ;;  %1349 = vst.msk [vmem:[#allocation3 + $0x78] sm:$0xff] %vm1333_vm13, %v1316_v38 }
 0x1bb   : > { %v1606_v63 = vmul.f32 %v5969_v57, %v1472_v61  ;;  %v4693_v0 = vpop.f32.mrb[2].mxu0 }
 0x1bc   : > { %v1647_v20 = vadd.f32 %v5975_v59, %v1608_v60  ;;  %v1609_v1 = vmul.f32 %v4693_v0, %v5969_v57  ;;  %v1314_v2 = vpop.permute.xlu0 %1313  ;;  %v1475_v3 = vpop.f32.mrb[3].mxu0 }
 0x1bd   : > { %v1645_v5 = vadd.f32 %v5975_v59, %v1606_v63  ;;  %1348 = vst.msk [vmem:[#allocation3 + $0x70] sm:$0xff] %vm1333_vm13, %v1314_v2  ;;  %v1607_v6 = vmul.f32 %v5969_v57, %v1475_v3  ;;  %v4883_v2 = vld [vmem:[%s6655_s4 + $0x1c8] sm:$0xff]  }
 0x1be   : > { %v1679_v7 = vmax.f32 %v1647_v20, 0.0  ;;  %v1648_v8 = vadd.f32 %v5975_v59, %v1609_v1  ;;  %v4882_v1 = vld [vmem:[%s6655_s4 + $0x160] sm:$0xff]  }
 0x1bf   : > { %v1677_v9 = vmax.f32 %v1645_v5, 0.0  ;;  %v1646_v10 = vadd.f32 %v5975_v59, %v1607_v6  ;;  %4444 = vmatprep.subr.bf16.mxu1 %v4882_v1 }
 0x1c0   : > { %1766 = vst [vmem:[#allocation4 + $0x31] sm:$0xff] %v1679_v7  ;;  %v1680_v11 = vmax.f32 %v1648_v8, 0.0  ;;  %v4885_v8 = vld [vmem:[%s6655_s4 + $0x188] sm:$0xff]  }
 0x1c1   : > { %1764 = vst [vmem:[#allocation4 + $0x19] sm:$0xff] %v1677_v9  ;;  %v1678_v44 = vmax.f32 %v1646_v10, 0.0  ;;  %v1365_v42 = vld [vmem:[#allocation3 + $0x78] sm:$0xff] }
 0x1c2   : > { %1767 = vst [vmem:[#allocation4 + $0x39] sm:$0xff] %v1680_v11  ;;  %v1894_v12 = vpack.c.bf16 %v1680_v11, %v1679_v7  ;;  %v4884_v7 = vld [vmem:[%s6655_s4 + $0x120] sm:$0xff]  }
 0x1c3   : > { %1765 = vst [vmem:[#allocation4 + $0x21] sm:$0xff] %v1678_v44  ;;  %v1893_v13 = vpack.c.bf16 %v1678_v44, %v1677_v9  ;;  %4445 = vmatpush3.bf16.msra.mxu1 %v4884_v7 }
 0x1c4   : > { %v1364_v17 = vld [vmem:[#allocation3 + $0x70] sm:$0xff] }
 0x1c5   : > { %4718 = vmatprep.mubr.msk.bf16.mxu0 %vm399_vm2, %v1364_v17  ;;  %3133 = vmatprep.mubr.bf16.mxu1 %v1893_v13 }
 0x1c6   : > { %4719 = vmatmul.mubr.msk.bf16.gmra.mrb[28].mxu0 %vm399_vm2, %v1365_v42 }
 0x1c7   : > { %v1990_v25 = vld [vmem:[#allocation4 + $0x30] sm:$0xff] }
 0x1c8   : > { %v1988_v15 = vld [vmem:[#allocation4 + $0x18] sm:$0xff] }
 0x1c9   : > { %v1991_v22 = vld [vmem:[#allocation4 + $0x38] sm:$0xff] }
 0x1ca   : > { %v1989_v31 = vld [vmem:[#allocation4 + $0x20] sm:$0xff]  ;;  %v2021_v26 = vpack.c.bf16 %v1991_v22, %v1990_v25  ;;  %v1928_v55 = vld [vmem:[#allocation4 + $0x32] sm:$0xff] }
 0x1cb   : > { %v2020_v23 = vpack.c.bf16 %v1989_v31, %v1988_v15  ;;  %v1926_v28 = vld [vmem:[#allocation4 + $0x1a] sm:$0xff]  ;;  %v1927_v24 = vld [vmem:[#allocation4 + $0x22] sm:$0xff] }
 0x1cc   : > { %v5998_v29 = vpack.c.bf16 %v1927_v24, %v1926_v28  ;;  %v1929_v62 = vld [vmem:[#allocation4 + $0x3a] sm:$0xff] }
 0x1cd   : > { %3286 = vmatprep.mubr.bf16.mxu0 %v2020_v23  ;;  %3134 = vmatmul.mubr.bf16.gmra.mrb[4].mxu1 %v2020_v23  ;;  %v6024_v63 = vpack.c.bf16 %v1929_v62, %v1928_v55  ;;  %v4888_v28 = vld [vmem:[%s6655_s4 + $0x128] sm:$0xff]   ;;  %v4889_v24 = vld [vmem:[%s6655_s4 + $0x190] sm:$0xff]  }
 0x1ce   : > { %3287 = vmatmul.mubr.bf16.vlgmr.msra.gmra.mrb[32].mxu0 %v1956_v21  ;;  %3141 = vmatprep.mubr.bf16.mxu1 %v1894_v12 }
 0x1cf   : > { %3294 = vmatprep.mubr.bf16.mxu0 %v2021_v26  ;;  %4549 = vmatpush3.bf16.msra.mxu0 %v4881_v54 }
 0x1d0   : > { %4550 = vmatprep.subr.bf16.mxu0 %v4883_v2 }
 0x1d3   : > { %4551 = vmatpush3.bf16.msra.mxu0 %v4885_v8 }
 0x1d4   : > { %4552 = vmatprep.subr.bf16.mxu0 %v4887_v27 }
 0x1d5   : > { %3142 = vmatmul.mubr.bf16.gmra.mrb[8].mxu1 %v2021_v26  ;;  %v4886_v26 = vld [vmem:[%s6655_s4 + $0x168] sm:$0xff]  }
 0x1d6   : > { %3295 = vmatmul.mubr.bf16.gmra.mrb[36].mxu0 %v5998_v29  ;;  %4446 = vmatprep.subr.bf16.mxu1 %v4886_v26  ;;  %v6116_v26 = vld [vmem:[%s6655_s4 + $0x200] sm:$0xff]  }
 0x1d7   : > { %4447 = vmatpush3.bf16.msra.mxu1 %v4888_v28  ;;  %4553 = vmatpush3.bf16.msra.mxu0 %v4889_v24 }
 0x1d9   : > { %v4696_v32 = vpop.f32.mrb[4].mxu0 }
 0x1da   : > { %v1612_v33 = vmul.f32 %v4696_v32, %v5969_v57  ;;  %v1488_v34 = vpop.f32.mrb[5].mxu0 }
 0x1db   : > { %v1610_v36 = vmul.f32 %v5969_v57, %v1488_v34  ;;  %v4697_v35 = vpop.f32.mrb[6].mxu0 }
 0x1dc   : > { %v1651_v37 = vadd.f32 %v5975_v59, %v1612_v33  ;;  %v1613_v39 = vmul.f32 %v4697_v35, %v5969_v57  ;;  %v1491_v40 = vpop.f32.mrb[7].mxu0 }
 0x1dd   : > { %v1649_v56 = vadd.f32 %v5975_v59, %v1610_v36  ;;  %v1611_v41 = vmul.f32 %v5969_v57, %v1491_v40 }
 0x1de   : > { %v1683_v43 = vmax.f32 %v1651_v37, 0.0  ;;  %v1652_v45 = vadd.f32 %v5975_v59, %v1613_v39 }
 0x1df   : > { %v1681_v46 = vmax.f32 %v1649_v56, 0.0  ;;  %v1650_v47 = vadd.f32 %v5975_v59, %v1611_v41  ;;  %v4890_v56 = vld [vmem:[%s6655_s4 + $0x170] sm:$0xff]   ;;  %v4891_v41 = vld [vmem:[%s6655_s4 + $0x1d8] sm:$0xff]  }
 0x1e0   : > { %1770 = vst [vmem:[#allocation4 + $0x61] sm:$0xff] %v1683_v43  ;;  %v1684_v48 = vmax.f32 %v1652_v45, 0.0  ;;  %4448 = vmatprep.subr.bf16.mxu1 %v4890_v56  ;;  %4554 = vmatprep.subr.bf16.mxu0 %v4891_v41 }
 0x1e1   : > { %1768 = vst [vmem:[#allocation4 + $0x49] sm:$0xff] %v1681_v46  ;;  %v1682_v49 = vmax.f32 %v1650_v47, 0.0  ;;  %v4892_v47 = vld [vmem:[%s6655_s4 + $0x130] sm:$0xff]  }
 0x1e2   : > { %1771 = vst [vmem:[#allocation4 + $0x69] sm:$0xff] %v1684_v48  ;;  %v1896_v50 = vpack.c.bf16 %v1684_v48, %v1683_v43  ;;  %v4893_v48 = vld [vmem:[%s6655_s4 + $0x198] sm:$0xff]   ;;  %4449 = vmatpush3.bf16.msra.mxu1 %v4892_v47 }
 0x1e3   : > { %1769 = vst [vmem:[#allocation4 + $0x51] sm:$0xff] %v1682_v49  ;;  %v1895_v51 = vpack.c.bf16 %v1682_v49, %v1681_v46  ;;  %4555 = vmatpush3.bf16.msra.mxu0 %v4893_v48 }
 0x1e5   : > { %3149 = vmatprep.mubr.bf16.mxu1 %v1895_v51 }
 0x1e7   : > { %v1994_v0 = vld [vmem:[#allocation4 + $0x60] sm:$0xff] }
 0x1e8   : > { %v1992_v58 = vld [vmem:[#allocation4 + $0x48] sm:$0xff] }
 0x1e9   : > { %v1995_v60 = vld [vmem:[#allocation4 + $0x68] sm:$0xff] }
 0x1ea   : > { %v1993_v38 = vld [vmem:[#allocation4 + $0x50] sm:$0xff]  ;;  %v2023_v20 = vpack.c.bf16 %v1995_v60, %v1994_v0  ;;  %v1932_v4 = vld [vmem:[#allocation4 + $0x62] sm:$0xff] }
 0x1eb   : > { %v2022_v61 = vpack.c.bf16 %v1993_v38, %v1992_v58  ;;  %v1930_v3 = vld [vmem:[#allocation4 + $0x4a] sm:$0xff]  ;;  %v1931_v5 = vld [vmem:[#allocation4 + $0x52] sm:$0xff] }
 0x1ec   : > { %v6033_v6 = vpack.c.bf16 %v1931_v5, %v1930_v3  ;;  %v1933_v32 = vld [vmem:[#allocation4 + $0x6a] sm:$0xff] }
 0x1ed   : > { %3302 = vmatprep.mubr.bf16.mxu0 %v2022_v61  ;;  %3150 = vmatmul.mubr.bf16.gmra.mrb[12].mxu1 %v2022_v61  ;;  %v6062_v37 = vpack.c.bf16 %v1933_v32, %v1932_v4  ;;  %v4901_v4 = vld [vmem:[%s6655_s4 + $0x1f0] sm:$0xff]  }
 0x1ee   : > { %3303 = vmatmul.mubr.bf16.gmra.mrb[40].mxu0 %v6024_v63  ;;  %3157 = vmatprep.mubr.bf16.mxu1 %v1896_v50  ;;  %v4902_v32 = vld [vmem:[%s6655_s4 + $0x1b0] sm:$0xff]  }
 0x1ef   : > { %3310 = vmatprep.mubr.bf16.mxu0 %v2023_v20 }
 0x1f5   : > { %3158 = vmatmul.mubr.bf16.gmra.mrb[16].mxu1 %v2023_v20 }
 0x1f6   : > { %3311 = vmatmul.mubr.bf16.gmra.mrb[44].mxu0 %v6033_v6 }
 0x1f9   : > { %v4700_v9 = vpop.f32.mrb[8].mxu0 }
 0x1fa   : > { %v1616_v10 = vmul.f32 %v4700_v9, %v5969_v57  ;;  %v1504_v11 = vpop.f32.mrb[9].mxu0 }
 0x1fb   : > { %v1614_v44 = vmul.f32 %v5969_v57, %v1504_v11  ;;  %v4701_v12 = vpop.f32.mrb[10].mxu0 }
 0x1fc   : > { %v1655_v42 = vadd.f32 %v5975_v59, %v1616_v10  ;;  %v1617_v13 = vmul.f32 %v4701_v12, %v5969_v57  ;;  %v1507_v14 = vpop.f32.mrb[11].mxu0  ;;  %v4895_v12 = vld [vmem:[%s6655_s4 + $0x1e0] sm:$0xff]  }
 0x1fd   : > { %v1653_v16 = vadd.f32 %v5975_v59, %v1614_v44  ;;  %v1615_v17 = vmul.f32 %v5969_v57, %v1507_v14  ;;  %v4894_v44 = vld [vmem:[%s6655_s4 + $0x178] sm:$0xff]   ;;  %4556 = vmatprep.subr.bf16.mxu0 %v4895_v12 }
 0x1fe   : > { %v1687_v53 = vmax.f32 %v1655_v42, 0.0  ;;  %v1656_v18 = vadd.f32 %v5975_v59, %v1617_v13  ;;  %v4896_v42 = vld [vmem:[%s6655_s4 + $0x138] sm:$0xff]   ;;  %v4897_v13 = vld [vmem:[%s6655_s4 + $0x1a0] sm:$0xff]   ;;  %4450 = vmatprep.subr.bf16.mxu1 %v4894_v44 }
 0x1ff   : > { %v1685_v15 = vmax.f32 %v1653_v16, 0.0  ;;  %v1654_v31 = vadd.f32 %v5975_v59, %v1615_v17  ;;  %4451 = vmatpush3.bf16.msra.mxu1 %v4896_v42  ;;  %4557 = vmatpush3.bf16.msra.mxu0 %v4897_v13 }
 0x200   : > { %1774 = vst [vmem:[#allocation4 + $0x91] sm:$0xff] %v1687_v53  ;;  %v1688_v21 = vmax.f32 %v1656_v18, 0.0  ;;  %4770 = vmatprep.subr.bf16.mxu1 %v6116_v26 }
 0x201   : > { %1772 = vst [vmem:[#allocation4 + $0x79] sm:$0xff] %v1685_v15  ;;  %v1686_v22 = vmax.f32 %v1654_v31, 0.0 }
 0x202   : > { %1775 = vst [vmem:[#allocation4 + $0x99] sm:$0xff] %v1688_v21  ;;  %v1898_v23 = vpack.c.bf16 %v1688_v21, %v1687_v53 }
 0x203   : > { %1773 = vst [vmem:[#allocation4 + $0x81] sm:$0xff] %v1686_v22  ;;  %v1897_v25 = vpack.c.bf16 %v1686_v22, %v1685_v15 }
 0x205   : > { %3165 = vmatprep.mubr.bf16.mxu1 %v1897_v25  ;;  %v4899_v25 = vld [vmem:[%s6655_s4 + $0x1a8] sm:$0xff]  }
 0x207   : > { %v1998_v39 = vld [vmem:[#allocation4 + $0x90] sm:$0xff] }
 0x208   : > { %v1996_v33 = vld [vmem:[#allocation4 + $0x78] sm:$0xff] }
 0x209   : > { %v1999_v36 = vld [vmem:[#allocation4 + $0x98] sm:$0xff] }
 0x20a   : > { %v1997_v34 = vld [vmem:[#allocation4 + $0x80] sm:$0xff]  ;;  %v2025_v40 = vpack.c.bf16 %v1999_v36, %v1998_v39  ;;  %v1936_v14 = vld [vmem:[#allocation4 + $0x92] sm:$0xff] }
 0x20b   : > { %v2024_v35 = vpack.c.bf16 %v1997_v34, %v1996_v33  ;;  %v1934_v43 = vld [vmem:[#allocation4 + $0x7a] sm:$0xff]  ;;  %v1935_v45 = vld [vmem:[#allocation4 + $0x82] sm:$0xff] }
 0x20c   : > { %v6071_v46 = vpack.c.bf16 %v1935_v45, %v1934_v43  ;;  %v1937_v16 = vld [vmem:[#allocation4 + $0x9a] sm:$0xff]  ;;  %v4903_v33 = vld [vmem:[%s6655_s4 + $0x1f8] sm:$0xff]  }
 0x20d   : > { %3318 = vmatprep.mubr.bf16.mxu0 %v2024_v35  ;;  %3166 = vmatmul.mubr.bf16.gmra.mrb[20].mxu1 %v2024_v35  ;;  %v6104_v31 = vpack.c.bf16 %v1937_v16, %v1936_v14  ;;  %v4904_v34 = vld [vmem:[%s6655_s4 + $0x1b8] sm:$0xff]  }
 0x20e   : > { %3319 = vmatmul.mubr.bf16.gmra.mrb[48].mxu0 %v6062_v37  ;;  %3173 = vmatprep.mubr.bf16.mxu1 %v1898_v23  ;;  %v4898_v23 = vld [vmem:[%s6655_s4 + $0x1e8] sm:$0xff]  }
 0x20f   : > { %3326 = vmatprep.mubr.bf16.mxu0 %v2025_v40  ;;  %4558 = vmatprep.subr.bf16.mxu0 %v4898_v23 }
 0x210   : > { %4559 = vmatpush3.bf16.msra.mxu0 %v4899_v25 }
 0x211   : > { %4560 = vmatprep.subr.bf16.mxu0 %v4901_v4 }
 0x212   : > { %v4228_v62 = vpop.f32.mrb[0].mxu1 }
 0x213   : > { %v4229_v60 = vpop.f32.mrb[1].mxu1 }
 0x214   : > { %v4231_v20 = vpop.f32.mrb[2].mxu1  ;;  %v6088_v10 = vadd.f32 %v4229_v60, %v4228_v62  ;;  %4561 = vmatpush3.bf16.msra.mxu0 %v4902_v32 }
 0x215   : > { %3174 = vmatmul.mubr.bf16.gmra.mrb[24].mxu1 %v2025_v40  ;;  %v4232_v3 = vpop.f32.mrb[3].mxu1  ;;  %4562 = vmatprep.subr.bf16.mxu0 %v4903_v33 }
 0x216   : > { %3327 = vmatmul.mubr.bf16.gmra.mrb[52].mxu0 %v6071_v46  ;;  %v6090_v11 = vadd.f32 %v4232_v3, %v4231_v20 }
 0x218   : > { %4563 = vmatpush3.bf16.msra.mxu0 %v4904_v34 }
 0x219   : > { %v4704_v49 = vpop.f32.mrb[12].mxu0  ;;  %4722 = vmatprep.subr.bf16.mxu0 %v6116_v26 }
 0x21a   : > { %v1620_v50 = vmul.f32 %v4704_v49, %v5969_v57  ;;  %v1520_v51 = vpop.f32.mrb[13].mxu0 }
 0x21b   : > { %v1618_v52 = vmul.f32 %v5969_v57, %v1520_v51  ;;  %v4705_v30 = vpop.f32.mrb[14].mxu0 }
 0x21c   : > { %v1659_v19 = vadd.f32 %v5975_v59, %v1620_v50  ;;  %v1621_v54 = vmul.f32 %v4705_v30, %v5969_v57  ;;  %v1523_v55 = vpop.f32.mrb[15].mxu0 }
 0x21d   : > { %v1657_v58 = vadd.f32 %v5975_v59, %v1618_v52  ;;  %v1619_v38 = vmul.f32 %v5969_v57, %v1523_v55 }
 0x21e   : > { %v1691_v61 = vmax.f32 %v1659_v19, 0.0  ;;  %v1660_v0 = vadd.f32 %v5975_v59, %v1621_v54 }
 0x21f   : > { %v1689_v1 = vmax.f32 %v1657_v58, 0.0  ;;  %v1658_v2 = vadd.f32 %v5975_v59, %v1619_v38 }
 0x220   : > { %1778 = vst [vmem:[#allocation4 + $0xc1] sm:$0xff] %v1691_v61  ;;  %v1692_v5 = vmax.f32 %v1660_v0, 0.0 }
 0x221   : > { %1776 = vst [vmem:[#allocation4 + $0xa9] sm:$0xff] %v1689_v1  ;;  %v1690_v7 = vmax.f32 %v1658_v2, 0.0 }
 0x222   : > { %1779 = vst [vmem:[#allocation4 + $0xc9] sm:$0xff] %v1692_v5  ;;  %v1900_v8 = vpack.c.bf16 %v1692_v5, %v1691_v61 }
 0x223   : > { %1777 = vst [vmem:[#allocation4 + $0xb1] sm:$0xff] %v1690_v7  ;;  %v1899_v9 = vpack.c.bf16 %v1690_v7, %v1689_v1 }
 0x225   : > { %3181 = vmatprep.mubr.bf16.mxu1 %v1899_v9 }
 0x227   : > { %v2002_v21 = vld [vmem:[#allocation4 + $0xc0] sm:$0xff] }
 0x228   : > { %v2000_v17 = vld [vmem:[#allocation4 + $0xa8] sm:$0xff] }
 0x229   : > { %v2003_v18 = vld [vmem:[#allocation4 + $0xc8] sm:$0xff] }
 0x22a   : > { %v2001_v53 = vld [vmem:[#allocation4 + $0xb0] sm:$0xff]  ;;  %v2027_v22 = vpack.c.bf16 %v2003_v18, %v2002_v21  ;;  %v1940_v62 = vld [vmem:[#allocation4 + $0xc2] sm:$0xff] }
 0x22b   : > { %v2026_v15 = vpack.c.bf16 %v2001_v53, %v2000_v17  ;;  %v1938_v27 = vld [vmem:[#allocation4 + $0xaa] sm:$0xff]  ;;  %v1939_v28 = vld [vmem:[#allocation4 + $0xb2] sm:$0xff] }
 0x22c   : > { %v6119_v24 = vpack.c.bf16 %v1939_v28, %v1938_v27  ;;  %v1941_v58 = vld [vmem:[#allocation4 + $0xca] sm:$0xff] }
 0x22d   : > { %3334 = vmatprep.mubr.bf16.mxu0 %v2026_v15  ;;  %3182 = vmatmul.mubr.bf16.gmra.mrb[28].mxu1 %v2026_v15  ;;  %v6143_v20 = vpack.c.bf16 %v1941_v58, %v1940_v62 }
 0x22e   : > { %3335 = vmatmul.mubr.bf16.gmra.mrb[56].mxu0 %v6104_v31  ;;  %3189 = vmatprep.mubr.bf16.mxu1 %v1900_v8 }
 0x22f   : > { %3342 = vmatprep.mubr.bf16.mxu0 %v2027_v22 }
 0x235   : > { %3190 = vmatmul.mubr.bf16.gmra.mrb[32].mxu1 %v2027_v22 }
 0x236   : > { %3343 = vmatmul.mubr.bf16.gmra.mrb[60].mxu0 %v6119_v24 }
 0x239   : > { %v4708_v36 = vpop.f32.mrb[16].mxu0 }
 0x23a   : > { %v1624_v35 = vmul.f32 %v4708_v36, %v5969_v57  ;;  %v1536_v39 = vpop.f32.mrb[17].mxu0 }
 0x23b   : > { %v1622_v40 = vmul.f32 %v5969_v57, %v1536_v39  ;;  %v4709_v56 = vpop.f32.mrb[18].mxu0 }
 0x23c   : > { %v1663_v41 = vadd.f32 %v5975_v59, %v1624_v35  ;;  %v1625_v43 = vmul.f32 %v4709_v56, %v5969_v57  ;;  %v1539_v45 = vpop.f32.mrb[19].mxu0 }
 0x23d   : > { %v1661_v47 = vadd.f32 %v5975_v59, %v1622_v40  ;;  %v1623_v48 = vmul.f32 %v5969_v57, %v1539_v45 }
 0x23e   : > { %v1695_v49 = vmax.f32 %v1663_v41, 0.0  ;;  %v1664_v50 = vadd.f32 %v5975_v59, %v1625_v43 }
 0x23f   : > { %v1693_v51 = vmax.f32 %v1661_v47, 0.0  ;;  %v1662_v52 = vadd.f32 %v5975_v59, %v1623_v48 }
 0x240   : > { %1782 = vst [vmem:[#allocation4 + $0xf1] sm:$0xff] %v1695_v49  ;;  %v1696_v30 = vmax.f32 %v1664_v50, 0.0 }
 0x241   : > { %1780 = vst [vmem:[#allocation4 + $0xd9] sm:$0xff] %v1693_v51  ;;  %v1694_v19 = vmax.f32 %v1662_v52, 0.0 }
 0x242   : > { %1783 = vst [vmem:[#allocation4 + $0xf9] sm:$0xff] %v1696_v30  ;;  %v1902_v54 = vpack.c.bf16 %v1696_v30, %v1695_v49 }
 0x243   : > { %1781 = vst [vmem:[#allocation4 + $0xe1] sm:$0xff] %v1694_v19  ;;  %v1901_v55 = vpack.c.bf16 %v1694_v19, %v1693_v51 }
 0x245   : > { %3197 = vmatprep.mubr.bf16.mxu1 %v1901_v55 }
 0x247   : > { %v2006_v1 = vld [vmem:[#allocation4 + $0xf0] sm:$0xff] }
 0x248   : > { %v2004_v38 = vld [vmem:[#allocation4 + $0xd8] sm:$0xff] }
 0x249   : > { %v2007_v61 = vld [vmem:[#allocation4 + $0xf8] sm:$0xff] }
 0x24a   : > { %v2005_v60 = vld [vmem:[#allocation4 + $0xe0] sm:$0xff]  ;;  %v2029_v2 = vpack.c.bf16 %v2007_v61, %v2006_v1  ;;  %v1944_v4 = vld [vmem:[#allocation4 + $0xf2] sm:$0xff] }
 0x24b   : > { %v2028_v0 = vpack.c.bf16 %v2005_v60, %v2004_v38  ;;  %v1942_v3 = vld [vmem:[#allocation4 + $0xda] sm:$0xff]  ;;  %v1943_v5 = vld [vmem:[#allocation4 + $0xe2] sm:$0xff] }
 0x24c   : > { %v6146_v7 = vpack.c.bf16 %v1943_v5, %v1942_v3  ;;  %v1945_v32 = vld [vmem:[#allocation4 + $0xfa] sm:$0xff] }
 0x24d   : > { %3350 = vmatprep.mubr.bf16.mxu0 %v2028_v0  ;;  %3198 = vmatmul.mubr.bf16.gmra.mrb[36].mxu1 %v2028_v0  ;;  %v6161_v39 = vpack.c.bf16 %v1945_v32, %v1944_v4 }
 0x24e   : > { %3351 = vmatmul.mubr.bf16.gmra.mrb[64].mxu0 %v6143_v20  ;;  %3205 = vmatprep.mubr.bf16.mxu1 %v1902_v54 }
 0x24f   : > { %3358 = vmatprep.mubr.bf16.mxu0 %v2029_v2 }
 0x255   : > { %3206 = vmatmul.mubr.bf16.gmra.mrb[40].mxu1 %v2029_v2 }
 0x256   : > { %3359 = vmatmul.mubr.bf16.gmra.mrb[68].mxu0 %v6146_v7 }
 0x259   : > { %v4712_v8 = vpop.f32.mrb[20].mxu0 }
 0x25a   : > { %v1628_v9 = vmul.f32 %v4712_v8, %v5969_v57  ;;  %v1552_v44 = vpop.f32.mrb[21].mxu0 }
 0x25b   : > { %v1626_v12 = vmul.f32 %v5969_v57, %v1552_v44  ;;  %v4713_v42 = vpop.f32.mrb[22].mxu0 }
 0x25c   : > { %v1667_v13 = vadd.f32 %v5975_v59, %v1628_v9  ;;  %v1629_v14 = vmul.f32 %v4713_v42, %v5969_v57  ;;  %v1555_v16 = vpop.f32.mrb[23].mxu0 }
 0x25d   : > { %v1665_v17 = vadd.f32 %v5975_v59, %v1626_v12  ;;  %v1627_v53 = vmul.f32 %v5969_v57, %v1555_v16 }
 0x25e   : > { %v1699_v18 = vmax.f32 %v1667_v13, 0.0  ;;  %v1668_v15 = vadd.f32 %v5975_v59, %v1629_v14 }
 0x25f   : > { %v1697_v21 = vmax.f32 %v1665_v17, 0.0  ;;  %v1666_v22 = vadd.f32 %v5975_v59, %v1627_v53 }
 0x260   : > { %1786 = vst [vmem:[#allocation4 + $0x121] sm:$0xff] %v1699_v18  ;;  %v1700_v23 = vmax.f32 %v1668_v15, 0.0 }
 0x261   : > { %1784 = vst [vmem:[#allocation4 + $0x109] sm:$0xff] %v1697_v21  ;;  %v6157_v25 = vmax.f32 %v1666_v22, 0.0 }
 0x262   : > { %1787 = vst [vmem:[#allocation4 + $0x129] sm:$0xff] %v1700_v23  ;;  %v1904_v27 = vpack.c.bf16 %v1700_v23, %v1699_v18 }
 0x263   : > { %1785 = vst [vmem:[#allocation4 + $0x111] sm:$0xff] %v6157_v25  ;;  %v1903_v28 = vpack.c.bf16 %v6157_v25, %v1697_v21 }
 0x265   : > { %3213 = vmatprep.mubr.bf16.mxu1 %v1903_v28 }
 0x267   : > { %v2010_v40 = vld [vmem:[#allocation4 + $0x120] sm:$0xff] }
 0x268   : > { %v2008_v33 = vld [vmem:[#allocation4 + $0x108] sm:$0xff] }
 0x269   : > { %v2011_v36 = vld [vmem:[#allocation4 + $0x128] sm:$0xff] }
 0x26a   : > { %v2009_v34 = vld [vmem:[#allocation4 + $0x110] sm:$0xff]  ;;  %v2031_v56 = vpack.c.bf16 %v2011_v36, %v2010_v40  ;;  %v1948_v3 = vld [vmem:[#allocation4 + $0x122] sm:$0xff] }
 0x26b   : > { %v2030_v35 = vpack.c.bf16 %v2009_v34, %v2008_v33  ;;  %v1946_v41 = vld [vmem:[#allocation4 + $0x10a] sm:$0xff]  ;;  %v1947_v43 = vld [vmem:[#allocation4 + $0x112] sm:$0xff] }
 0x26c   : > { %v6164_v45 = vpack.c.bf16 %v1947_v43, %v1946_v41  ;;  %v1949_v5 = vld [vmem:[#allocation4 + $0x12a] sm:$0xff] }
 0x26d   : > { %3366 = vmatprep.mubr.bf16.mxu0 %v2030_v35  ;;  %3214 = vmatmul.mubr.bf16.gmra.mrb[44].mxu1 %v2030_v35  ;;  %v6180_v42 = vpack.c.bf16 %v1949_v5, %v1948_v3 }
 0x26e   : > { %3367 = vmatmul.mubr.bf16.gmra.mrb[72].mxu0 %v6161_v39  ;;  %3221 = vmatprep.mubr.bf16.mxu1 %v1904_v27 }
 0x26f   : > { %3374 = vmatprep.mubr.bf16.mxu0 %v2031_v56 }
 0x275   : > { %3222 = vmatmul.mubr.bf16.gmra.mrb[48].mxu1 %v2031_v56 }
 0x276   : > { %3375 = vmatmul.mubr.bf16.gmra.mrb[76].mxu0 %v6164_v45 }
 0x279   : > { %v4716_v47 = vpop.f32.mrb[24].mxu0 }
 0x27a   : > { %v1632_v48 = vmul.f32 %v4716_v47, %v5969_v57  ;;  %v1568_v49 = vpop.f32.mrb[25].mxu0 }
 0x27b   : > { %v1630_v50 = vmul.f32 %v5969_v57, %v1568_v49  ;;  %v4717_v51 = vpop.f32.mrb[26].mxu0 }
 0x27c   : > { %v1671_v52 = vadd.f32 %v5975_v59, %v1632_v48  ;;  %v1633_v30 = vmul.f32 %v4717_v51, %v5969_v57  ;;  %v1571_v19 = vpop.f32.mrb[27].mxu0 }
 0x27d   : > { %v1669_v54 = vadd.f32 %v5975_v59, %v1630_v50  ;;  %v1631_v55 = vmul.f32 %v5969_v57, %v1571_v19 }
 0x27e   : > { %v1703_v62 = vmax.f32 %v1671_v52, 0.0  ;;  %v1672_v58 = vadd.f32 %v5975_v59, %v1633_v30 }
 0x27f   : > { %v1701_v38 = vmax.f32 %v1669_v54, 0.0  ;;  %v1670_v60 = vadd.f32 %v5975_v59, %v1631_v55 }
 0x280   : > { %1790 = vst [vmem:[#allocation4 + $0x151] sm:$0xff] %v1703_v62  ;;  %v1704_v61 = vmax.f32 %v1672_v58, 0.0 }
 0x281   : > { %1788 = vst [vmem:[#allocation4 + $0x139] sm:$0xff] %v1701_v38  ;;  %v1702_v0 = vmax.f32 %v1670_v60, 0.0 }
 0x282   : > { %1791 = vst [vmem:[#allocation4 + $0x159] sm:$0xff] %v1704_v61  ;;  %v1906_v1 = vpack.c.bf16 %v1704_v61, %v1703_v62 }
 0x283   : > { %1789 = vst [vmem:[#allocation4 + $0x141] sm:$0xff] %v1702_v0  ;;  %v6175_v2 = vpack.c.bf16 %v1702_v0, %v1701_v38 }
 0x285   : > { %3229 = vmatprep.mubr.bf16.mxu1 %v6175_v2 }
 0x287   : > { %v2014_v13 = vld [vmem:[#allocation4 + $0x150] sm:$0xff] }
 0x288   : > { %v2012_v8 = vld [vmem:[#allocation4 + $0x138] sm:$0xff] }
 0x289   : > { %v2015_v44 = vld [vmem:[#allocation4 + $0x158] sm:$0xff] }
 0x28a   : > { %v2013_v9 = vld [vmem:[#allocation4 + $0x140] sm:$0xff]  ;;  %v6184_v14 = vpack.c.bf16 %v2015_v44, %v2014_v13 }
 0x28b   : > { %v6178_v12 = vpack.c.bf16 %v2013_v9, %v2012_v8  ;;  %v1950_v16 = vld [vmem:[#allocation4 + $0x13a] sm:$0xff]  ;;  %v1951_v17 = vld [vmem:[#allocation4 + $0x142] sm:$0xff] }
 0x28c   : > { %v6188_v53 = vpack.c.bf16 %v1951_v17, %v1950_v16  ;;  %v1953_v3 = vld [vmem:[#allocation4 + $0x15a] sm:$0xff] }
 0x28d   : > { %3382 = vmatprep.mubr.bf16.mxu0 %v6178_v12  ;;  %3230 = vmatmul.mubr.bf16.gmra.mrb[52].mxu1 %v6178_v12 }
 0x28e   : > { %3383 = vmatmul.mubr.bf16.gmra.mrb[80].mxu0 %v6180_v42  ;;  %3237 = vmatprep.mubr.bf16.mxu1 %v1906_v1  ;;  %v1952_v1 = vld [vmem:[#allocation4 + $0x152] sm:$0xff] }
 0x28f   : > { %3390 = vmatprep.mubr.bf16.mxu0 %v6184_v14 }
 0x295   : > { %3238 = vmatmul.mubr.bf16.gmra.mrb[56].mxu1 %v6184_v14 }
 0x296   : > { %3391 = vmatmul.mubr.bf16.gmra.mrb[84].mxu0 %v6188_v53 }
 0x299   : > { %v4720_v18 = vpop.f32.mrb[28].mxu0 }
 0x29a   : > { %v1636_v15 = vmul.f32 %v4720_v18, %v5969_v57  ;;  %v1584_v21 = vpop.f32.mrb[29].mxu0 }
 0x29b   : > { %v1634_v22 = vmul.f32 %v5969_v57, %v1584_v21  ;;  %v4721_v23 = vpop.f32.mrb[30].mxu0 }
 0x29c   : > { %v1675_v27 = vadd.f32 %v5975_v59, %v1636_v15  ;;  %v1637_v28 = vmul.f32 %v4721_v23, %v5969_v57  ;;  %v1587_v4 = vpop.f32.mrb[31].mxu0 }
 0x29d   : > { %v1673_v32 = vadd.f32 %v5975_v59, %v1634_v22  ;;  %v1635_v33 = vmul.f32 %v5969_v57, %v1587_v4  ;;  %v6221_v22 = vpack.c.bf16 %v1953_v3, %v1952_v1 }
 0x29e   : > { %v1707_v34 = vmax.f32 %v1675_v27, 0.0  ;;  %v1676_v36 = vadd.f32 %v5975_v59, %v1637_v28 }
 0x29f   : > { %v1705_v35 = vmax.f32 %v1673_v32, 0.0  ;;  %v1674_v40 = vadd.f32 %v5975_v59, %v1635_v33  ;;  %v2053_v33 = vld [vmem:[#allocation4 + $0x21] sm:$0xff] }
 0x2a0   : > { %1794 = vst [vmem:[#allocation4 + $0x181] sm:$0xff] %v1707_v34  ;;  %v6200_v56 = vmax.f32 %v1676_v36, 0.0  ;;  %v4234_v41 = vpop.f32.mrb[4].mxu1 }
 0x2a1   : > { %1792 = vst [vmem:[#allocation4 + $0x169] sm:$0xff] %v1705_v35  ;;  %v1706_v43 = vmax.f32 %v1674_v40, 0.0  ;;  %v4235_v47 = vpop.f32.mrb[5].mxu1  ;;  %v4340_v48 = vpop.f32.mrb[32].mxu0  ;;  %v2246_v40 = vld [vmem:[#allocation4 + $0x39] sm:$0xff] }
 0x2a2   : > { %1795 = vst [vmem:[#allocation4 + $0x189] sm:$0xff] %v6200_v56  ;;  %v4236_v49 = vadd.f32 %v4235_v47, %v4234_v41  ;;  %v4237_v50 = vpop.f32.mrb[6].mxu1  ;;  %v4341_v51 = vpop.f32.mrb[33].mxu0  ;;  %v6204_v57 = vpack.c.bf16 %v6200_v56, %v1707_v34  ;;  %v2245_v47 = vld [vmem:[#allocation4 + $0x31] sm:$0xff] }
 0x2a3   : > { %1793 = vst [vmem:[#allocation4 + $0x171] sm:$0xff] %v1706_v43  ;;  %v4238_v52 = vpop.f32.mrb[7].mxu1  ;;  %v4342_v30 = vadd.f32 %v4341_v51, %v4340_v48  ;;  %v4343_v59 = vpop.f32.mrb[34].mxu0  ;;  %v6206_v19 = vpack.c.bf16 %v1706_v43, %v1705_v35  ;;  %v2052_v35 = vld [vmem:[#allocation4 + $0x19] sm:$0xff]  ;;  %v2248_v51 = vld [vmem:[#allocation4 + $0x51] sm:$0xff] }
 0x2a4   : > { %v4239_v54 = vadd.f32 %v4238_v52, %v4237_v50  ;;  %v4344_v55 = vpop.f32.mrb[35].mxu0  ;;  %v2084_v41 = vpack.c.bf16 %v2053_v33, %v2052_v35  ;;  %v4905_v48 = vld [vmem:[%s6655_s4 + $0x208] sm:$0xff]   ;;  %v2181_v52 = vld [vmem:[#allocation4 + $0x30] sm:$0xff] }
 0x2a5   : > { %v6209_v62 = vadd.f32 %v4342_v30, %v6088_v10  ;;  %v4345_v58 = vadd.f32 %v4344_v55, %v4343_v59  ;;  %3245 = vmatprep.mubr.bf16.mxu1 %v6206_v19  ;;  %v2182_v50 = vld [vmem:[#allocation4 + $0x38] sm:$0xff]  ;;  %v2247_v59 = vld [vmem:[#allocation4 + $0x49] sm:$0xff] }
 0x2a6   : > { %v2213_v30 = vpack.c.bf16 %v2182_v50, %v2181_v52  ;;  %v2278_v55 = vpack.c.bf16 %v2248_v51, %v2247_v59  ;;  %v2185_v52 = vld [vmem:[#allocation4 + $0x60] sm:$0xff] }
 0x2a7   : > { %v6213_v38 = vadd.f32 %v4345_v58, %v6090_v11  ;;  %v2018_v23 = vld [vmem:[#allocation4 + $0x180] sm:$0xff]  ;;  %v6253_v58 = vld [vmem:[%s6655_s4 + $0x220] sm:$0xff]  }
 0x2a8   : > { %v4240_v60 = vpop.f32.mrb[8].mxu1  ;;  %v2016_v44 = vld [vmem:[#allocation4 + $0x168] sm:$0xff] }
 0x2a9   : > { %v4346_v61 = vpop.f32.mrb[36].mxu0  ;;  %v4241_v0 = vpop.f32.mrb[9].mxu1  ;;  %v2019_v16 = vld [vmem:[#allocation4 + $0x188] sm:$0xff] }
 0x2aa   : > { %v6215_v5 = vadd.f32 %v4241_v0, %v4240_v60  ;;  %v4347_v8 = vpop.f32.mrb[37].mxu0  ;;  %v4243_v9 = vpop.f32.mrb[10].mxu1  ;;  %v2017_v13 = vld [vmem:[#allocation4 + $0x170] sm:$0xff]  ;;  %v6227_v4 = vpack.c.bf16 %v2019_v16, %v2018_v23  ;;  %v2183_v16 = vld [vmem:[#allocation4 + $0x48] sm:$0xff] }
 0x2ab   : > { %v4348_v10 = vadd.f32 %v4347_v8, %v4346_v61  ;;  %v4349_v17 = vpop.f32.mrb[38].mxu0  ;;  %v4244_v18 = vpop.f32.mrb[11].mxu1  ;;  %v6217_v15 = vpack.c.bf16 %v2017_v13, %v2016_v44  ;;  %v1954_v34 = vld [vmem:[#allocation4 + $0x16a] sm:$0xff]  ;;  %v1955_v36 = vld [vmem:[#allocation4 + $0x172] sm:$0xff] }
 0x2ac   : > { %v6219_v21 = vadd.f32 %v4244_v18, %v4243_v9  ;;  %v4350_v11 = vpop.f32.mrb[39].mxu0  ;;  %v6234_v43 = vpack.c.bf16 %v1955_v36, %v1954_v34  ;;  %v2184_v0 = vld [vmem:[#allocation4 + $0x50] sm:$0xff]  ;;  %v2249_v18 = vld [vmem:[#allocation4 + $0x61] sm:$0xff] }
 0x2ad   : > { %v6223_v27 = vadd.f32 %v4348_v10, %v4236_v49  ;;  %v4351_v28 = vadd.f32 %v4350_v11, %v4349_v17  ;;  %3398 = vmatprep.mubr.bf16.mxu0 %v6217_v15  ;;  %3246 = vmatmul.mubr.bf16.gmra.mrb[60].mxu1 %v6217_v15  ;;  %v2277_v49 = vpack.c.bf16 %v2246_v40, %v2245_v47  ;;  %v2250_v9 = vld [vmem:[#allocation4 + $0x69] sm:$0xff]  ;;  %v4909_v11 = vld [vmem:[%s6655_s4 + $0x228] sm:$0xff]  }
 0x2ae   : > { %3399 = vmatmul.mubr.bf16.gmra.mrb[88].mxu0 %v6221_v22  ;;  %3447 = vmatprep.mubr.bf16.mxu1 %v5998_v29  ;;  %v4906_v29 = vld [vmem:[%s6655_s4 + $0x210] sm:$0xff]   ;;  %v2214_v17 = vpack.c.bf16 %v2184_v0, %v2183_v16  ;;  %v2279_v33 = vpack.c.bf16 %v2250_v9, %v2249_v18 }
 0x2af   : > { %v6231_v32 = vadd.f32 %v4351_v28, %v4239_v54  ;;  %3406 = vmatprep.mubr.bf16.mxu0 %v6227_v4  ;;  %v4907_v54 = vld [vmem:[%s6655_s4 + $0x218] sm:$0xff]  }
 0x2b5   : > { %3448 = vmatmul.mubr.bf16.vlgmr.msra.gmra.mrb[64].mxu1 %v2084_v41  ;;  %v2186_v41 = vld [vmem:[#allocation4 + $0x68] sm:$0xff] }
 0x2b6   : > { %3407 = vmatmul.mubr.bf16.gmra.mrb[92].mxu0 %v6234_v43  ;;  %4778 = vmatpush3.bf16.msra.mxu1 %v6116_v26  ;;  %v2215_v59 = vpack.c.bf16 %v2186_v41, %v2185_v52 }
 0x2b7   : > { %3455 = vmatprep.mubr.bf16.mxu1 %v6024_v63  ;;  %3608 = vmatprep.mubr.bf16.mxu0 %v2277_v49 }
 0x2b8   : > { %4771 = vmatprep.subr.bf16.mxu1 %v4905_v48 }
 0x2ba   : > { %4779 = vmatpush3.bf16.msra.mxu1 %v4905_v48 }
 0x2bb   : > { %4772 = vmatprep.subr.bf16.mxu1 %v4906_v29 }
 0x2bd   : > { %3456 = vmatmul.mubr.bf16.gmra.mrb[68].mxu1 %v2277_v49 }
 0x2be   : > { %3609 = vmatmul.mubr.bf16.vlgmr.msra.gmra.mrb[96].mxu0 %v2213_v30  ;;  %3463 = vmatprep.mubr.bf16.mxu1 %v6033_v6 }
 0x2bf   : > { %3616 = vmatprep.mubr.bf16.mxu0 %v2278_v55  ;;  %4780 = vmatpush3.bf16.msra.mxu1 %v4906_v29 }
 0x2c0   : > { %v4246_v63 = vpop.f32.mrb[12].mxu1  ;;  %4773 = vmatprep.subr.bf16.mxu1 %v4907_v54  ;;  %4723 = vmatpush3.bf16.msra.mxu0 %v6116_v26 }
 0x2c1   : > { %v4352_v60 = vpop.f32.mrb[40].mxu0  ;;  %v4247_v61 = vpop.f32.mrb[13].mxu1  ;;  %4724 = vmatprep.subr.bf16.mxu0 %v4905_v48 }
 0x2c2   : > { %v4248_v1 = vadd.f32 %v4247_v61, %v4246_v63  ;;  %v4353_v3 = vpop.f32.mrb[41].mxu0  ;;  %v4249_v8 = vpop.f32.mrb[14].mxu1  ;;  %v4911_v63 = vld [vmem:[%s6655_s4 + $0x238] sm:$0xff]  }
 0x2c3   : > { %v4354_v6 = vadd.f32 %v4353_v3, %v4352_v60  ;;  %v4355_v44 = vpop.f32.mrb[42].mxu0  ;;  %v4250_v13 = vpop.f32.mrb[15].mxu1  ;;  %4781 = vmatpush3.bf16.msra.mxu1 %v4907_v54 }
 0x2c4   : > { %v4251_v10 = vadd.f32 %v4250_v13, %v4249_v8  ;;  %v4356_v26 = vpop.f32.mrb[43].mxu0  ;;  %4774 = vmatprep.subr.bf16.mxu1 %v6253_v58  ;;  %4725 = vmatpush3.bf16.msra.mxu0 %v4905_v48  ;;  %v2254_v8 = vld [vmem:[#allocation4 + $0x99] sm:$0xff]  ;;  %v2256_v13 = vld [vmem:[#allocation4 + $0xb1] sm:$0xff] }
 0x2c5   : > { %v6260_v23 = vadd.f32 %v4354_v6, %v6215_v5  ;;  %v4357_v28 = vadd.f32 %v4356_v26, %v4355_v44  ;;  %3464 = vmatmul.mubr.bf16.gmra.mrb[72].mxu1 %v2278_v55  ;;  %4726 = vmatprep.subr.bf16.mxu0 %v4906_v29  ;;  %v4910_v5 = vld [vmem:[%s6655_s4 + $0x230] sm:$0xff]   ;;  %v2253_v6 = vld [vmem:[#allocation4 + $0x91] sm:$0xff] }
 0x2c6   : > { %3617 = vmatmul.mubr.bf16.gmra.mrb[100].mxu0 %v2214_v17  ;;  %3471 = vmatprep.mubr.bf16.mxu1 %v6062_v37  ;;  %v2251_v55 = vld [vmem:[#allocation4 + $0x79] sm:$0xff]  ;;  %v2281_v44 = vpack.c.bf16 %v2254_v8, %v2253_v6 }
 0x2c7   : > { %v6264_v34 = vadd.f32 %v4357_v28, %v6219_v21  ;;  %3624 = vmatprep.mubr.bf16.mxu0 %v2279_v33  ;;  %4782 = vmatpush3.bf16.msra.mxu1 %v6253_v58  ;;  %v2252_v21 = vld [vmem:[#allocation4 + $0x81] sm:$0xff]  ;;  %v2192_v28 = vld [vmem:[#allocation4 + $0xb0] sm:$0xff] }
 0x2c8   : > { %v4252_v36 = vpop.f32.mrb[16].mxu1  ;;  %4775 = vmatprep.subr.bf16.mxu1 %v4909_v11  ;;  %4727 = vmatpush3.bf16.msra.mxu0 %v4906_v29  ;;  %v2280_v0 = vpack.c.bf16 %v2252_v21, %v2251_v55 }
 0x2c9   : > { %v4358_v35 = vpop.f32.mrb[44].mxu0  ;;  %v4253_v40 = vpop.f32.mrb[17].mxu1  ;;  %4728 = vmatprep.subr.bf16.mxu0 %v4907_v54 }
 0x2ca   : > { %v6270_v47 = vadd.f32 %v4253_v40, %v4252_v36  ;;  %v4359_v37 = vpop.f32.mrb[45].mxu0  ;;  %v4255_v48 = vpop.f32.mrb[18].mxu1 }
 0x2cb   : > { %v4360_v49 = vadd.f32 %v4359_v37, %v4358_v35  ;;  %v4361_v50 = vpop.f32.mrb[46].mxu0  ;;  %v4256_v51 = vpop.f32.mrb[19].mxu1  ;;  %4783 = vmatpush3.bf16.msra.mxu1 %v4909_v11  ;;  %v2191_v37 = vld [vmem:[#allocation4 + $0xa8] sm:$0xff] }
 0x2cc   : > { %v6272_v30 = vadd.f32 %v4256_v51, %v4255_v48  ;;  %v4362_v29 = vpop.f32.mrb[47].mxu0  ;;  %4776 = vmatprep.subr.bf16.mxu1 %v4910_v5  ;;  %4729 = vmatpush3.bf16.msra.mxu0 %v4907_v54  ;;  %v2188_v54 = vld [vmem:[#allocation4 + $0x80] sm:$0xff] }
 0x2cd   : > { %v6277_v60 = vadd.f32 %v4360_v49, %v4248_v1  ;;  %v4363_v61 = vadd.f32 %v4362_v29, %v4361_v50  ;;  %3472 = vmatmul.mubr.bf16.gmra.mrb[76].mxu1 %v2279_v33  ;;  %4730 = vmatprep.subr.bf16.mxu0 %v6253_v58  ;;  %v2187_v1 = vld [vmem:[#allocation4 + $0x78] sm:$0xff]  ;;  %v2218_v49 = vpack.c.bf16 %v2192_v28, %v2191_v37  ;;  %v2257_v50 = vld [vmem:[#allocation4 + $0xc1] sm:$0xff] }
 0x2ce   : > { %3625 = vmatmul.mubr.bf16.gmra.mrb[104].mxu0 %v2215_v59  ;;  %3479 = vmatprep.mubr.bf16.mxu1 %v6071_v46  ;;  %v2216_v9 = vpack.c.bf16 %v2188_v54, %v2187_v1  ;;  %v2190_v46 = vld [vmem:[#allocation4 + $0x98] sm:$0xff]  ;;  %v2260_v1 = vld [vmem:[#allocation4 + $0xe1] sm:$0xff] }
 0x2cf   : > { %v6281_v3 = vadd.f32 %v4363_v61, %v4251_v10  ;;  %3632 = vmatprep.mubr.bf16.mxu0 %v2280_v0  ;;  %4784 = vmatpush3.bf16.msra.mxu1 %v4910_v5  ;;  %v2255_v10 = vld [vmem:[#allocation4 + $0xa9] sm:$0xff]  ;;  %v2073_v37 = vld [vmem:[#allocation4 + $0x111] sm:$0xff] }
 0x2d0   : > { %4777 = vmatprep.subr.bf16.mxu1 %v4911_v63  ;;  %4731 = vmatpush3.bf16.msra.mxu0 %v6253_v58  ;;  %v2189_v58 = vld [vmem:[#allocation4 + $0x90] sm:$0xff]  ;;  %v2282_v26 = vpack.c.bf16 %v2256_v13, %v2255_v10  ;;  %v2194_v61 = vld [vmem:[#allocation4 + $0xc8] sm:$0xff] }
 0x2d1   : > { %4732 = vmatprep.subr.bf16.mxu0 %v4909_v11  ;;  %v2217_v16 = vpack.c.bf16 %v2190_v46, %v2189_v58 }
 0x2d3   : > { %4785 = vmatpush3.bf16.msra.mxu1 %v4911_v63 }
 0x2d4   : > { %4733 = vmatpush3.bf16.msra.mxu0 %v4909_v11 }
 0x2d5   : > { %3480 = vmatmul.mubr.bf16.gmra.mrb[80].mxu1 %v2280_v0  ;;  %4734 = vmatprep.subr.bf16.mxu0 %v4910_v5 }
 0x2d6   : > { %3633 = vmatmul.mubr.bf16.gmra.mrb[108].mxu0 %v2216_v9  ;;  %3487 = vmatprep.mubr.bf16.mxu1 %v6104_v31 }
 0x2d7   : > { %3640 = vmatprep.mubr.bf16.mxu0 %v2281_v44 }
 0x2d8   : > { %4735 = vmatpush3.bf16.msra.mxu0 %v4910_v5  ;;  %v2258_v5 = vld [vmem:[#allocation4 + $0xc9] sm:$0xff] }
 0x2d9   : > { %4736 = vmatprep.subr.bf16.mxu0 %v4911_v63  ;;  %v2283_v52 = vpack.c.bf16 %v2258_v5, %v2257_v50  ;;  %v2263_v5 = vld [vmem:[#allocation4 + $0x109] sm:$0xff] }
 0x2dc   : > { %4737 = vmatpush3.bf16.msra.mxu0 %v4911_v63 }
 0x2dd   : > { %3488 = vmatmul.mubr.bf16.gmra.mrb[84].mxu1 %v2281_v44  ;;  %v2193_v44 = vld [vmem:[#allocation4 + $0xc0] sm:$0xff] }
 0x2de   : > { %3641 = vmatmul.mubr.bf16.gmra.mrb[112].mxu0 %v2217_v16  ;;  %3495 = vmatprep.mubr.bf16.mxu1 %v6119_v24  ;;  %v2219_v58 = vpack.c.bf16 %v2194_v61, %v2193_v44  ;;  %v2094_v61 = vpack.c.bf16 %v2073_v37, %v2263_v5 }
 0x2df   : > { %3648 = vmatprep.mubr.bf16.mxu0 %v2282_v26 }
 0x2e0   : > { %v4258_v17 = vpop.f32.mrb[20].mxu1 }
 0x2e1   : > { %v4364_v18 = vpop.f32.mrb[48].mxu0  ;;  %v4259_v11 = vpop.f32.mrb[21].mxu1 }
 0x2e2   : > { %v4260_v31 = vadd.f32 %v4259_v11, %v4258_v17  ;;  %v4365_v33 = vpop.f32.mrb[49].mxu0  ;;  %v4261_v36 = vpop.f32.mrb[22].mxu1  ;;  %v2196_v17 = vld [vmem:[#allocation4 + $0xe0] sm:$0xff]  ;;  %v2195_v11 = vld [vmem:[#allocation4 + $0xd8] sm:$0xff] }
 0x2e3   : > { %v4366_v35 = vadd.f32 %v4365_v33, %v4364_v18  ;;  %v4367_v40 = vpop.f32.mrb[50].mxu0  ;;  %v4262_v41 = vpop.f32.mrb[23].mxu1  ;;  %v2262_v18 = vld [vmem:[#allocation4 + $0xf9] sm:$0xff]  ;;  %v2220_v28 = vpack.c.bf16 %v2196_v17, %v2195_v11  ;;  %v2261_v33 = vld [vmem:[#allocation4 + $0xf1] sm:$0xff] }
 0x2e4   : > { %v4263_v48 = vadd.f32 %v4262_v41, %v4261_v36  ;;  %v4368_v21 = vpop.f32.mrb[51].mxu0  ;;  %v2285_v36 = vpack.c.bf16 %v2262_v18, %v2261_v33  ;;  %v2201_v33 = vld [vmem:[#allocation4 + $0x120] sm:$0xff] }
 0x2e5   : > { %v6287_v51 = vadd.f32 %v4366_v35, %v6270_v47  ;;  %v4369_v24 = vadd.f32 %v4368_v21, %v4367_v40  ;;  %3496 = vmatmul.mubr.bf16.gmra.mrb[88].mxu1 %v2282_v26  ;;  %v2197_v35 = vld [vmem:[#allocation4 + $0xf0] sm:$0xff] }
 0x2e6   : > { %3649 = vmatmul.mubr.bf16.gmra.mrb[116].mxu0 %v2218_v49  ;;  %3503 = vmatprep.mubr.bf16.mxu1 %v6143_v20  ;;  %v2259_v20 = vld [vmem:[#allocation4 + $0xd9] sm:$0xff]  ;;  %v2200_v49 = vld [vmem:[#allocation4 + $0x110] sm:$0xff] }
 0x2e7   : > { %v6291_v29 = vadd.f32 %v4369_v24, %v6272_v30  ;;  %3656 = vmatprep.mubr.bf16.mxu0 %v2283_v52  ;;  %v2284_v10 = vpack.c.bf16 %v2260_v1, %v2259_v20 }
 0x2e8   : > { %v4264_v59 = vpop.f32.mrb[24].mxu1 }
 0x2e9   : > { %v4370_v55 = vpop.f32.mrb[52].mxu0  ;;  %v4265_v63 = vpop.f32.mrb[25].mxu1 }
 0x2ea   : > { %v4266_v0 = vadd.f32 %v4265_v63, %v4264_v59  ;;  %v4371_v54 = vpop.f32.mrb[53].mxu0  ;;  %v4267_v8 = vpop.f32.mrb[26].mxu1 }
 0x2eb   : > { %v4372_v47 = vadd.f32 %v4371_v54, %v4370_v55  ;;  %v4373_v9 = vpop.f32.mrb[54].mxu0  ;;  %v4268_v6 = vpop.f32.mrb[27].mxu1  ;;  %v2199_v54 = vld [vmem:[#allocation4 + $0x108] sm:$0xff] }
 0x2ec   : > { %v4269_v46 = vadd.f32 %v4268_v6, %v4267_v8  ;;  %v4374_v13 = vpop.f32.mrb[55].mxu0  ;;  %v2222_v1 = vpack.c.bf16 %v2200_v49, %v2199_v54  ;;  %v2147_v49 = vld [vmem:[#allocation4 + $0x18a] sm:$0xff]  ;;  %v2082_v54 = vld [vmem:[#allocation4 + $0x181] sm:$0xff] }
 0x2ed   : > { %v6293_v16 = vadd.f32 %v4372_v47, %v4260_v31  ;;  %v4375_v30 = vadd.f32 %v4374_v13, %v4373_v9  ;;  %3504 = vmatmul.mubr.bf16.gmra.mrb[92].mxu1 %v2283_v52  ;;  %v2198_v31 = vld [vmem:[#allocation4 + $0xf8] sm:$0xff]  ;;  %v2266_v52 = vld [vmem:[#allocation4 + $0x129] sm:$0xff]  ;;  %v2265_v47 = vld [vmem:[#allocation4 + $0x121] sm:$0xff] }
 0x2ee   : > { %3657 = vmatmul.mubr.bf16.gmra.mrb[120].mxu0 %v2219_v58  ;;  %3511 = vmatprep.mubr.bf16.mxu1 %v6146_v7  ;;  %v2221_v40 = vpack.c.bf16 %v2198_v31, %v2197_v35  ;;  %v2286_v7 = vpack.c.bf16 %v6157_v25, %v2263_v5  ;;  %v2287_v6 = vpack.c.bf16 %v2266_v52, %v2265_v47 }
 0x2ef   : > { %v6296_v26 = vadd.f32 %v4375_v30, %v4263_v48  ;;  %3664 = vmatprep.mubr.bf16.mxu0 %v2284_v10  ;;  %v2202_v30 = vld [vmem:[#allocation4 + $0x128] sm:$0xff] }
 0x2f0   : > { %v2223_v5 = vpack.c.bf16 %v2202_v30, %v2201_v33 }
 0x2f5   : > { %3512 = vmatmul.mubr.bf16.gmra.mrb[96].mxu1 %v2284_v10 }
 0x2f6   : > { %3665 = vmatmul.mubr.bf16.gmra.mrb[124].mxu0 %v2220_v28  ;;  %3519 = vmatprep.mubr.bf16.mxu1 %v6161_v39 }
 0x2f7   : > { %3672 = vmatprep.mubr.bf16.mxu0 %v2285_v36 }
 0x2fd   : > { %3520 = vmatmul.mubr.bf16.gmra.mrb[100].mxu1 %v2285_v36 }
 0x2fe   : > { %3673 = vmatmul.mubr.bf16.gmra.mrb[128].mxu0 %v2221_v40  ;;  %3527 = vmatprep.mubr.bf16.mxu1 %v6164_v45  ;;  %v2270_v40 = vld [vmem:[#allocation4 + $0x159] sm:$0xff] }
 0x2ff   : > { %3680 = vmatprep.mubr.bf16.mxu0 %v2286_v7  ;;  %v2269_v7 = vld [vmem:[#allocation4 + $0x151] sm:$0xff] }
 0x300   : > { %v4270_v41 = vpop.f32.mrb[28].mxu1 }
 0x301   : > { %v4376_v48 = vpop.f32.mrb[56].mxu0  ;;  %v4271_v21 = vpop.f32.mrb[29].mxu1 }
 0x302   : > { %v4272_v50 = vadd.f32 %v4271_v21, %v4270_v41  ;;  %v4377_v24 = vpop.f32.mrb[57].mxu0  ;;  %v4273_v39 = vpop.f32.mrb[30].mxu1  ;;  %v2289_v41 = vpack.c.bf16 %v2270_v40, %v2269_v7  ;;  %v2146_v21 = vld [vmem:[#allocation4 + $0x182] sm:$0xff]  ;;  %v2309_v7 = vld [vmem:[#allocation4 + $0x32] sm:$0xff] }
 0x303   : > { %v4378_v59 = vadd.f32 %v4377_v24, %v4376_v48  ;;  %v4379_v55 = vpop.f32.mrb[58].mxu0  ;;  %v4274_v63 = vpop.f32.mrb[31].mxu1  ;;  %v4913_v40 = vld [vmem:[#allocation4] sm:$0xff] }
 0x304   : > { %v4275_v8 = vadd.f32 %v4274_v63, %v4273_v39  ;;  %v4380_v25 = vpop.f32.mrb[59].mxu0 }
 0x305   : > { %v6301_v45 = vadd.f32 %v4378_v59, %v4266_v0  ;;  %v4381_v9 = vadd.f32 %v4380_v25, %v4379_v55  ;;  %3528 = vmatmul.mubr.bf16.gmra.mrb[104].mxu1 %v2094_v61  ;;  %v6318_v55 = vpack.c.bf16 %v2147_v49, %v2146_v21  ;;  %v2276_v25 = vld [vmem:[#allocation4 + $0x1a1] sm:$0xff]  ;;  %v2319_v21 = vld [vmem:[#allocation4 + $0xaa] sm:$0xff]  ;;  %v2320_v49 = vld [vmem:[#allocation4 + $0xb2] sm:$0xff] }
 0x306   : > { %3681 = vmatmul.mubr.bf16.gmra.mrb[132].mxu0 %v2222_v1  ;;  %3535 = vmatprep.mubr.bf16.mxu1 %v6180_v42 }
 0x307   : > { %v6304_v44 = vadd.f32 %v4381_v9, %v4269_v46  ;;  %3688 = vmatprep.mubr.bf16.mxu0 %v2287_v6  ;;  %v2313_v9 = vld [vmem:[#allocation4 + $0x62] sm:$0xff] }
 0x308   : > { %v4276_v13 = vpop.f32.mrb[32].mxu1 }
 0x309   : > { %v4382_v58 = vpop.f32.mrb[60].mxu0  ;;  %v4277_v20 = vpop.f32.mrb[33].mxu1 }
 0x30a   : > { %v4278_v10 = vadd.f32 %v4277_v20, %v4276_v13  ;;  %v4383_v17 = vpop.f32.mrb[61].mxu0  ;;  %v4279_v18 = vpop.f32.mrb[34].mxu1 }
 0x30b   : > { %v4384_v11 = vadd.f32 %v4383_v17, %v4382_v58  ;;  %v4385_v28 = vpop.f32.mrb[62].mxu0  ;;  %v4280_v0 = vpop.f32.mrb[35].mxu1 }
 0x30c   : > { %v4281_v36 = vadd.f32 %v4280_v0, %v4279_v18  ;;  %v4386_v31 = vpop.f32.mrb[63].mxu0 }
 0x30d   : > { %v6306_v35 = vadd.f32 %v4384_v11, %v4272_v50  ;;  %v4387_v42 = vadd.f32 %v4386_v31, %v4385_v28  ;;  %3536 = vmatmul.mubr.bf16.gmra.mrb[108].mxu1 %v2287_v6  ;;  %v2314_v6 = vld [vmem:[#allocation4 + $0x6a] sm:$0xff]  ;;  %v2316_v31 = vld [vmem:[#allocation4 + $0x82] sm:$0xff] }
 0x30e   : > { %3689 = vmatmul.mubr.bf16.gmra.mrb[136].mxu0 %v2223_v5  ;;  %3543 = vmatprep.mubr.bf16.mxu1 %v6188_v53  ;;  %v2317_v5 = vld [vmem:[#allocation4 + $0x92] sm:$0xff] }
 0x30f   : > { %v6309_v46 = vadd.f32 %v4387_v42, %v4275_v8  ;;  %3696 = vmatprep.mubr.bf16.mxu0 %v6175_v2  ;;  %v2275_v8 = vld [vmem:[#allocation4 + $0x199] sm:$0xff] }
 0x310   : > { %v2292_v17 = vpack.c.bf16 %v2276_v25, %v2275_v8  ;;  %v2318_v42 = vld [vmem:[#allocation4 + $0x9a] sm:$0xff]  ;;  %v2325_v8 = vld [vmem:[#allocation4 + $0xf2] sm:$0xff] }
 0x311   : > { %v2326_v25 = vld [vmem:[#allocation4 + $0xfa] sm:$0xff] }
 0x315   : > { %3544 = vmatmul.mubr.bf16.gmra.mrb[112].mxu1 %v6175_v2 }
 0x316   : > { %3697 = vmatmul.mubr.bf16.gmra.mrb[140].mxu0 %v6178_v12  ;;  %3551 = vmatprep.mubr.bf16.mxu1 %v6221_v22 }
 0x317   : > { %3704 = vmatprep.mubr.bf16.mxu0 %v2289_v41 }
 0x31d   : > { %3552 = vmatmul.mubr.bf16.gmra.mrb[116].mxu1 %v2289_v41  ;;  %v2310_v41 = vld [vmem:[#allocation4 + $0x3a] sm:$0xff] }
 0x31e   : > { %3705 = vmatmul.mubr.bf16.gmra.mrb[144].mxu0 %v6184_v14  ;;  %3559 = vmatprep.mubr.bf16.mxu1 %v6234_v43 }
 0x31f   : > { %3712 = vmatprep.mubr.bf16.mxu0 %v6206_v19 }
 0x320   : > { %v4282_v53 = vpop.f32.mrb[36].mxu1 }
 0x321   : > { %v4388_v37 = vpop.f32.mrb[64].mxu0  ;;  %v4283_v48 = vpop.f32.mrb[37].mxu1 }
 0x322   : > { %v4284_v50 = vadd.f32 %v4283_v48, %v4282_v53  ;;  %v4389_v2 = vpop.f32.mrb[65].mxu0  ;;  %v4285_v24 = vpop.f32.mrb[38].mxu1  ;;  %v2341_v48 = vpack.c.bf16 %v2310_v41, %v2309_v7 }
 0x323   : > { %v4390_v39 = vadd.f32 %v4389_v2, %v4388_v37  ;;  %v4391_v12 = vpop.f32.mrb[66].mxu0  ;;  %v4286_v52 = vpop.f32.mrb[39].mxu1  ;;  %v2345_v37 = vpack.c.bf16 %v2318_v42, %v2317_v5  ;;  %v2321_v2 = vld [vmem:[#allocation4 + $0xc2] sm:$0xff] }
 0x324   : > { %v4287_v22 = vadd.f32 %v4286_v52, %v4285_v24  ;;  %v4392_v59 = vpop.f32.mrb[67].mxu0  ;;  %v2322_v24 = vld [vmem:[#allocation4 + $0xca] sm:$0xff] }
 0x325   : > { %v6320_v14 = vadd.f32 %v4390_v39, %v4278_v10  ;;  %v4393_v43 = vadd.f32 %v4392_v59, %v4391_v12  ;;  %3560 = vmatmul.mubr.bf16.gmra.mrb[120].mxu1 %v6206_v19  ;;  %v2099_v10 = vpack.c.bf16 %v6200_v56, %v2082_v54  ;;  %v2228_v56 = vpack.c.bf16 %v4913_v40, %v4913_v40  ;;  %v2323_v59 = vld [vmem:[#allocation4 + $0xda] sm:$0xff]  ;;  %v2329_v40 = vld [vmem:[#allocation4 + $0x122] sm:$0xff] }
 0x326   : > { %3713 = vmatmul.mubr.bf16.gmra.mrb[148].mxu0 %v6217_v15  ;;  %3567 = vmatprep.mubr.bf16.mxu1 %v6318_v55  ;;  %v2346_v39 = vpack.c.bf16 %v2320_v49, %v2319_v21  ;;  %v2347_v52 = vpack.c.bf16 %v2322_v24, %v2321_v2 }
 0x327   : > { %v6325_v63 = vadd.f32 %v4393_v43, %v4281_v36  ;;  %3720 = vmatprep.mubr.bf16.mxu0 %v6204_v57  ;;  %v2343_v57 = vpack.c.bf16 %v2314_v6, %v2313_v9  ;;  %v2315_v36 = vld [vmem:[#allocation4 + $0x7a] sm:$0xff]  ;;  %v2324_v43 = vld [vmem:[#allocation4 + $0xe2] sm:$0xff] }
 0x328   : > { %v4288_v61 = vpop.f32.mrb[40].mxu1  ;;  %v2344_v53 = vpack.c.bf16 %v2316_v31, %v2315_v36  ;;  %v2327_v36 = vld [vmem:[#allocation4 + $0x10a] sm:$0xff]  ;;  %v2328_v31 = vld [vmem:[#allocation4 + $0x112] sm:$0xff] }
 0x329   : > { %v4394_v1 = vpop.f32.mrb[68].mxu0  ;;  %v4289_v47 = vpop.f32.mrb[41].mxu1 }
 0x32a   : > { %v4290_v13 = vadd.f32 %v4289_v47, %v4288_v61  ;;  %v4395_v58 = vpop.f32.mrb[69].mxu0  ;;  %v4291_v20 = vpop.f32.mrb[42].mxu1 }
 0x32b   : > { %v4396_v19 = vadd.f32 %v4395_v58, %v4394_v1  ;;  %v4397_v30 = vpop.f32.mrb[70].mxu0  ;;  %v4292_v15 = vpop.f32.mrb[43].mxu1 }
 0x32c   : > { %v4293_v18 = vadd.f32 %v4292_v15, %v4291_v20  ;;  %v4398_v11 = vpop.f32.mrb[71].mxu0 }
 0x32d   : > { %v6329_v28 = vadd.f32 %v4396_v19, %v4284_v50  ;;  %v4399_v0 = vadd.f32 %v4398_v11, %v4397_v30  ;;  %3568 = vmatmul.mubr.bf16.gmra.mrb[124].mxu1 %v2099_v10  ;;  %v2312_v50 = vld [vmem:[#allocation4 + $0x52] sm:$0xff]  ;;  %v2348_v19 = vpack.c.bf16 %v2324_v43, %v2323_v59  ;;  %v2349_v10 = vpack.c.bf16 %v2326_v25, %v2325_v8  ;;  %v2339_v25 = vld [vmem:[#allocation4 + $0x19a] sm:$0xff] }
 0x32e   : > { %3721 = vmatmul.mubr.bf16.gmra.mrb[152].mxu0 %v6227_v4  ;;  %4742 = vmatprep.mubr.bf16.mxu1 %v2343_v57  ;;  %v2311_v4 = vld [vmem:[#allocation4 + $0x4a] sm:$0xff] }
 0x32f   : > { %v6332_v33 = vadd.f32 %v4399_v0, %v4287_v22  ;;  %3728 = vmatprep.mubr.bf16.mxu0 %v2292_v17  ;;  %v2342_v12 = vpack.c.bf16 %v2312_v50, %v2311_v4 }
 0x335   : > { %4743 = vmatmul.mubr.bf16.vlgmr.msra.gmra.mrb[128].mxu1 %v2344_v53 }
 0x336   : > { %3729 = vmatmul.mubr.bf16.gmra.mrb[156].mxu0 %v2228_v56  ;;  %4746 = vmatprep.mubr.bf16.mxu1 %v2345_v37  ;;  %v2330_v56 = vld [vmem:[#allocation4 + $0x12a] sm:$0xff] }
 0x337   : > { %4738 = vmatprep.mubr.bf16.mxu0 %v2341_v48  ;;  %v2351_v50 = vpack.c.bf16 %v2330_v56, %v2329_v40 }
 0x33d   : > { %4747 = vmatmul.mubr.bf16.gmra.mrb[132].mxu1 %v2346_v39  ;;  %v2331_v39 = vld [vmem:[#allocation4 + $0x13a] sm:$0xff] }
 0x33e   : > { %4739 = vmatmul.mubr.bf16.vlgmr.msra.gmra.mrb[160].mxu0 %v2342_v12  ;;  %4750 = vmatprep.mubr.bf16.mxu1 %v2347_v52  ;;  %v2332_v12 = vld [vmem:[#allocation4 + $0x142] sm:$0xff]  ;;  %v2333_v52 = vld [vmem:[#allocation4 + $0x152] sm:$0xff] }
 0x33f   : > { %v2352_v59 = vpack.c.bf16 %v2332_v12, %v2331_v39 }
 0x340   : > { %v4294_v22 = vpop.f32.mrb[44].mxu1 }
 0x341   : > { %v4400_v61 = vpop.f32.mrb[72].mxu0  ;;  %v4295_v54 = vpop.f32.mrb[45].mxu1 }
 0x342   : > { %v4296_v1 = vadd.f32 %v4295_v54, %v4294_v22  ;;  %v4401_v47 = vpop.f32.mrb[73].mxu0  ;;  %v4297_v9 = vpop.f32.mrb[46].mxu1  ;;  %v2334_v22 = vld [vmem:[#allocation4 + $0x15a] sm:$0xff]  ;;  %v2336_v54 = vld [vmem:[#allocation4 + $0x172] sm:$0xff] }
 0x343   : > { %v4402_v6 = vadd.f32 %v4401_v47, %v4400_v61  ;;  %v4403_v58 = vpop.f32.mrb[74].mxu0  ;;  %v4298_v20 = vpop.f32.mrb[47].mxu1  ;;  %v2353_v43 = vpack.c.bf16 %v2334_v22, %v2333_v52  ;;  %v2335_v61 = vld [vmem:[#allocation4 + $0x16a] sm:$0xff] }
 0x344   : > { %v4299_v30 = vadd.f32 %v4298_v20, %v4297_v9  ;;  %v4404_v15 = vpop.f32.mrb[75].mxu0  ;;  %v2354_v8 = vpack.c.bf16 %v2336_v54, %v2335_v61 }
 0x345   : > { %v6334_v17 = vadd.f32 %v4402_v6, %v4290_v13  ;;  %v4405_v11 = vadd.f32 %v4404_v15, %v4403_v58  ;;  %4751 = vmatmul.mubr.bf16.gmra.mrb[136].mxu1 %v2348_v19  ;;  %v2350_v13 = vpack.c.bf16 %v2328_v31, %v2327_v36 }
 0x346   : > { %4754 = vmatprep.mubr.bf16.mxu1 %v2349_v10 }
 0x347   : > { %v6336_v57 = vadd.f32 %v4405_v11, %v4293_v18 }
 0x348   : > { %v4300_v0 = vpop.f32.mrb[48].mxu1 }
 0x349   : > { %v4406_v5 = vpop.f32.mrb[76].mxu0  ;;  %v4301_v42 = vpop.f32.mrb[49].mxu1 }
 0x34a   : > { %v4302_v7 = vadd.f32 %v4301_v42, %v4300_v0  ;;  %v4407_v41 = vpop.f32.mrb[77].mxu0  ;;  %v4303_v53 = vpop.f32.mrb[50].mxu1 }
 0x34b   : > { %v4408_v37 = vadd.f32 %v4407_v41, %v4406_v5  ;;  %v4409_v48 = vpop.f32.mrb[78].mxu0  ;;  %v4304_v4 = vpop.f32.mrb[51].mxu1 }
 0x34c   : > { %v4305_v21 = vadd.f32 %v4304_v4, %v4303_v53  ;;  %v4410_v49 = vpop.f32.mrb[79].mxu0 }
 0x34d   : > { %v6338_v2 = vadd.f32 %v4408_v37, %v4296_v1  ;;  %v4411_v18 = vadd.f32 %v4410_v49, %v4409_v48  ;;  %4755 = vmatmul.mubr.bf16.gmra.mrb[140].mxu1 %v2350_v13  ;;  %v2340_v1 = vld [vmem:[#allocation4 + $0x1a2] sm:$0xff] }
 0x34e   : > { %4758 = vmatprep.mubr.bf16.mxu1 %v2351_v50  ;;  %v2356_v58 = vpack.c.bf16 %v2340_v1, %v2339_v25 }
 0x34f   : > { %v6340_v24 = vadd.f32 %v4411_v18, %v4299_v30 }
 0x355   : > { %4759 = vmatmul.mubr.bf16.gmra.mrb[144].mxu1 %v2352_v59 }
 0x356   : > { %4762 = vmatprep.mubr.bf16.mxu1 %v2353_v43 }
 0x35d   : > { %4763 = vmatmul.mubr.bf16.gmra.mrb[148].mxu1 %v2354_v8 }
 0x35e   : > { %4766 = vmatprep.mubr.bf16.mxu1 %v6318_v55 }
 0x360   : > { %v4306_v47 = vpop.f32.mrb[52].mxu1 }
 0x361   : > { %v4412_v9 = vpop.f32.mrb[80].mxu0  ;;  %v4307_v6 = vpop.f32.mrb[53].mxu1 }
 0x362   : > { %v4308_v20 = vadd.f32 %v4307_v6, %v4306_v47  ;;  %v4413_v19 = vpop.f32.mrb[81].mxu0  ;;  %v4309_v30 = vpop.f32.mrb[54].mxu1 }
 0x363   : > { %v4414_v15 = vadd.f32 %v4413_v19, %v4412_v9  ;;  %v4415_v10 = vpop.f32.mrb[82].mxu0  ;;  %v4310_v11 = vpop.f32.mrb[55].mxu1 }
 0x364   : > { %v4311_v0 = vadd.f32 %v4310_v11, %v4309_v30  ;;  %v4416_v36 = vpop.f32.mrb[83].mxu0 }
 0x365   : > { %v6343_v31 = vadd.f32 %v4414_v15, %v4302_v7  ;;  %v4417_v5 = vadd.f32 %v4416_v36, %v4415_v10  ;;  %4767 = vmatmul.mubr.bf16.gmra.mrb[152].mxu1 %v2356_v58 }
 0x367   : > { %v6345_v42 = vadd.f32 %v4417_v5, %v4305_v21 }
 0x368   : > { %v4312_v55 = vpop.f32.mrb[56].mxu1 }
 0x369   : > { %v4418_v40 = vpop.f32.mrb[84].mxu0  ;;  %v4313_v56 = vpop.f32.mrb[57].mxu1 }
 0x36a   : > { %v4314_v41 = vadd.f32 %v4313_v56, %v4312_v55  ;;  %v4419_v53 = vpop.f32.mrb[85].mxu0  ;;  %v4315_v37 = vpop.f32.mrb[58].mxu1 }
 0x36b   : > { %v4420_v48 = vadd.f32 %v4419_v53, %v4418_v40  ;;  %v4421_v4 = vpop.f32.mrb[86].mxu0  ;;  %v4316_v13 = vpop.f32.mrb[59].mxu1 }
 0x36c   : > { %v4317_v49 = vadd.f32 %v4316_v13, %v4315_v37  ;;  %v4422_v50 = vpop.f32.mrb[87].mxu0 }
 0x36d   : > { %v6347_v18 = vadd.f32 %v4420_v48, %v4308_v20  ;;  %v4423_v39 = vadd.f32 %v4422_v50, %v4421_v4 }
 0x36f   : > { %v6349_v7 = vadd.f32 %v4423_v39, %v4311_v0 }
 0x380   : > { %v4318_v12 = vpop.f32.mrb[60].mxu1 }
 0x381   : > { %v4424_v52 = vpop.f32.mrb[88].mxu0  ;;  %v4319_v21 = vpop.f32.mrb[61].mxu1 }
 0x382   : > { %v4320_v22 = vadd.f32 %v4319_v21, %v4318_v12  ;;  %v4425_v59 = vpop.f32.mrb[89].mxu0  ;;  %v4321_v43 = vpop.f32.mrb[62].mxu1 }
 0x383   : > { %v4426_v61 = vadd.f32 %v4425_v59, %v4424_v52  ;;  %v4427_v54 = vpop.f32.mrb[90].mxu0  ;;  %v4322_v8 = vpop.f32.mrb[63].mxu1 }
 0x384   : > { %v4323_v25 = vadd.f32 %v4322_v8, %v4321_v43  ;;  %v4428_v1 = vpop.f32.mrb[91].mxu0 }
 0x385   : > { %v6351_v47 = vadd.f32 %v4426_v61, %v4314_v41  ;;  %v4429_v9 = vadd.f32 %v4428_v1, %v4427_v54 }
 0x387   : > { %v6353_v6 = vadd.f32 %v4429_v9, %v4317_v49 }
 0x388   : > { %v4452_v58 = vpop.f32.mrb[64].mxu1 }
 0x389   : > { %v4430_v20 = vpop.f32.mrb[92].mxu0  ;;  %v4453_v19 = vpop.f32.mrb[65].mxu1 }
 0x38a   : > { %v4431_v30 = vpop.f32.mrb[93].mxu0  ;;  %v4454_v15 = vadd.f32 %v4453_v19, %v4452_v58  ;;  %v4455_v10 = vpop.f32.mrb[66].mxu1 }
 0x38b   : > { %v4432_v11 = vadd.f32 %v4431_v30, %v4430_v20  ;;  %v4433_v0 = vpop.f32.mrb[94].mxu0  ;;  %v4456_v36 = vpop.f32.mrb[67].mxu1 }
 0x38c   : > { %v3450_v5 = vadd.f32 %v4454_v15, %v6209_v62  ;;  %v4434_v55 = vpop.f32.mrb[95].mxu0  ;;  %v4457_v40 = vadd.f32 %v4456_v36, %v4455_v10 }
 0x38d   : > { %v6356_v56 = vadd.f32 %v4432_v11, %v4320_v22  ;;  %v4435_v41 = vadd.f32 %v4434_v55, %v4433_v0 }
 0x38e   : > { %v3453_v53 = vadd.f32 %v4457_v40, %v6213_v38 }
 0x38f   : > { %v6359_v37 = vadd.f32 %v4435_v41, %v4323_v25 }
 0x390   : > { %v4458_v48 = vpop.f32.mrb[68].mxu1 }
 0x391   : > { %v4564_v4 = vpop.f32.mrb[96].mxu0  ;;  %v4459_v13 = vpop.f32.mrb[69].mxu1 }
 0x392   : > { %v4460_v49 = vadd.f32 %v4459_v13, %v4458_v48  ;;  %v4565_v50 = vpop.f32.mrb[97].mxu0  ;;  %v4461_v39 = vpop.f32.mrb[70].mxu1 }
 0x393   : > { %v4566_v12 = vadd.f32 %v4565_v50, %v4564_v4  ;;  %v4567_v52 = vpop.f32.mrb[98].mxu0  ;;  %v4462_v21 = vpop.f32.mrb[71].mxu1 }
 0x394   : > { %v3458_v62 = vadd.f32 %v4460_v49, %v6223_v27  ;;  %v4463_v59 = vadd.f32 %v4462_v21, %v4461_v39  ;;  %v4568_v43 = vpop.f32.mrb[99].mxu0 }
 0x395   : > { %v4569_v22 = vadd.f32 %v4568_v43, %v4567_v52  ;;  %v6362_v61 = vadd.f32 %v4566_v12, %v3450_v5 }
 0x396   : > { %v3461_v38 = vadd.f32 %v4463_v59, %v6231_v32 }
 0x397   : > { %v6365_v54 = vadd.f32 %v4569_v22, %v3453_v53 }
 0x398   : > { %v4464_v8 = vpop.f32.mrb[72].mxu1 }
 0x399   : > { %v4570_v25 = vpop.f32.mrb[100].mxu0  ;;  %v4465_v1 = vpop.f32.mrb[73].mxu1 }
 0x39a   : > { %v4466_v9 = vadd.f32 %v4465_v1, %v4464_v8  ;;  %v4571_v58 = vpop.f32.mrb[101].mxu0  ;;  %v4467_v20 = vpop.f32.mrb[74].mxu1 }
 0x39b   : > { %v4572_v19 = vadd.f32 %v4571_v58, %v4570_v25  ;;  %v4573_v30 = vpop.f32.mrb[102].mxu0  ;;  %v4468_v15 = vpop.f32.mrb[75].mxu1 }
 0x39c   : > { %v3466_v27 = vadd.f32 %v4466_v9, %v6260_v23  ;;  %v4469_v10 = vadd.f32 %v4468_v15, %v4467_v20  ;;  %v4574_v11 = vpop.f32.mrb[103].mxu0 }
 0x39d   : > { %v4575_v0 = vadd.f32 %v4574_v11, %v4573_v30  ;;  %v6368_v36 = vadd.f32 %v4572_v19, %v3458_v62 }
 0x39e   : > { %v3469_v32 = vadd.f32 %v4469_v10, %v6264_v34 }
 0x39f   : > { %v6371_v5 = vadd.f32 %v4575_v0, %v3461_v38 }
 0x3a0   : > { %v4470_v55 = vpop.f32.mrb[76].mxu1 }
 0x3a1   : > { %v4576_v40 = vpop.f32.mrb[104].mxu0  ;;  %v4471_v41 = vpop.f32.mrb[77].mxu1 }
 0x3a2   : > { %v4472_v53 = vadd.f32 %v4471_v41, %v4470_v55  ;;  %v4577_v48 = vpop.f32.mrb[105].mxu0  ;;  %v4473_v4 = vpop.f32.mrb[78].mxu1 }
 0x3a3   : > { %v4578_v13 = vadd.f32 %v4577_v48, %v4576_v40  ;;  %v4579_v49 = vpop.f32.mrb[106].mxu0  ;;  %v4474_v50 = vpop.f32.mrb[79].mxu1 }
 0x3a4   : > { %v3474_v23 = vadd.f32 %v4472_v53, %v6277_v60  ;;  %v4475_v39 = vadd.f32 %v4474_v50, %v4473_v4  ;;  %v4580_v12 = vpop.f32.mrb[107].mxu0 }
 0x3a5   : > { %v4581_v52 = vadd.f32 %v4580_v12, %v4579_v49  ;;  %v6374_v21 = vadd.f32 %v4578_v13, %v3466_v27 }
 0x3a6   : > { %v3477_v34 = vadd.f32 %v4475_v39, %v6281_v3 }
 0x3a7   : > { %v6377_v62 = vadd.f32 %v4581_v52, %v3469_v32 }
 0x3a8   : > { %v4476_v59 = vpop.f32.mrb[80].mxu1 }
 0x3a9   : > { %v4582_v43 = vpop.f32.mrb[108].mxu0  ;;  %v4477_v22 = vpop.f32.mrb[81].mxu1 }
 0x3aa   : > { %v4478_v38 = vadd.f32 %v4477_v22, %v4476_v59  ;;  %v4583_v8 = vpop.f32.mrb[109].mxu0  ;;  %v4479_v25 = vpop.f32.mrb[82].mxu1 }
 0x3ab   : > { %v4584_v1 = vadd.f32 %v4583_v8, %v4582_v43  ;;  %v4585_v9 = vpop.f32.mrb[110].mxu0  ;;  %v4480_v58 = vpop.f32.mrb[83].mxu1 }
 0x3ac   : > { %v3482_v60 = vadd.f32 %v4478_v38, %v6287_v51  ;;  %v4481_v20 = vadd.f32 %v4480_v58, %v4479_v25  ;;  %v4586_v19 = vpop.f32.mrb[111].mxu0 }
 0x3ad   : > { %v4587_v30 = vadd.f32 %v4586_v19, %v4585_v9  ;;  %v6380_v15 = vadd.f32 %v4584_v1, %v3474_v23 }
 0x3ae   : > { %v3485_v3 = vadd.f32 %v4481_v20, %v6291_v29 }
 0x3af   : > { %v6383_v27 = vadd.f32 %v4587_v30, %v3477_v34 }
 0x3b0   : > { %v4482_v10 = vpop.f32.mrb[84].mxu1 }
 0x3b1   : > { %v4588_v11 = vpop.f32.mrb[112].mxu0  ;;  %v4483_v0 = vpop.f32.mrb[85].mxu1 }
 0x3b2   : > { %v4484_v32 = vadd.f32 %v4483_v0, %v4482_v10  ;;  %v4589_v55 = vpop.f32.mrb[113].mxu0  ;;  %v4485_v40 = vpop.f32.mrb[86].mxu1 }
 0x3b3   : > { %v4590_v41 = vadd.f32 %v4589_v55, %v4588_v11  ;;  %v4591_v53 = vpop.f32.mrb[114].mxu0  ;;  %v4486_v48 = vpop.f32.mrb[87].mxu1 }
 0x3b4   : > { %v3490_v51 = vadd.f32 %v4484_v32, %v6293_v16  ;;  %v4487_v4 = vadd.f32 %v4486_v48, %v4485_v40  ;;  %v4592_v13 = vpop.f32.mrb[115].mxu0 }
 0x3b5   : > { %v4593_v49 = vadd.f32 %v4592_v13, %v4591_v53  ;;  %v6386_v50 = vadd.f32 %v4590_v41, %v3482_v60 }
 0x3b6   : > { %v3493_v29 = vadd.f32 %v4487_v4, %v6296_v26 }
 0x3b7   : > { %v6389_v23 = vadd.f32 %v4593_v49, %v3485_v3 }
 0x3b8   : > { %v4488_v39 = vpop.f32.mrb[88].mxu1 }
 0x3b9   : > { %v4594_v12 = vpop.f32.mrb[116].mxu0  ;;  %v4489_v52 = vpop.f32.mrb[89].mxu1 }
 0x3ba   : > { %v4490_v34 = vadd.f32 %v4489_v52, %v4488_v39  ;;  %v4595_v59 = vpop.f32.mrb[117].mxu0  ;;  %v4491_v43 = vpop.f32.mrb[90].mxu1 }
 0x3bb   : > { %v4596_v22 = vadd.f32 %v4595_v59, %v4594_v12  ;;  %v4597_v38 = vpop.f32.mrb[118].mxu0  ;;  %v4492_v8 = vpop.f32.mrb[91].mxu1 }
 0x3bc   : > { %v3498_v16 = vadd.f32 %v4490_v34, %v6301_v45  ;;  %v4493_v25 = vadd.f32 %v4492_v8, %v4491_v43  ;;  %v4598_v1 = vpop.f32.mrb[119].mxu0 }
 0x3bd   : > { %v4599_v9 = vadd.f32 %v4598_v1, %v4597_v38  ;;  %v6392_v58 = vadd.f32 %v4596_v22, %v3490_v51 }
 0x3be   : > { %v3501_v26 = vadd.f32 %v4493_v25, %v6304_v44 }
 0x3bf   : > { %v6395_v60 = vadd.f32 %v4599_v9, %v3493_v29 }
 0x3c0   : > { %v4494_v20 = vpop.f32.mrb[92].mxu1 }
 0x3c1   : > { %v4600_v19 = vpop.f32.mrb[120].mxu0  ;;  %v4495_v30 = vpop.f32.mrb[93].mxu1 }
 0x3c2   : > { %v4496_v3 = vadd.f32 %v4495_v30, %v4494_v20  ;;  %v4601_v10 = vpop.f32.mrb[121].mxu0  ;;  %v4497_v11 = vpop.f32.mrb[94].mxu1 }
 0x3c3   : > { %v4602_v0 = vadd.f32 %v4601_v10, %v4600_v19  ;;  %v4603_v32 = vpop.f32.mrb[122].mxu0  ;;  %v4498_v55 = vpop.f32.mrb[95].mxu1 }
 0x3c4   : > { %v3506_v45 = vadd.f32 %v4496_v3, %v6306_v35  ;;  %v4499_v40 = vadd.f32 %v4498_v55, %v4497_v11  ;;  %v4604_v41 = vpop.f32.mrb[123].mxu0 }
 0x3c5   : > { %v4605_v53 = vadd.f32 %v4604_v41, %v4603_v32  ;;  %v6398_v48 = vadd.f32 %v4602_v0, %v3498_v16 }
 0x3c6   : > { %v3509_v44 = vadd.f32 %v4499_v40, %v6309_v46 }
 0x3c7   : > { %v6401_v51 = vadd.f32 %v4605_v53, %v3501_v26 }
 0x3c8   : > { %v4500_v4 = vpop.f32.mrb[96].mxu1 }
 0x3c9   : > { %v4606_v13 = vpop.f32.mrb[124].mxu0  ;;  %v4501_v49 = vpop.f32.mrb[97].mxu1 }
 0x3ca   : > { %v4502_v29 = vadd.f32 %v4501_v49, %v4500_v4  ;;  %v4607_v39 = vpop.f32.mrb[125].mxu0  ;;  %v4503_v12 = vpop.f32.mrb[98].mxu1 }
 0x3cb   : > { %v4608_v52 = vadd.f32 %v4607_v39, %v4606_v13  ;;  %v4609_v34 = vpop.f32.mrb[126].mxu0  ;;  %v4504_v59 = vpop.f32.mrb[99].mxu1 }
 0x3cc   : > { %v3514_v35 = vadd.f32 %v4502_v29, %v6320_v14  ;;  %v4505_v43 = vadd.f32 %v4504_v59, %v4503_v12  ;;  %v4610_v22 = vpop.f32.mrb[127].mxu0 }
 0x3cd   : > { %v4611_v38 = vadd.f32 %v4610_v22, %v4609_v34  ;;  %v6404_v8 = vadd.f32 %v4608_v52, %v3506_v45 }
 0x3ce   : > { %v3517_v46 = vadd.f32 %v4505_v43, %v6325_v63 }
 0x3cf   : > { %v6407_v16 = vadd.f32 %v4611_v38, %v3509_v44 }
 0x3d0   : > { %v4506_v25 = vpop.f32.mrb[100].mxu1 }
 0x3d1   : > { %v4612_v1 = vpop.f32.mrb[128].mxu0  ;;  %v4507_v9 = vpop.f32.mrb[101].mxu1 }
 0x3d2   : > { %v4508_v26 = vadd.f32 %v4507_v9, %v4506_v25  ;;  %v4613_v20 = vpop.f32.mrb[129].mxu0  ;;  %v4509_v19 = vpop.f32.mrb[102].mxu1 }
 0x3d3   : > { %v4614_v30 = vadd.f32 %v4613_v20, %v4612_v1  ;;  %v4615_v3 = vpop.f32.mrb[130].mxu0  ;;  %v4510_v10 = vpop.f32.mrb[103].mxu1 }
 0x3d4   : > { %v3522_v14 = vadd.f32 %v4508_v26, %v6329_v28  ;;  %v4511_v11 = vadd.f32 %v4510_v10, %v4509_v19  ;;  %v4616_v0 = vpop.f32.mrb[131].mxu0 }
 0x3d5   : > { %v4617_v32 = vadd.f32 %v4616_v0, %v4615_v3  ;;  %v6410_v55 = vadd.f32 %v4614_v30, %v3514_v35 }
 0x3d6   : > { %v3525_v63 = vadd.f32 %v4511_v11, %v6332_v33 }
 0x3d7   : > { %v6413_v45 = vadd.f32 %v4617_v32, %v3517_v46 }
 0x3d8   : > { %v4512_v40 = vpop.f32.mrb[104].mxu1 }
 0x3d9   : > { %v4618_v41 = vpop.f32.mrb[132].mxu0  ;;  %v4513_v53 = vpop.f32.mrb[105].mxu1 }
 0x3da   : > { %v4514_v44 = vadd.f32 %v4513_v53, %v4512_v40  ;;  %v4619_v4 = vpop.f32.mrb[133].mxu0  ;;  %v4515_v13 = vpop.f32.mrb[106].mxu1 }
 0x3db   : > { %v4620_v49 = vadd.f32 %v4619_v4, %v4618_v41  ;;  %v4621_v29 = vpop.f32.mrb[134].mxu0  ;;  %v4516_v39 = vpop.f32.mrb[107].mxu1 }
 0x3dc   : > { %v3530_v28 = vadd.f32 %v4514_v44, %v6334_v17  ;;  %v4517_v12 = vadd.f32 %v4516_v39, %v4515_v13  ;;  %v4622_v52 = vpop.f32.mrb[135].mxu0 }
 0x3dd   : > { %v4623_v34 = vadd.f32 %v4622_v52, %v4621_v29  ;;  %v6416_v59 = vadd.f32 %v4620_v49, %v3522_v14 }
 0x3de   : > { %v3533_v33 = vadd.f32 %v4517_v12, %v6336_v57 }
 0x3df   : > { %v6419_v35 = vadd.f32 %v4623_v34, %v3525_v63 }
 0x3e0   : > { %v4518_v43 = vpop.f32.mrb[108].mxu1 }
 0x3e1   : > { %v4624_v22 = vpop.f32.mrb[136].mxu0  ;;  %v4519_v38 = vpop.f32.mrb[109].mxu1 }
 0x3e2   : > { %v4520_v46 = vadd.f32 %v4519_v38, %v4518_v43  ;;  %v4625_v25 = vpop.f32.mrb[137].mxu0  ;;  %v4521_v1 = vpop.f32.mrb[110].mxu1 }
 0x3e3   : > { %v4626_v9 = vadd.f32 %v4625_v25, %v4624_v22  ;;  %v4627_v26 = vpop.f32.mrb[138].mxu0  ;;  %v4522_v20 = vpop.f32.mrb[111].mxu1 }
 0x3e4   : > { %v3538_v17 = vadd.f32 %v4520_v46, %v6338_v2  ;;  %v4523_v19 = vadd.f32 %v4522_v20, %v4521_v1  ;;  %v4628_v30 = vpop.f32.mrb[139].mxu0 }
 0x3e5   : > { %v4629_v3 = vadd.f32 %v4628_v30, %v4627_v26  ;;  %v6422_v10 = vadd.f32 %v4626_v9, %v3530_v28 }
 0x3e6   : > { %v3541_v57 = vadd.f32 %v4523_v19, %v6340_v24 }
 0x3e7   : > { %v6425_v14 = vadd.f32 %v4629_v3, %v3533_v33 }
 0x3e8   : > { %v4524_v11 = vpop.f32.mrb[112].mxu1 }
 0x3e9   : > { %v4630_v0 = vpop.f32.mrb[140].mxu0  ;;  %v4525_v32 = vpop.f32.mrb[113].mxu1 }
 0x3ea   : > { %v4526_v63 = vadd.f32 %v4525_v32, %v4524_v11  ;;  %v4631_v40 = vpop.f32.mrb[141].mxu0  ;;  %v4527_v41 = vpop.f32.mrb[114].mxu1 }
 0x3eb   : > { %v4632_v53 = vadd.f32 %v4631_v40, %v4630_v0  ;;  %v4633_v44 = vpop.f32.mrb[142].mxu0  ;;  %v4528_v4 = vpop.f32.mrb[115].mxu1 }
 0x3ec   : > { %v3546_v2 = vadd.f32 %v4526_v63, %v6343_v31  ;;  %v4529_v13 = vadd.f32 %v4528_v4, %v4527_v41  ;;  %v4634_v49 = vpop.f32.mrb[143].mxu0 }
 0x3ed   : > { %v4635_v29 = vadd.f32 %v4634_v49, %v4633_v44  ;;  %v6428_v39 = vadd.f32 %v4632_v53, %v3538_v17 }
 0x3ee   : > { %v3549_v24 = vadd.f32 %v4529_v13, %v6345_v42 }
 0x3ef   : > { %v6431_v28 = vadd.f32 %v4635_v29, %v3541_v57 }
 0x3f0   : > { %v4530_v12 = vpop.f32.mrb[116].mxu1 }
 0x3f1   : > { %v4636_v52 = vpop.f32.mrb[144].mxu0  ;;  %v4531_v34 = vpop.f32.mrb[117].mxu1 }
 0x3f2   : > { %v4532_v33 = vadd.f32 %v4531_v34, %v4530_v12  ;;  %v4637_v43 = vpop.f32.mrb[145].mxu0  ;;  %v4533_v22 = vpop.f32.mrb[118].mxu1 }
 0x3f3   : > { %v4638_v38 = vadd.f32 %v4637_v43, %v4636_v52  ;;  %v4639_v46 = vpop.f32.mrb[146].mxu0  ;;  %v4534_v25 = vpop.f32.mrb[119].mxu1 }
 0x3f4   : > { %v3554_v31 = vadd.f32 %v4532_v33, %v6347_v18  ;;  %v4535_v1 = vadd.f32 %v4534_v25, %v4533_v22  ;;  %v4640_v9 = vpop.f32.mrb[147].mxu0 }
 0x3f5   : > { %v4641_v26 = vadd.f32 %v4640_v9, %v4639_v46  ;;  %v6434_v20 = vadd.f32 %v4638_v38, %v3546_v2  ;;  %v6455_v9 = vld [vmem:[%s6656_s5] ss:$0 sm:$0xff] }
 0x3f6   : > { %v3557_v42 = vadd.f32 %v4535_v1, %v6349_v7 }
 0x3f7   : > { %v6437_v17 = vadd.f32 %v4641_v26, %v3549_v24 }
 0x3f8   : > { %v4536_v19 = vpop.f32.mrb[120].mxu1 }
 0x3f9   : > { %v4642_v30 = vpop.f32.mrb[148].mxu0  ;;  %v4537_v3 = vpop.f32.mrb[121].mxu1 }
 0x3fa   : > { %v4538_v57 = vadd.f32 %v4537_v3, %v4536_v19  ;;  %v4643_v11 = vpop.f32.mrb[149].mxu0  ;;  %v4539_v0 = vpop.f32.mrb[122].mxu1  ;;  %v6463_v19 = vld [vmem:[%s6657_s6] ss:$0 sm:$0xff] }
 0x3fb   : > { %v4644_v32 = vadd.f32 %v4643_v11, %v4642_v30  ;;  %v4645_v63 = vpop.f32.mrb[150].mxu0  ;;  %v4540_v40 = vpop.f32.mrb[123].mxu1 }
 0x3fc   : > { %v3562_v18 = vadd.f32 %v4538_v57, %v6351_v47  ;;  %v4541_v41 = vadd.f32 %v4540_v40, %v4539_v0  ;;  %v4646_v53 = vpop.f32.mrb[151].mxu0 }
 0x3fd   : > { %v4647_v44 = vadd.f32 %v4646_v53, %v4645_v63  ;;  %v6440_v4 = vadd.f32 %v4644_v32, %v3554_v31 }
 0x3fe   : > { %v3565_v7 = vadd.f32 %v4541_v41, %v6353_v6 }
 0x3ff   : > { %v6443_v2 = vadd.f32 %v4647_v44, %v3557_v42 }
 0x400   : > { %v4542_v13 = vpop.f32.mrb[124].mxu1 }
 0x401   : > { %v4648_v49 = vpop.f32.mrb[152].mxu0  ;;  %v4543_v29 = vpop.f32.mrb[125].mxu1 }
 0x402   : > { %v4544_v24 = vadd.f32 %v4543_v29, %v4542_v13  ;;  %v4649_v12 = vpop.f32.mrb[153].mxu0  ;;  %v4545_v52 = vpop.f32.mrb[126].mxu1 }
 0x403   : > { %v4650_v34 = vadd.f32 %v4649_v12, %v4648_v49  ;;  %v4651_v33 = vpop.f32.mrb[154].mxu0  ;;  %v4546_v47 = vpop.f32.mrb[127].mxu1 }
 0x404   : > { %v3570_v43 = vadd.f32 %v4544_v24, %v6356_v56  ;;  %v4547_v22 = vadd.f32 %v4546_v47, %v4545_v52  ;;  %v4652_v38 = vpop.f32.mrb[155].mxu0 }
 0x405   : > { %v4653_v46 = vadd.f32 %v4652_v38, %v4651_v33  ;;  %v6446_v25 = vadd.f32 %v4650_v34, %v3562_v18 }
 0x406   : > { %v3573_v6 = vadd.f32 %v4547_v22, %v6359_v37 }
 0x407   : > { %v6450_v31 = vadd.f32 %v4653_v46, %v3565_v7 }
 0x408   : > { %v4744_v1 = vpop.f32.mrb[128].mxu1 }
 0x409   : > { %v4654_v26 = vpop.f32.mrb[156].mxu0  ;;  %v3796_v56 = vadd.f32 %v4744_v1, %v6380_v15  ;;  %v3787_v42 = vpop.f32.mrb[129].mxu1 }
 0x40a   : > { %v4655_v37 = vpop.f32.mrb[157].mxu0  ;;  %v3788_v30 = vadd.f32 %v3787_v42, %v6374_v21  ;;  %v4745_v3 = vpop.f32.mrb[130].mxu1 }
 0x40b   : > { %v3911_v57 = vmul.f32 %v6455_v9, %v3796_v56  ;;  %v4656_v11 = vadd.f32 %v4655_v37, %v4654_v26  ;;  %v4657_v0 = vpop.f32.mrb[158].mxu0  ;;  %v3799_v32 = vadd.f32 %v4745_v3, %v6383_v27  ;;  %v3790_v63 = vpop.f32.mrb[131].mxu1 }
 0x40c   : > { %v3909_v40 = vmul.f32 %v6455_v9, %v3788_v30  ;;  %v4658_v15 = vpop.f32.mrb[159].mxu0  ;;  %v3791_v18 = vadd.f32 %v3790_v63, %v6377_v62 }
 0x40d   : > { %v3950_v41 = vadd.f32 %v6463_v19, %v3911_v57  ;;  %v3912_v53 = vmul.f32 %v6455_v9, %v3799_v32  ;;  %v4659_v44 = vadd.f32 %v4658_v15, %v4657_v0  ;;  %v6472_v7 = vadd.f32 %v4656_v11, %v3570_v43 }
 0x40e   : > { %v3948_v21 = vadd.f32 %v6463_v19, %v3909_v40  ;;  %v3910_v13 = vmul.f32 %v6455_v9, %v3791_v18 }
 0x40f   : > { %3982 = vst [vmem:[%s6476_s29 + $0x30] sm:$0xff] %v3950_v41  ;;  %v3951_v62 = vadd.f32 %v6463_v19, %v3912_v53  ;;  %v6480_v27 = vadd.f32 %v4659_v44, %v3573_v6 }
 0x410   : > { %3980 = vst [vmem:[%s6476_s29 + $0x20] sm:$0xff] %v3948_v21  ;;  %v3949_v49 = vadd.f32 %v6463_v19, %v3910_v13  ;;  %v4748_v29 = vpop.f32.mrb[132].mxu1 }
 0x411   : > { %3983 = vst [vmem:[%s6476_s29 + $0x38] sm:$0xff] %v3951_v62  ;;  %v4740_v24 = vpop.f32.mrb[160].mxu0  ;;  %v3812_v12 = vadd.f32 %v4748_v29, %v6392_v58  ;;  %v3803_v52 = vpop.f32.mrb[133].mxu1 }
 0x412   : > { %3981 = vst [vmem:[%s6476_s29 + $0x28] sm:$0xff] %v3949_v49  ;;  %v3780_v34 = vadd.f32 %v4740_v24, %v6368_v36  ;;  %v3771_v33 = vpop.f32.mrb[161].mxu0  ;;  %v3804_v47 = vadd.f32 %v3803_v52, %v6386_v50  ;;  %v4749_v43 = vpop.f32.mrb[134].mxu1 }
 0x413   : > { %v3915_v22 = vmul.f32 %v6455_v9, %v3812_v12  ;;  %v3772_v38 = vadd.f32 %v3771_v33, %v6362_v61  ;;  %v4741_v46 = vpop.f32.mrb[162].mxu0  ;;  %v3815_v6 = vadd.f32 %v4749_v43, %v6395_v60  ;;  %v3806_v1 = vpop.f32.mrb[135].mxu1 }
 0x414   : > { %v3907_v26 = vmul.f32 %v6455_v9, %v3780_v34  ;;  %v3913_v58 = vmul.f32 %v6455_v9, %v3804_v47  ;;  %v3783_v36 = vadd.f32 %v4741_v46, %v6371_v5  ;;  %v3774_v56 = vpop.f32.mrb[163].mxu0  ;;  %v3807_v50 = vadd.f32 %v3806_v1, %v6389_v23 }
 0x415   : > { %v3954_v42 = vadd.f32 %v6463_v19, %v3915_v22  ;;  %v3905_v61 = vmul.f32 %v6455_v9, %v3772_v38  ;;  %v3916_v37 = vmul.f32 %v6455_v9, %v3815_v6  ;;  %v3775_v60 = vadd.f32 %v3774_v56, %v6365_v54 }
 0x416   : > { %v3946_v30 = vadd.f32 %v6463_v19, %v3907_v26  ;;  %v3952_v3 = vadd.f32 %v6463_v19, %v3913_v58  ;;  %v3908_v5 = vmul.f32 %v6455_v9, %v3783_v36  ;;  %v3914_v57 = vmul.f32 %v6455_v9, %v3807_v50 }
 0x417   : > { %3986 = vst [vmem:[%s6476_s29 + $0x50] sm:$0xff] %v3954_v42  ;;  %v3944_v23 = vadd.f32 %v6463_v19, %v3905_v61  ;;  %v3955_v11 = vadd.f32 %v6463_v19, %v3916_v37  ;;  %v3906_v0 = vmul.f32 %v6455_v9, %v3775_v60 }
 0x418   : > { %3978 = vst [vmem:[%s6476_s29 + $0x10] sm:$0xff] %v3946_v30  ;;  %3984 = vst [vmem:[%s6476_s29 + $0x40] sm:$0xff] %v3952_v3  ;;  %v3947_v54 = vadd.f32 %v6463_v19, %v3908_v5  ;;  %v3953_v32 = vadd.f32 %v6463_v19, %v3914_v57  ;;  %v4752_v63 = vpop.f32.mrb[136].mxu1 }
 0x419   : > { %3976 = vst [vmem:[%s6476_s29] sm:$0xff] %v3944_v23  ;;  %3987 = vst [vmem:[%s6476_s29 + $0x58] sm:$0xff] %v3955_v11  ;;  %v3945_v40 = vadd.f32 %v6463_v19, %v3906_v0  ;;  %v3828_v15 = vadd.f32 %v4752_v63, %v6404_v8  ;;  %v3819_v18 = vpop.f32.mrb[137].mxu1 }
 0x41a   : > { %3979 = vst [vmem:[%s6476_s29 + $0x18] sm:$0xff] %v3947_v54  ;;  %3985 = vst [vmem:[%s6476_s29 + $0x48] sm:$0xff] %v3953_v32  ;;  %v3820_v41 = vadd.f32 %v3819_v18, %v6398_v48  ;;  %v4753_v53 = vpop.f32.mrb[138].mxu1 }
 0x41b   : > { %3977 = vst [vmem:[%s6476_s29 + $0x8] sm:$0xff] %v3945_v40  ;;  %v3919_v44 = vmul.f32 %v6455_v9, %v3828_v15  ;;  %v3831_v21 = vadd.f32 %v4753_v53, %v6407_v16  ;;  %v3822_v13 = vpop.f32.mrb[139].mxu1 }
 0x41c   : > { %v3917_v62 = vmul.f32 %v6455_v9, %v3820_v41  ;;  %v3823_v8 = vadd.f32 %v3822_v13, %v6401_v51 }
 0x41d   : > { %v3958_v49 = vadd.f32 %v6463_v19, %v3919_v44  ;;  %v3920_v29 = vmul.f32 %v6455_v9, %v3831_v21 }
 0x41e   : > { %v3956_v24 = vadd.f32 %v6463_v19, %v3917_v62  ;;  %v3918_v48 = vmul.f32 %v6455_v9, %v3823_v8 }
 0x41f   : > { %3990 = vst [vmem:[%s6476_s29 + $0x70] sm:$0xff] %v3958_v49  ;;  %v3959_v12 = vadd.f32 %v6463_v19, %v3920_v29 }
 0x420   : > { %3988 = vst [vmem:[%s6476_s29 + $0x60] sm:$0xff] %v3956_v24  ;;  %v3957_v16 = vadd.f32 %v6463_v19, %v3918_v48  ;;  %v4756_v52 = vpop.f32.mrb[140].mxu1 }
 0x421   : > { %3991 = vst [vmem:[%s6476_s29 + $0x78] sm:$0xff] %v3959_v12  ;;  %v3844_v34 = vadd.f32 %v4756_v52, %v6416_v59  ;;  %v3835_v51 = vpop.f32.mrb[141].mxu1 }
 0x422   : > { %3989 = vst [vmem:[%s6476_s29 + $0x68] sm:$0xff] %v3957_v16  ;;  %v3836_v33 = vadd.f32 %v3835_v51, %v6410_v55  ;;  %v4757_v47 = vpop.f32.mrb[142].mxu1 }
 0x423   : > { %v3923_v43 = vmul.f32 %v6455_v9, %v3844_v34  ;;  %v3847_v22 = vadd.f32 %v4757_v47, %v6419_v35  ;;  %v3838_v38 = vpop.f32.mrb[143].mxu1 }
 0x424   : > { %v3921_v46 = vmul.f32 %v6455_v9, %v3836_v33  ;;  %v3839_v6 = vadd.f32 %v3838_v38, %v6413_v45 }
 0x425   : > { %v3962_v1 = vadd.f32 %v6463_v19, %v3923_v43  ;;  %v3924_v59 = vmul.f32 %v6455_v9, %v3847_v22 }
 0x426   : > { %v3960_v26 = vadd.f32 %v6463_v19, %v3921_v46  ;;  %v3922_v55 = vmul.f32 %v6455_v9, %v3839_v6 }
 0x427   : > { %3994 = vst [vmem:[%s6476_s29 + $0x90] sm:$0xff] %v3962_v1  ;;  %v3963_v58 = vadd.f32 %v6463_v19, %v3924_v59 }
 0x428   : > { %3992 = vst [vmem:[%s6476_s29 + $0x80] sm:$0xff] %v3960_v26  ;;  %v3961_v35 = vadd.f32 %v6463_v19, %v3922_v55  ;;  %v4760_v36 = vpop.f32.mrb[144].mxu1 }
 0x429   : > { %3995 = vst [vmem:[%s6476_s29 + $0x98] sm:$0xff] %v3963_v58  ;;  %v3860_v56 = vadd.f32 %v4760_v36, %v6428_v39  ;;  %v3851_v45 = vpop.f32.mrb[145].mxu1 }
 0x42a   : > { %3993 = vst [vmem:[%s6476_s29 + $0x88] sm:$0xff] %v3961_v35  ;;  %v3852_v50 = vadd.f32 %v3851_v45, %v6422_v10  ;;  %v4761_v42 = vpop.f32.mrb[146].mxu1 }
 0x42b   : > { %v3927_v61 = vmul.f32 %v6455_v9, %v3860_v56  ;;  %v3863_v37 = vadd.f32 %v4761_v42, %v6431_v28  ;;  %v3854_v60 = vpop.f32.mrb[147].mxu1 }
 0x42c   : > { %v3925_v30 = vmul.f32 %v6455_v9, %v3852_v50  ;;  %v3855_v3 = vadd.f32 %v3854_v60, %v6425_v14 }
 0x42d   : > { %v3966_v5 = vadd.f32 %v6463_v19, %v3927_v61  ;;  %v3928_v39 = vmul.f32 %v6455_v9, %v3863_v37 }
 0x42e   : > { %v3964_v57 = vadd.f32 %v6463_v19, %v3925_v30  ;;  %v3926_v10 = vmul.f32 %v6455_v9, %v3855_v3 }
 0x42f   : > { %3998 = vst [vmem:[%s6476_s29 + $0xb0] sm:$0xff] %v3966_v5  ;;  %v3967_v23 = vadd.f32 %v6463_v19, %v3928_v39 }
 0x430   : > { %3996 = vst [vmem:[%s6476_s29 + $0xa0] sm:$0xff] %v3964_v57  ;;  %v3965_v28 = vadd.f32 %v6463_v19, %v3926_v10  ;;  %v4764_v11 = vpop.f32.mrb[148].mxu1 }
 0x431   : > { %3999 = vst [vmem:[%s6476_s29 + $0xb8] sm:$0xff] %v3967_v23  ;;  %v3876_v0 = vadd.f32 %v4764_v11, %v6440_v4  ;;  %v3867_v14 = vpop.f32.mrb[149].mxu1 }
 0x432   : > { %3997 = vst [vmem:[%s6476_s29 + $0xa8] sm:$0xff] %v3965_v28  ;;  %v3868_v54 = vadd.f32 %v3867_v14, %v6434_v20  ;;  %v4765_v32 = vpop.f32.mrb[150].mxu1 }
 0x433   : > { %v3931_v63 = vmul.f32 %v6455_v9, %v3876_v0  ;;  %v3879_v40 = vadd.f32 %v4765_v32, %v6443_v2  ;;  %v3870_v15 = vpop.f32.mrb[151].mxu1 }
 0x434   : > { %v3929_v18 = vmul.f32 %v6455_v9, %v3868_v54  ;;  %v3871_v41 = vadd.f32 %v3870_v15, %v6437_v17 }
 0x435   : > { %v3970_v53 = vadd.f32 %v6463_v19, %v3931_v63  ;;  %v3932_v4 = vmul.f32 %v6455_v9, %v3879_v40 }
 0x436   : > { %v3968_v44 = vadd.f32 %v6463_v19, %v3929_v18  ;;  %v3930_v20 = vmul.f32 %v6455_v9, %v3871_v41 }
 0x437   : > { %4002 = vst [vmem:[%s6476_s29 + $0xd0] sm:$0xff] %v3970_v53  ;;  %v3971_v21 = vadd.f32 %v6463_v19, %v3932_v4 }
 0x438   : > { %4000 = vst [vmem:[%s6476_s29 + $0xc0] sm:$0xff] %v3968_v44  ;;  %v3969_v2 = vadd.f32 %v6463_v19, %v3930_v20  ;;  %v4768_v13 = vpop.f32.mrb[152].mxu1 }
 0x439   : > { %4003 = vst [vmem:[%s6476_s29 + $0xd8] sm:$0xff] %v3971_v21  ;;  %v3892_v17 = vadd.f32 %v4768_v13, %v6472_v7  ;;  %v3883_v62 = vpop.f32.mrb[153].mxu1 }
 0x43a   : > { %4001 = vst [vmem:[%s6476_s29 + $0xc8] sm:$0xff] %v3969_v2  ;;  %v3884_v8 = vadd.f32 %v3883_v62, %v6446_v25  ;;  %v4769_v49 = vpop.f32.mrb[154].mxu1 }
 0x43b   : > { %v3935_v29 = vmul.f32 %v6455_v9, %v3892_v17  ;;  %v3895_v24 = vadd.f32 %v4769_v49, %v6480_v27  ;;  %v3886_v48 = vpop.f32.mrb[155].mxu1 }
 0x43c   : > { %v3933_v12 = vmul.f32 %v6455_v9, %v3884_v8  ;;  %v3887_v16 = vadd.f32 %v3886_v48, %v6450_v31 }
 0x43d   : > { %v3974_v7 = vadd.f32 %v6463_v19, %v3935_v29  ;;  %v3936_v25 = vmul.f32 %v6455_v9, %v3895_v24 }
 0x43e   : > { %v3972_v52 = vadd.f32 %v6463_v19, %v3933_v12  ;;  %v3934_v34 = vmul.f32 %v6455_v9, %v3887_v16 }
 0x43f   : > { %4006 = vst [vmem:[%s6476_s29 + $0xf0] sm:$0xff] %v3974_v7  ;;  %v3975_v27 = vadd.f32 %v6463_v19, %v3936_v25 }
 0x440   : > { %4004 = vst [vmem:[%s6476_s29 + $0xe0] sm:$0xff] %v3972_v52  ;;  %v3973_v31 = vadd.f32 %v6463_v19, %v3934_v34 }
 0x441   : > { %4007 = vst [vmem:[%s6476_s29 + $0xf8] sm:$0xff] %v3975_v27 }
 0x442   : > { %4005 = vst [vmem:[%s6476_s29 + $0xe8] sm:$0xff] %v3973_v31 }
 0x443   : > { %4927 = shalt.err (!%p4924_p3)
}
 0x444   : > { %s4928_s16 = scalar_lea.hbm %s6599_s19, 4096  ;;  %s4932_s29 = scalar_lea.hbm %s6658_s7, 8192 }
 0x445   : > { %p4929_p4 = scmp.ne.s32.totalorder %s6599_s19, %s4928_s16  ;;  %p4933_p9 = scmp.lt.u32.totalorder %s6599_s19, %s6658_s7 }
 0x446   : > { %p4934_p10 = scmp.lt.u32.totalorder %s4932_s29, %s4928_s16  ;;  %p4936_p12 = scmp.lt.u32.totalorder %s4928_s16, %s6599_s19 }
 0x447   : > { %p4930_p7 = pnand %p4929_p4, %p5068_p5 }
 0x448   : > { %p4935_p11 = por %p4934_p10, %p4933_p9 }
 0x449   : > { %p4931_p8 = pneg %p4930_p7 }
 0x44a   : > { %p4937_p13 = por %p4936_p12, %p4935_p11 }
 0x44c   : > { %p4938_p0 = pnand %p4937_p13, %p4931_p8 }
 0x44e   : > { %4941 = shalt.err (!%p4938_p0)
}
 0x44f   : > { %s4989_s13 = smov 128  }
 0x450   : > { %4787 = dma.vmem_to_hbm [thread:$0]  (%p5068_p5), %s6603_s15, 4096, %s6599_s19, %s6609_s28, %s4989_s13, %s4989_s13, %s4980_s18  }
 0x451 PF: > { %p4793_p1 = scmp.ge.s32.totalorder %s4976_s27, 2  ;;  %s4037_s9 = sand.u32 1, %s4964_s24  }
 0x452   : > { %s4038_s20 = scalar_lea.sflag [#allocation7], %s4037_s9 }
 0x453   : > { %p4790_p2 = pnand %p4793_p1, %p5072_p6 }
 0x455   : > { %4959 = dma.done.wait (!%p4790_p2), %s4038_s20, 4096  }
 0x456   : > { %4961 = vsyncadd (!%p4790_p2), %s4038_s20, 4294963200  ;;  %p17_p3 = scmp.ge.s32.totalorder %s5055_s30, 4   ;;  %s6661_s24 = smov %s4968_s25 }
 0x457   : > { %s6662_s25 = smov %s4972_s26  ;;  %s6663_s26 = smov %s5066_s10 }
 0x458   : > { %s6664_s27 = smov %s5055_s30  ;;  %19 = sbr.rel (!%p17_p3) target bundleno = 3 (0x3), region = 86 }
 0x45f   :  { %4043 = vsyncpa [#allocation7], 1 }
 0x460   :  { %4045 = vsyncpa [#allocation7 + $0x1], 1 }

</bundles_post_ra>
